<compile_context>
chip_gen: v7x
topology: tpu7x:2x2x1
jax: 0.10.0
libtpu: 0.0.40
codegen_flags: <defaults>
</compile_context>

<pallas_src>
import functools

import jax
import jax.numpy as jnp
from jax import lax
from jax.experimental import pallas as pl
from jax.experimental.pallas import tpu as pltpu


def _rnn_recurrence_kernel(x_ref, w_ref, bh_ref, hfin_ref, h_scratch,
                           *, t_total, t_blk):
    """One grid step = one (batch-block, time-chunk).

    x_ref     : (T_blk, B_blk, E)  compute dtype (bf16)  current time chunk
    w_ref     : (E + H, H)         compute dtype         [Wxh; Whh] stacked
    bh_ref    : (1, H)             f32
    hfin_ref  : (B_blk, H)         f32                   final hidden state
    h_scratch : (B_blk, H)         f32                   hidden carry across chunks
    """
    tb = pl.program_id(1)

    @pl.when(tb == 0)
    def _():
        h_scratch[...] = jnp.zeros_like(h_scratch)

    b_blk, h_dim = h_scratch.shape
    cdt = x_ref.dtype

    # Hoisted: broadcast the bias once per chunk, not once per timestep
    # (JAX does not CSE broadcast_in_dim inside the loop body).
    bh = jnp.broadcast_to(bh_ref[...], (b_blk, h_dim))

    def step(t, h):
        x_t = x_ref[t]                                          # (B_blk, E)   bf16
        xh = jnp.concatenate([x_t, h.astype(cdt)], axis=-1)     # (B_blk, E+H) bf16
        z = jnp.dot(xh, w_ref[...], preferred_element_type=jnp.float32)
        h_new = jnp.tanh(z + bh)                                # f32 elementwise path
        if t_total % t_blk == 0:
            return h_new
        # Mask out zero-padded tail timesteps of the final chunk.
        valid = (tb * t_blk + t) < t_total
        return jnp.where(valid, h_new, h)

    h = lax.fori_loop(0, t_blk, step, h_scratch[...], unroll=True)
    h_scratch[...] = h

    @pl.when(tb == pl.num_programs(1) - 1)
    def _():
        hfin_ref[...] = h


def _projection_kernel(h_ref, wy_ref, by_ref, out_ref):
    """logits tile: (B, H) @ (H, V_blk) + (1, V_blk)."""
    out_ref[...] = (
        jnp.dot(h_ref[...], wy_ref[...], preferred_element_type=jnp.float32)
        + by_ref[...]
    ).astype(out_ref.dtype)


def rnn_forward(idx, emb_w, Wxh, Whh, Wy, Bh, By, *,
                compute_dtype=jnp.bfloat16, t_blk=32, v_blk=1024):
    B, T = idx.shape
    V, E = emb_w.shape
    H = Wxh.shape[1]

    # ---- wrapper glue (outside the hot path) -------------------------------
    # TODO(synk): for large T*E, gather embedding rows inside the kernel via a
    # scalar-prefetched idx (num_scalar_prefetch=1) + manual DMA from emb_w held at
    # memory_space=pl.ANY, to avoid writing/re-reading the (T, B, E) activation
    # stream through HBM.
    x = jnp.take(emb_w, idx, axis=0)            # (B, T, E) f32
    x = jnp.transpose(x, (1, 0, 2))             # (T, B, E) time-major
    x = x.astype(compute_dtype)

    # Pad batch to a sublane-friendly multiple of 8, time to a multiple of t_blk.
    B_pad = max(8, -(-B // 8) * 8)
    t_blk = min(t_blk, T)
    T_pad = -(-T // t_blk) * t_blk
    if (T_pad, B_pad) != (T, B):
        x = jnp.pad(x, ((0, T_pad - T), (0, B_pad - B), (0, 0)))

    # Fuse the two recurrence matmuls: [x_t, h] @ [Wxh; Whh].
    W = jnp.concatenate([Wxh, Whh], axis=0).astype(compute_dtype)    # (E+H, H)
    bh2 = Bh.reshape(1, H).astype(jnp.float32)
    by2 = By.reshape(1, V).astype(jnp.float32)

    B_blk = B_pad if B_pad <= 128 else 128
    nb = pl.cdiv(B_pad, B_blk)
    nt = T_pad // t_blk

    kernel = functools.partial(_rnn_recurrence_kernel, t_total=T, t_blk=t_blk)

    hfin = pl.pallas_call(
        kernel,
        out_shape=jax.ShapeDtypeStruct((B_pad, H), jnp.float32),
        grid_spec=pltpu.PrefetchScalarGridSpec(
            num_scalar_prefetch=0,
            grid=(nb, nt),
            in_specs=[
                # per-chunk activation block (time-major)
                pl.BlockSpec((t_blk, B_blk, E), lambda b, t: (t, b, 0)),
                # grid-invariant stacked weights / bias (resident across the grid).
                # NOTE(v7x): pipeline_mode=pl.Buffered(1) here would single-buffer the
                # constant weights and halve their VMEM footprint when E/H are scaled up.
                pl.BlockSpec((E + H, H), lambda b, t: (0, 0)),
                pl.BlockSpec((1, H), lambda b, t: (0, 0)),
            ],
            out_specs=pl.BlockSpec((B_blk, H), lambda b, t: (b, 0)),
            scratch_shapes=[pltpu.VMEM((B_blk, H), jnp.float32)],
        ),
        compiler_params=pltpu.CompilerParams(
            dimension_semantics=("parallel", "arbitrary")),   # batch parallel, time sequential
    )(x, W, bh2)

    # ---- output projection: out of the recurrence, tiled over vocab --------
    v_blk = min(v_blk, V)
    nv = pl.cdiv(V, v_blk)
    logits = pl.pallas_call(
        _projection_kernel,
        out_shape=jax.ShapeDtypeStruct((B_pad, V), jnp.float32),
        grid_spec=pltpu.PrefetchScalarGridSpec(
            num_scalar_prefetch=0,
            grid=(nv,),
            in_specs=[
                pl.BlockSpec((B_pad, H), lambda j: (0, 0)),
                pl.BlockSpec((H, v_blk), lambda j: (0, j)),
                pl.BlockSpec((1, v_blk), lambda j: (0, j)),
            ],
            out_specs=pl.BlockSpec((B_pad, v_blk), lambda j: (0, j)),
        ),
        compiler_params=pltpu.CompilerParams(
            dimension_semantics=("parallel",)),
    )(hfin.astype(compute_dtype), Wy.astype(compute_dtype), by2)

    # strip batch padding
    return logits[:B], hfin[:B]


if __name__ == "__main__":
    # module hyperparameters (kept small: B=4, T=8)
    B, T = 4, 8
    n_emb, hidden_size, vocab_size = 768, 256, 3072

    key = jax.random.PRNGKey(0)
    k = jax.random.split(key, 5)

    def xavier_uniform(kk, shape):
        fan_in, fan_out = shape
        a = (6.0 / (fan_in + fan_out)) ** 0.5
        return jax.random.uniform(kk, shape, jnp.float32, -a, a)

    emb_w = jax.random.normal(k[0], (vocab_size, n_emb), jnp.float32)  # nn.Embedding ~ N(0,1)
    Wxh = xavier_uniform(k[1], (n_emb, hidden_size))
    Whh = xavier_uniform(k[2], (hidden_size, hidden_size))
    Wy = xavier_uniform(k[3], (hidden_size, vocab_size))
    Bh = jnp.zeros((hidden_size,), jnp.float32)
    By = jnp.zeros((vocab_size,), jnp.float32)

    idx = jax.random.randint(k[4], (B, T), 0, vocab_size, dtype=jnp.int32)

    out, hidden = jax.block_until_ready(
        rnn_forward(idx, emb_w, Wxh, Whh, Wy, Bh, By))

    # Reference 1: same bf16-operand / f32-accumulate numerics as the kernel.
    cdt = jnp.bfloat16
    x = jnp.take(emb_w, idx, axis=0)
    Wxh_c, Whh_c, Wy_c = Wxh.astype(cdt), Whh.astype(cdt), Wy.astype(cdt)
    h_bf = jnp.zeros((B, hidden_size), jnp.float32)
    for t in range(T):
        h_bf = jnp.tanh(
            jnp.dot(x[:, t, :].astype(cdt), Wxh_c, preferred_element_type=jnp.float32)
            + jnp.dot(h_bf.astype(cdt), Whh_c, preferred_element_type=jnp.float32)
            + Bh)
    out_bf = jnp.dot(h_bf.astype(cdt), Wy_c, preferred_element_type=jnp.float32) + By

    # Reference 2: pure-f32 PyTorch-equivalent forward (loose tolerance vs bf16 MXU path).
    h32 = jnp.zeros((B, hidden_size), jnp.float32)
    for t in range(T):
        h32 = jnp.tanh(x[:, t, :] @ Wxh + h32 @ Whh + Bh)
    out32 = h32 @ Wy + By

    assert out.shape == (B, vocab_size) and hidden.shape == (B, hidden_size)
    assert jnp.allclose(out, out_bf, atol=1e-2, rtol=1e-2), \
        float(jnp.max(jnp.abs(out - out_bf)))
    assert jnp.allclose(hidden, h_bf, atol=1e-2, rtol=1e-2), \
        float(jnp.max(jnp.abs(hidden - h_bf)))
    assert jnp.allclose(out, out32, atol=7e-2, rtol=7e-2)
    assert jnp.allclose(hidden, h32, atol=7e-2, rtol=7e-2)
    print("KERNEL_OK")
</pallas_src>

<mosaic_0001>
module attributes {stable_mosaic.version = 11 : i64} {
  func.func @_rnn_recurrence_kernel(%arg0: i32, %arg1: i32, %arg2: memref<8x8x768xbf16, #tpu.memory_space<vmem>>, %arg3: memref<1024x256xbf16, #tpu.memory_space<vmem>>, %arg4: memref<1x256xf32, #tpu.memory_space<vmem>>, %arg5: memref<8x256xf32, #tpu.memory_space<vmem>>, %arg6: memref<8x256xf32, #tpu.memory_space<vmem>>) attributes {dimension_semantics = [#tpu.dimension_semantics<parallel>, #tpu.dimension_semantics<arbitrary>], iteration_bounds = array<i64: 1, 1>, scalar_prefetch = 0 : i64, scratch_operands = 1 : i64, tpu.core_type = #tpu.core_type<tc>, window_params = [{transform_indices = @transform_0, window_bounds = array<i64: 8, 8, 768>}, {pipeline_mode = #tpu.pipeline_mode<synchronous>, transform_indices = @transform_1, window_bounds = array<i64: 1024, 256>}, {pipeline_mode = #tpu.pipeline_mode<synchronous>, transform_indices = @transform_2, window_bounds = array<i64: 1, 256>}, {transform_indices = @transform_3, window_bounds = array<i64: 8, 256>}]} {
    %c0_i32 = arith.constant 0 : i32
    %0 = arith.cmpi eq, %arg1, %c0_i32 : i32
    %1 = arith.extui %0 : i1 to i32
    %c0_i32_0 = arith.constant 0 : i32
    %2 = arith.cmpi ne, %1, %c0_i32_0 : i32
    scf.if %2 {
      %cst_48 = arith.constant 0.000000e+00 : f32
      %83 = vector.broadcast %cst_48 : f32 to vector<8x256xf32>
      %c0_49 = arith.constant 0 : index
      %c0_50 = arith.constant 0 : index
      %84 = vector.load %arg6[%c0_49, %c0_50] : memref<8x256xf32, #tpu.memory_space<vmem>>, vector<8x256xf32>
      tpu.vector_store %arg6[%c0_49, %c0_50], %83 {strides = array<i32>} : memref<8x256xf32, #tpu.memory_space<vmem>>, vector<8x256xf32>,
    } else {
    }
    %c0 = arith.constant 0 : index
    %c0_1 = arith.constant 0 : index
    %3 = vector.load %arg4[%c0, %c0_1] : memref<1x256xf32, #tpu.memory_space<vmem>>, vector<1x256xf32>
    %4 = vector.shape_cast %3 : vector<1x256xf32> to vector<1x256xf32>
    %5 = vector.broadcast %4 : vector<1x256xf32> to vector<8x256xf32>
    %c0_2 = arith.constant 0 : index
    %c0_3 = arith.constant 0 : index
    %6 = vector.load %arg6[%c0_2, %c0_3] : memref<8x256xf32, #tpu.memory_space<vmem>>, vector<8x256xf32>
    %c0_i32_4 = arith.constant 0 : i32
    %7 = arith.index_cast %c0_i32_4 : i32 to index
    %c0_5 = arith.constant 0 : index
    %c0_6 = arith.constant 0 : index
    %8 = vector.load %arg2[%7, %c0_5, %c0_6] : memref<8x8x768xbf16, #tpu.memory_space<vmem>>, vector<1x8x768xbf16>
    %9 = vector.shape_cast %8 : vector<1x8x768xbf16> to vector<8x768xbf16>
    %10 = arith.truncf %6 : vector<8x256xf32> to vector<8x256xbf16>
    %11 = tpu.concatenate %9, %10 in 1 : vector<8x768xbf16>, vector<8x256xbf16> -> vector<8x1024xbf16>
    %c0_7 = arith.constant 0 : index
    %c0_8 = arith.constant 0 : index
    %12 = vector.load %arg3[%c0_7, %c0_8] : memref<1024x256xbf16, #tpu.memory_space<vmem>>, vector<1024x256xbf16>
    %cst = arith.constant dense<0.000000e+00> : vector<8x256xf32>
    %13 = tpu.matmul %11, %12, %cst {dimension_numbers = #tpu.dot_dimension_numbers<[1], [0], [0], [1], [0, 0, 1, 1], [], []>} : vector<8x1024xbf16>, vector<1024x256xbf16>, vector<8x256xf32> -> vector<8x256xf32>
    %14 = arith.addf %13, %5 : vector<8x256xf32>
    %15 = math.tanh %14 : vector<8x256xf32>
    %c1_i32 = arith.constant 1 : i32
    %16 = arith.index_cast %c1_i32 : i32 to index
    %c0_9 = arith.constant 0 : index
    %c0_10 = arith.constant 0 : index
    %17 = vector.load %arg2[%16, %c0_9, %c0_10] : memref<8x8x768xbf16, #tpu.memory_space<vmem>>, vector<1x8x768xbf16>
    %18 = vector.shape_cast %17 : vector<1x8x768xbf16> to vector<8x768xbf16>
    %19 = arith.truncf %15 : vector<8x256xf32> to vector<8x256xbf16>
    %20 = tpu.concatenate %18, %19 in 1 : vector<8x768xbf16>, vector<8x256xbf16> -> vector<8x1024xbf16>
    %c0_11 = arith.constant 0 : index
    %c0_12 = arith.constant 0 : index
    %21 = vector.load %arg3[%c0_11, %c0_12] : memref<1024x256xbf16, #tpu.memory_space<vmem>>, vector<1024x256xbf16>
    %cst_13 = arith.constant dense<0.000000e+00> : vector<8x256xf32>
    %22 = tpu.matmul %20, %21, %cst_13 {dimension_numbers = #tpu.dot_dimension_numbers<[1], [0], [0], [1], [0, 0, 1, 1], [], []>} : vector<8x1024xbf16>, vector<1024x256xbf16>, vector<8x256xf32> -> vector<8x256xf32>
    %23 = arith.addf %22, %5 : vector<8x256xf32>
    %24 = math.tanh %23 : vector<8x256xf32>
    %c2_i32 = arith.constant 2 : i32
    %25 = arith.index_cast %c2_i32 : i32 to index
    %c0_14 = arith.constant 0 : index
    %c0_15 = arith.constant 0 : index
    %26 = vector.load %arg2[%25, %c0_14, %c0_15] : memref<8x8x768xbf16, #tpu.memory_space<vmem>>, vector<1x8x768xbf16>
    %27 = vector.shape_cast %26 : vector<1x8x768xbf16> to vector<8x768xbf16>
    %28 = arith.truncf %24 : vector<8x256xf32> to vector<8x256xbf16>
    %29 = tpu.concatenate %27, %28 in 1 : vector<8x768xbf16>, vector<8x256xbf16> -> vector<8x1024xbf16>
    %c0_16 = arith.constant 0 : index
    %c0_17 = arith.constant 0 : index
    %30 = vector.load %arg3[%c0_16, %c0_17] : memref<1024x256xbf16, #tpu.memory_space<vmem>>, vector<1024x256xbf16>
    %cst_18 = arith.constant dense<0.000000e+00> : vector<8x256xf32>
    %31 = tpu.matmul %29, %30, %cst_18 {dimension_numbers = #tpu.dot_dimension_numbers<[1], [0], [0], [1], [0, 0, 1, 1], [], []>} : vector<8x1024xbf16>, vector<1024x256xbf16>, vector<8x256xf32> -> vector<8x256xf32>
    %32 = arith.addf %31, %5 : vector<8x256xf32>
    %33 = math.tanh %32 : vector<8x256xf32>
    %c3_i32 = arith.constant 3 : i32
    %34 = arith.index_cast %c3_i32 : i32 to index
    %c0_19 = arith.constant 0 : index
    %c0_20 = arith.constant 0 : index
    %35 = vector.load %arg2[%34, %c0_19, %c0_20] : memref<8x8x768xbf16, #tpu.memory_space<vmem>>, vector<1x8x768xbf16>
    %36 = vector.shape_cast %35 : vector<1x8x768xbf16> to vector<8x768xbf16>
    %37 = arith.truncf %33 : vector<8x256xf32> to vector<8x256xbf16>
    %38 = tpu.concatenate %36, %37 in 1 : vector<8x768xbf16>, vector<8x256xbf16> -> vector<8x1024xbf16>
    %c0_21 = arith.constant 0 : index
    %c0_22 = arith.constant 0 : index
    %39 = vector.load %arg3[%c0_21, %c0_22] : memref<1024x256xbf16, #tpu.memory_space<vmem>>, vector<1024x256xbf16>
    %cst_23 = arith.constant dense<0.000000e+00> : vector<8x256xf32>
    %40 = tpu.matmul %38, %39, %cst_23 {dimension_numbers = #tpu.dot_dimension_numbers<[1], [0], [0], [1], [0, 0, 1, 1], [], []>} : vector<8x1024xbf16>, vector<1024x256xbf16>, vector<8x256xf32> -> vector<8x256xf32>
    %41 = arith.addf %40, %5 : vector<8x256xf32>
    %42 = math.tanh %41 : vector<8x256xf32>
    %c4_i32 = arith.constant 4 : i32
    %43 = arith.index_cast %c4_i32 : i32 to index
    %c0_24 = arith.constant 0 : index
    %c0_25 = arith.constant 0 : index
    %44 = vector.load %arg2[%43, %c0_24, %c0_25] : memref<8x8x768xbf16, #tpu.memory_space<vmem>>, vector<1x8x768xbf16>
    %45 = vector.shape_cast %44 : vector<1x8x768xbf16> to vector<8x768xbf16>
    %46 = arith.truncf %42 : vector<8x256xf32> to vector<8x256xbf16>
    %47 = tpu.concatenate %45, %46 in 1 : vector<8x768xbf16>, vector<8x256xbf16> -> vector<8x1024xbf16>
    %c0_26 = arith.constant 0 : index
    %c0_27 = arith.constant 0 : index
    %48 = vector.load %arg3[%c0_26, %c0_27] : memref<1024x256xbf16, #tpu.memory_space<vmem>>, vector<1024x256xbf16>
    %cst_28 = arith.constant dense<0.000000e+00> : vector<8x256xf32>
    %49 = tpu.matmul %47, %48, %cst_28 {dimension_numbers = #tpu.dot_dimension_numbers<[1], [0], [0], [1], [0, 0, 1, 1], [], []>} : vector<8x1024xbf16>, vector<1024x256xbf16>, vector<8x256xf32> -> vector<8x256xf32>
    %50 = arith.addf %49, %5 : vector<8x256xf32>
    %51 = math.tanh %50 : vector<8x256xf32>
    %c5_i32 = arith.constant 5 : i32
    %52 = arith.index_cast %c5_i32 : i32 to index
    %c0_29 = arith.constant 0 : index
    %c0_30 = arith.constant 0 : index
    %53 = vector.load %arg2[%52, %c0_29, %c0_30] : memref<8x8x768xbf16, #tpu.memory_space<vmem>>, vector<1x8x768xbf16>
    %54 = vector.shape_cast %53 : vector<1x8x768xbf16> to vector<8x768xbf16>
    %55 = arith.truncf %51 : vector<8x256xf32> to vector<8x256xbf16>
    %56 = tpu.concatenate %54, %55 in 1 : vector<8x768xbf16>, vector<8x256xbf16> -> vector<8x1024xbf16>
    %c0_31 = arith.constant 0 : index
    %c0_32 = arith.constant 0 : index
    %57 = vector.load %arg3[%c0_31, %c0_32] : memref<1024x256xbf16, #tpu.memory_space<vmem>>, vector<1024x256xbf16>
    %cst_33 = arith.constant dense<0.000000e+00> : vector<8x256xf32>
    %58 = tpu.matmul %56, %57, %cst_33 {dimension_numbers = #tpu.dot_dimension_numbers<[1], [0], [0], [1], [0, 0, 1, 1], [], []>} : vector<8x1024xbf16>, vector<1024x256xbf16>, vector<8x256xf32> -> vector<8x256xf32>
    %59 = arith.addf %58, %5 : vector<8x256xf32>
    %60 = math.tanh %59 : vector<8x256xf32>
    %c6_i32 = arith.constant 6 : i32
    %61 = arith.index_cast %c6_i32 : i32 to index
    %c0_34 = arith.constant 0 : index
    %c0_35 = arith.constant 0 : index
    %62 = vector.load %arg2[%61, %c0_34, %c0_35] : memref<8x8x768xbf16, #tpu.memory_space<vmem>>, vector<1x8x768xbf16>
    %63 = vector.shape_cast %62 : vector<1x8x768xbf16> to vector<8x768xbf16>
    %64 = arith.truncf %60 : vector<8x256xf32> to vector<8x256xbf16>
    %65 = tpu.concatenate %63, %64 in 1 : vector<8x768xbf16>, vector<8x256xbf16> -> vector<8x1024xbf16>
    %c0_36 = arith.constant 0 : index
    %c0_37 = arith.constant 0 : index
    %66 = vector.load %arg3[%c0_36, %c0_37] : memref<1024x256xbf16, #tpu.memory_space<vmem>>, vector<1024x256xbf16>
    %cst_38 = arith.constant dense<0.000000e+00> : vector<8x256xf32>
    %67 = tpu.matmul %65, %66, %cst_38 {dimension_numbers = #tpu.dot_dimension_numbers<[1], [0], [0], [1], [0, 0, 1, 1], [], []>} : vector<8x1024xbf16>, vector<1024x256xbf16>, vector<8x256xf32> -> vector<8x256xf32>
    %68 = arith.addf %67, %5 : vector<8x256xf32>
    %69 = math.tanh %68 : vector<8x256xf32>
    %c7_i32 = arith.constant 7 : i32
    %70 = arith.index_cast %c7_i32 : i32 to index
    %c0_39 = arith.constant 0 : index
    %c0_40 = arith.constant 0 : index
    %71 = vector.load %arg2[%70, %c0_39, %c0_40] : memref<8x8x768xbf16, #tpu.memory_space<vmem>>, vector<1x8x768xbf16>
    %72 = vector.shape_cast %71 : vector<1x8x768xbf16> to vector<8x768xbf16>
    %73 = arith.truncf %69 : vector<8x256xf32> to vector<8x256xbf16>
    %74 = tpu.concatenate %72, %73 in 1 : vector<8x768xbf16>, vector<8x256xbf16> -> vector<8x1024xbf16>
    %c0_41 = arith.constant 0 : index
    %c0_42 = arith.constant 0 : index
    %75 = vector.load %arg3[%c0_41, %c0_42] : memref<1024x256xbf16, #tpu.memory_space<vmem>>, vector<1024x256xbf16>
    %cst_43 = arith.constant dense<0.000000e+00> : vector<8x256xf32>
    %76 = tpu.matmul %74, %75, %cst_43 {dimension_numbers = #tpu.dot_dimension_numbers<[1], [0], [0], [1], [0, 0, 1, 1], [], []>} : vector<8x1024xbf16>, vector<1024x256xbf16>, vector<8x256xf32> -> vector<8x256xf32>
    %77 = arith.addf %76, %5 : vector<8x256xf32>
    %78 = math.tanh %77 : vector<8x256xf32>
    %c8_i32 = arith.constant 8 : i32
    %c0_44 = arith.constant 0 : index
    %c0_45 = arith.constant 0 : index
    %79 = vector.load %arg6[%c0_44, %c0_45] : memref<8x256xf32, #tpu.memory_space<vmem>>, vector<8x256xf32>
    tpu.vector_store %arg6[%c0_44, %c0_45], %78 {strides = array<i32>} : memref<8x256xf32, #tpu.memory_space<vmem>>, vector<8x256xf32>,
    %c0_i32_46 = arith.constant 0 : i32
    %80 = arith.cmpi eq, %arg1, %c0_i32_46 : i32
    %81 = arith.extui %80 : i1 to i32
    %c0_i32_47 = arith.constant 0 : i32
    %82 = arith.cmpi ne, %81, %c0_i32_47 : i32
    scf.if %82 {
      %c0_48 = arith.constant 0 : index
      %c0_49 = arith.constant 0 : index
      %83 = vector.load %arg5[%c0_48, %c0_49] : memref<8x256xf32, #tpu.memory_space<vmem>>, vector<8x256xf32>
      tpu.vector_store %arg5[%c0_48, %c0_49], %78 {strides = array<i32>} : memref<8x256xf32, #tpu.memory_space<vmem>>, vector<8x256xf32>,
    } else {
    }
    return
  }
  func.func @transform_0(%arg0: i32, %arg1: i32) -> (i32, i32, i32) {
    %c0_i32 = arith.constant 0 : i32
    %c0_i32_0 = arith.constant 0 : i32
    return %arg1, %arg0, %c0_i32 : i32, i32, i32
  }
  func.func @transform_1(%arg0: i32, %arg1: i32) -> (i32, i32) {
    %c0_i32 = arith.constant 0 : i32
    %c0_i32_0 = arith.constant 0 : i32
    %c0_i32_1 = arith.constant 0 : i32
    return %c0_i32, %c0_i32_0 : i32, i32
  }
  func.func @transform_2(%arg0: i32, %arg1: i32) -> (i32, i32) {
    %c0_i32 = arith.constant 0 : i32
    %c0_i32_0 = arith.constant 0 : i32
    %c0_i32_1 = arith.constant 0 : i32
    return %c0_i32, %c0_i32_0 : i32, i32
  }
  func.func @transform_3(%arg0: i32, %arg1: i32) -> (i32, i32) {
    %c0_i32 = arith.constant 0 : i32
    %c0_i32_0 = arith.constant 0 : i32
    return %arg0, %c0_i32 : i32, i32
  }
}

</mosaic_0001>

<bundles_post_ra>
// kernel: tpu_custom_call.1
= control target key start
LH: loop header
LB: loop body
LE: loop exit
PB: predicated region body
PF: predicated region fallthrough
CT: control target
= control target key end

     0   :  { %8 = vsyncpa [#allocation4], 0  ;;  %s4838_s0 = inlined_call_operand.hbm [shape: bf16[8,8,768], index: 0, kind: input, shape index: {}]   ;;  %s4839_s1 = inlined_call_operand.hbm [shape: bf16[1024,256], index: 1, kind: input, shape index: {}]   ;;  %s4840_s2 = inlined_call_operand.vmem [shape: f32[1,256], index: 2, kind: input, shape index: {}]   ;;  %s4841_s3 = inlined_call_operand.hbm [shape: f32[8,256], index: 3, kind: output, shape index: {}]  }
   0x1   :  { %9 = vsyncpa [#allocation7], 0 }
   0x2   :  { %10 = vsyncpa [#allocation5], 0  ;;  %s3206_s12 = smov [#allocation3]   ;;  %s3134_s16 = scalar_lea.hbm %s4838_s0, 3072 }
   0x3   :  { %s16_s13 = sshll.u32 %s3206_s12, 4  ;;  %p3135_p0 = scmp.ne.s32.totalorder %s4838_s0, %s3134_s16  ;;  %s17_s13 = int_to_ptr.vmem [resolvable:$true] %s16_s13 }
   0x4   :  { %p3138_p1 = scmp.lt.u32.totalorder %s3134_s16, %s4838_s0 }
   0x6   :  { %p3140_p2 = pnand %p3138_p1, %p3135_p0 }
   0x8   :  { %3143 = shalt.err (!%p3140_p2)
}
   0x9   :  { %s3144_s21 = scalar_lea.vmem %s17_s13, 3072  ;;  %p3149_p4 = scmp.lt.s32.totalorder %s17_s13, %s17_s13 }
   0xa   :  { %p3145_p3 = scmp.ne.s32.totalorder %s17_s13, %s3144_s21  ;;  %p3150_p5 = scmp.lt.s32.totalorder %s3144_s21, %s3144_s21 }
   0xc   :  { %p3151_p6 = por %p3150_p5, %p3149_p4 }
   0xe   :  { %p3152_p7 = pnand %p3151_p6, %p3145_p3 }
  0x10   :  { %3155 = shalt.err (!%p3152_p7)
}
  0x11   :  { %s3207_s22 = smov 384   ;;  %s3208_s23 = smov 24  }
  0x12   :  { %22 = dma.hbm_to_vmem [thread:$0]  %s4838_s0, 3072, %s17_s13, [#allocation4], %s3207_s22, %s3207_s22, %s3208_s23  }
  0x13   :  { %s3209_s26 = smov [#allocation6]   ;;  %s3156_s30 = scalar_lea.hbm %s4839_s1, 16384 }
  0x14   :  { %s28_s27 = sshll.u32 %s3209_s26, 4  ;;  %p3157_p8 = scmp.ne.s32.totalorder %s4839_s1, %s3156_s30  ;;  %s29_s27 = int_to_ptr.vmem [resolvable:$true] %s28_s27 }
  0x15   :  { %p3160_p9 = scmp.lt.u32.totalorder %s3156_s30, %s4839_s1 }
  0x17   :  { %p3162_p10 = pnand %p3160_p9, %p3157_p8 }
  0x19   :  { %3165 = shalt.err (!%p3162_p10)
}
  0x1a   :  { %s3166_s8 = scalar_lea.vmem %s29_s27, 16384  ;;  %p3171_p12 = scmp.lt.s32.totalorder %s29_s27, %s29_s27 }
  0x1b   :  { %p3167_p11 = scmp.ne.s32.totalorder %s29_s27, %s3166_s8  ;;  %p3172_p13 = scmp.lt.s32.totalorder %s3166_s8, %s3166_s8 }
  0x1d   :  { %p3173_p0 = por %p3172_p13, %p3171_p12 }
  0x1f   :  { %p3174_p1 = pnand %p3173_p0, %p3167_p11 }
  0x21   :  { %3177 = shalt.err (!%p3174_p1)
}
  0x22   :  { %s3210_s0 = smov 128   ;;  %s3211_s9 = smov 8  }
  0x23   :  { %34 = dma.hbm_to_vmem [thread:$0]  %s4839_s1, 16384, %s29_s27, [#allocation7], %s3210_s0, %s3210_s0, %s3211_s9  }
  0x24   :  { %3200 = dma.done.wait [#allocation4], 3072  }
  0x25   :  { %3201 = vsyncadd [#allocation4], 4294964224 }
  0x26   :  { %3202 = dma.done.wait [#allocation7], 16384  }
  0x27   :  { %3203 = vsyncadd [#allocation7], 4294950912  ;;  %v3258_v0 = vld [vmem:[#allocation6 + $0x4] ss:$8 sps:$4 sm:$0xff]   ;;  %v3260_v1 = vld [vmem:[#allocation6] ss:$8 sps:$4 sm:$0xff]  }
  0x28   :  { %857 = vmatprep.subr.bf16.mxu0 %v3258_v0  ;;  %v3263_v2 = vld [vmem:[#allocation6 + $0x14] ss:$8 sps:$4 sm:$0xff]   ;;  %1050 = vmatprep.subr.bf16.mxu1 %v3258_v0  ;;  %v3267_v3 = vld [vmem:[#allocation6 + $0x10] ss:$8 sps:$4 sm:$0xff]   ;;  %v3271_v4 = vld [vmem:[#allocation6 + $0x24] ss:$8 sps:$4 sm:$0xff]  }
  0x29   :  { %858 = vmatpush1.bf16.msra.mxu0 %v3260_v1  ;;  %1051 = vmatpush1.bf16.msra.mxu1 %v3260_v1  ;;  %v3275_v5 = vld [vmem:[#allocation6 + $0x20] ss:$8 sps:$4 sm:$0xff]   ;;  %v3279_v6 = vld [vmem:[#allocation6 + $0x34] ss:$8 sps:$4 sm:$0xff]   ;;  %v3283_v7 = vld [vmem:[#allocation6 + $0x30] ss:$8 sps:$4 sm:$0xff]  }
  0x2a   :  { %859 = vmatprep.subr.bf16.mxu0 %v3263_v2  ;;  %1052 = vmatprep.subr.bf16.mxu1 %v3263_v2  ;;  %v3287_v8 = vld [vmem:[#allocation6 + $0x44] ss:$8 sps:$4 sm:$0xff]   ;;  %v3291_v9 = vld [vmem:[#allocation6 + $0x40] ss:$8 sps:$4 sm:$0xff]   ;;  %v3295_v10 = vld [vmem:[#allocation6 + $0x54] ss:$8 sps:$4 sm:$0xff]  }
  0x2b   :  { %v3299_v11 = vld [vmem:[#allocation6 + $0x50] ss:$8 sps:$4 sm:$0xff]   ;;  %v3303_v12 = vld [vmem:[#allocation6 + $0x64] ss:$8 sps:$4 sm:$0xff]   ;;  %v3311_v15 = vld [vmem:[#allocation6 + $0x60] ss:$8 sps:$4 sm:$0xff]  }
  0x2c   :  { %v3306_v13 = vld [vmem:[#allocation3] sm:$0xff]  ;;  %v3315_v16 = vld [vmem:[#allocation6 + $0x74] ss:$8 sps:$4 sm:$0xff]   ;;  %v3319_v17 = vld [vmem:[#allocation6 + $0x70] ss:$8 sps:$4 sm:$0xff]  }
  0x2d   :  { %860 = vmatpush1.bf16.msra.mxu0 %v3267_v3  ;;  %1053 = vmatpush1.bf16.msra.mxu1 %v3267_v3  ;;  %v2398_v14 = vcombine.high %v3306_v13, %v3306_v13  ;;  %v3323_v18 = vld [vmem:[#allocation6 + $0x84] ss:$8 sps:$4 sm:$0xff]   ;;  %v3327_v19 = vld [vmem:[#allocation6 + $0x80] ss:$8 sps:$4 sm:$0xff]   ;;  %v3331_v20 = vld [vmem:[#allocation6 + $0x94] ss:$8 sps:$4 sm:$0xff]   ;;  %v2397_v36 = vcombine.low %v3306_v13, %v3306_v13 }
  0x2e   :  { %861 = vmatprep.subr.bf16.mxu0 %v3271_v4  ;;  %1054 = vmatprep.subr.bf16.mxu1 %v3271_v4  ;;  %v3335_v21 = vld [vmem:[#allocation6 + $0x90] ss:$8 sps:$4 sm:$0xff]   ;;  %v3339_v22 = vld [vmem:[#allocation6 + $0xa4] ss:$8 sps:$4 sm:$0xff]   ;;  %v3343_v23 = vld [vmem:[#allocation6 + $0xa0] ss:$8 sps:$4 sm:$0xff]  }
  0x2f   :  { %889 = vmatprep.mubr.bf16.mxu0 %v2398_v14  ;;  %5187 = vst [vmem:[#allocation12_spill] sm:$0xff] %v3339_v22  ;;  %5188 = vst [vmem:[#allocation13_spill] sm:$0xff] %v3343_v23  ;;  %v3347_v24 = vld [vmem:[#allocation6 + $0xb4] ss:$8 sps:$4 sm:$0xff]   ;;  %v3351_v25 = vld [vmem:[#allocation6 + $0xb0] ss:$8 sps:$4 sm:$0xff]  }
  0x30   :  { %5189 = vst [vmem:[#allocation14_spill] sm:$0xff] %v3347_v24  ;;  %5190 = vst [vmem:[#allocation15_spill] sm:$0xff] %v3351_v25  ;;  %v3355_v26 = vld [vmem:[#allocation6 + $0xc4] ss:$8 sps:$4 sm:$0xff]   ;;  %v3359_v27 = vld [vmem:[#allocation6 + $0xc0] ss:$8 sps:$4 sm:$0xff]  }
  0x31   :  { %862 = vmatpush1.bf16.msra.mxu0 %v3275_v5  ;;  %1055 = vmatpush1.bf16.msra.mxu1 %v3275_v5  ;;  %5191 = vst [vmem:[#allocation16_spill] sm:$0xff] %v3355_v26  ;;  %5192 = vst [vmem:[#allocation17_spill] sm:$0xff] %v3359_v27  ;;  %v3363_v28 = vld [vmem:[#allocation6 + $0xd4] ss:$8 sps:$4 sm:$0xff]   ;;  %v3367_v29 = vld [vmem:[#allocation6 + $0xd0] ss:$8 sps:$4 sm:$0xff]  }
  0x32   :  { %863 = vmatprep.subr.bf16.mxu0 %v3279_v6  ;;  %1056 = vmatprep.subr.bf16.mxu1 %v3279_v6  ;;  %5193 = vst [vmem:[#allocation18_spill] sm:$0xff] %v3363_v28  ;;  %5194 = vst [vmem:[#allocation19_spill] sm:$0xff] %v3367_v29  ;;  %v3371_v30 = vld [vmem:[#allocation6 + $0xe4] ss:$8 sps:$4 sm:$0xff]   ;;  %v3375_v31 = vld [vmem:[#allocation6 + $0xe0] ss:$8 sps:$4 sm:$0xff]  }
  0x33   :  { %5195 = vst [vmem:[#allocation20_spill] sm:$0xff] %v3371_v30  ;;  %5196 = vst [vmem:[#allocation21_spill] sm:$0xff] %v3375_v31  ;;  %v3379_v32 = vld [vmem:[#allocation6 + $0xf4] ss:$8 sps:$4 sm:$0xff]   ;;  %v3383_v33 = vld [vmem:[#allocation6 + $0xf0] ss:$8 sps:$4 sm:$0xff]  }
  0x34   :  { %5197 = vst [vmem:[#allocation22_spill] sm:$0xff] %v3379_v32  ;;  %5198 = vst [vmem:[#allocation23_spill] sm:$0xff] %v3383_v33  ;;  %v3387_v34 = vld [vmem:[#allocation6 + $0x104] ss:$8 sps:$4 sm:$0xff]   ;;  %v3395_v37 = vld [vmem:[#allocation6 + $0x100] ss:$8 sps:$4 sm:$0xff]  }
  0x35   :  { %864 = vmatpush1.bf16.msra.mxu0 %v3283_v7  ;;  %1057 = vmatpush1.bf16.msra.mxu1 %v3283_v7  ;;  %5199 = vst [vmem:[#allocation24_spill] sm:$0xff] %v3387_v34  ;;  %v3389_v35 = vld [vmem:[#allocation3 + $0x8] sm:$0xff]  ;;  %5200 = vst [vmem:[#allocation25_spill] sm:$0xff] %v3395_v37  ;;  %v3401_v39 = vld [vmem:[#allocation6 + $0x114] ss:$8 sps:$4 sm:$0xff]  }
  0x36   :  { %865 = vmatprep.subr.bf16.mxu0 %v3287_v8  ;;  %1058 = vmatprep.subr.bf16.mxu1 %v3287_v8  ;;  %v2400_v38 = vcombine.high %v3389_v35, %v3389_v35  ;;  %5201 = vst [vmem:[#allocation26_spill] sm:$0xff] %v3401_v39  ;;  %v3405_v40 = vld [vmem:[#allocation6 + $0x110] ss:$8 sps:$4 sm:$0xff]   ;;  %v3408_v41 = vld [vmem:[#allocation6 + $0x124] ss:$8 sps:$4 sm:$0xff]  }
  0x37   :  { %5202 = vst [vmem:[#allocation27_spill] sm:$0xff] %v3405_v40  ;;  %5203 = vst [vmem:[#allocation28_spill] sm:$0xff] %v3408_v41  ;;  %v3411_v42 = vld [vmem:[#allocation6 + $0x120] ss:$8 sps:$4 sm:$0xff]   ;;  %v3414_v43 = vld [vmem:[#allocation6 + $0x134] ss:$8 sps:$4 sm:$0xff]  }
  0x38   :  { %5204 = vst [vmem:[#allocation29_spill] sm:$0xff] %v3411_v42  ;;  %5205 = vst [vmem:[#allocation30_spill] sm:$0xff] %v3414_v43  ;;  %v3417_v44 = vld [vmem:[#allocation6 + $0x130] ss:$8 sps:$4 sm:$0xff]   ;;  %v3420_v45 = vld [vmem:[#allocation6 + $0x144] ss:$8 sps:$4 sm:$0xff]  }
  0x39   :  { %866 = vmatpush1.bf16.msra.mxu0 %v3291_v9  ;;  %1059 = vmatpush1.bf16.msra.mxu1 %v3291_v9  ;;  %5206 = vst [vmem:[#allocation31_spill] sm:$0xff] %v3417_v44  ;;  %5207 = vst [vmem:[#allocation32_spill] sm:$0xff] %v3420_v45  ;;  %v3423_v46 = vld [vmem:[#allocation6 + $0x140] ss:$8 sps:$4 sm:$0xff]   ;;  %v3426_v47 = vld [vmem:[#allocation6 + $0x154] ss:$8 sps:$4 sm:$0xff]  }
  0x3a   :  { %867 = vmatprep.subr.bf16.mxu0 %v3295_v10  ;;  %1060 = vmatprep.subr.bf16.mxu1 %v3295_v10  ;;  %5208 = vst [vmem:[#allocation33_spill] sm:$0xff] %v3423_v46  ;;  %5209 = vst [vmem:[#allocation34_spill] sm:$0xff] %v3426_v47  ;;  %v3429_v48 = vld [vmem:[#allocation6 + $0x150] ss:$8 sps:$4 sm:$0xff]   ;;  %v3432_v49 = vld [vmem:[#allocation6 + $0x164] ss:$8 sps:$4 sm:$0xff]  }
  0x3b   :  { %5210 = vst [vmem:[#allocation35_spill] sm:$0xff] %v3429_v48  ;;  %5211 = vst [vmem:[#allocation36_spill] sm:$0xff] %v3432_v49  ;;  %v3435_v50 = vld [vmem:[#allocation6 + $0x160] ss:$8 sps:$4 sm:$0xff]   ;;  %v3438_v51 = vld [vmem:[#allocation6 + $0x174] ss:$8 sps:$4 sm:$0xff]  }
  0x3c   :  { %5212 = vst [vmem:[#allocation37_spill] sm:$0xff] %v3435_v50  ;;  %5213 = vst [vmem:[#allocation38_spill] sm:$0xff] %v3438_v51  ;;  %v3441_v52 = vld [vmem:[#allocation6 + $0x170] ss:$8 sps:$4 sm:$0xff]   ;;  %v3444_v53 = vld [vmem:[#allocation6 + $0x184] ss:$8 sps:$4 sm:$0xff]  }
  0x3d   :  { %868 = vmatpush1.bf16.msra.mxu0 %v3299_v11  ;;  %1061 = vmatpush1.bf16.msra.mxu1 %v3299_v11  ;;  %5214 = vst [vmem:[#allocation39_spill] sm:$0xff] %v3441_v52  ;;  %5215 = vst [vmem:[#allocation40_spill] sm:$0xff] %v3444_v53  ;;  %v3447_v54 = vld [vmem:[#allocation6 + $0x180] ss:$8 sps:$4 sm:$0xff]   ;;  %v3450_v55 = vld [vmem:[#allocation6 + $0x194] ss:$8 sps:$4 sm:$0xff]  }
  0x3e   :  { %869 = vmatprep.subr.bf16.mxu0 %v3303_v12  ;;  %1062 = vmatprep.subr.bf16.mxu1 %v3303_v12  ;;  %5216 = vst [vmem:[#allocation41_spill] sm:$0xff] %v3447_v54  ;;  %5217 = vst [vmem:[#allocation42_spill] sm:$0xff] %v3450_v55  ;;  %v3453_v56 = vld [vmem:[#allocation6 + $0x190] ss:$8 sps:$4 sm:$0xff]   ;;  %v3456_v57 = vld [vmem:[#allocation6 + $0x1a4] ss:$8 sps:$4 sm:$0xff]  }
  0x3f   :  { %5218 = vst [vmem:[#allocation43_spill] sm:$0xff] %v3453_v56  ;;  %5219 = vst [vmem:[#allocation44_spill] sm:$0xff] %v3456_v57  ;;  %v3459_v58 = vld [vmem:[#allocation6 + $0x1a0] ss:$8 sps:$4 sm:$0xff]   ;;  %v3462_v59 = vld [vmem:[#allocation6 + $0x1b4] ss:$8 sps:$4 sm:$0xff]  }
  0x40   :  { %5220 = vst [vmem:[#allocation45_spill] sm:$0xff] %v3459_v58  ;;  %5221 = vst [vmem:[#allocation46_spill] sm:$0xff] %v3462_v59  ;;  %v3465_v60 = vld [vmem:[#allocation6 + $0x1b0] ss:$8 sps:$4 sm:$0xff]   ;;  %v3468_v61 = vld [vmem:[#allocation6 + $0x1c4] ss:$8 sps:$4 sm:$0xff]  }
  0x41   :  { %870 = vmatpush1.bf16.msra.mxu0 %v3311_v15  ;;  %1063 = vmatpush1.bf16.msra.mxu1 %v3311_v15  ;;  %5222 = vst [vmem:[#allocation47_spill] sm:$0xff] %v3465_v60  ;;  %5223 = vst [vmem:[#allocation48_spill] sm:$0xff] %v3468_v61  ;;  %v3471_v62 = vld [vmem:[#allocation6 + $0x1c0] ss:$8 sps:$4 sm:$0xff]   ;;  %v3474_v63 = vld [vmem:[#allocation6 + $0x1d4] ss:$8 sps:$4 sm:$0xff]  }
  0x42   :  { %871 = vmatprep.subr.bf16.mxu0 %v3315_v16  ;;  %1064 = vmatprep.subr.bf16.mxu1 %v3315_v16  ;;  %5224 = vst [vmem:[#allocation49_spill] sm:$0xff] %v3471_v62  ;;  %5225 = vst [vmem:[#allocation50_spill] sm:$0xff] %v3474_v63  ;;  %v3477_v13 = vld [vmem:[#allocation6 + $0x1d0] ss:$8 sps:$4 sm:$0xff]   ;;  %v3480_v14 = vld [vmem:[#allocation6 + $0x1e4] ss:$8 sps:$4 sm:$0xff]  }
  0x43   :  { %5226 = vst [vmem:[#allocation51_spill] sm:$0xff] %v3477_v13  ;;  %5227 = vst [vmem:[#allocation52_spill] sm:$0xff] %v3480_v14 }
  0x45   :  { %872 = vmatpush1.bf16.msra.mxu0 %v3319_v17  ;;  %1065 = vmatpush1.bf16.msra.mxu1 %v3319_v17 }
  0x46   :  { %873 = vmatprep.subr.bf16.mxu0 %v3323_v18  ;;  %1066 = vmatprep.subr.bf16.mxu1 %v3323_v18 }
  0x49   :  { %874 = vmatpush1.bf16.msra.mxu0 %v3327_v19  ;;  %1067 = vmatpush1.bf16.msra.mxu1 %v3327_v19 }
  0x4a   :  { %875 = vmatprep.subr.bf16.mxu0 %v3331_v20  ;;  %1068 = vmatprep.subr.bf16.mxu1 %v3331_v20 }
  0x4d   :  { %876 = vmatpush1.bf16.msra.mxu0 %v3335_v21  ;;  %1069 = vmatpush1.bf16.msra.mxu1 %v3335_v21 }
  0x4e   :  { %877 = vmatprep.subr.bf16.mxu0 %v3339_v22  ;;  %1070 = vmatprep.subr.bf16.mxu1 %v3339_v22 }
  0x51   :  { %878 = vmatpush1.bf16.msra.mxu0 %v3343_v23  ;;  %1071 = vmatpush1.bf16.msra.mxu1 %v3343_v23  ;;  %v3512_v23 = vld [vmem:[#allocation6 + $0x224] ss:$8 sps:$4 sm:$0xff]  }
  0x52   :  { %879 = vmatprep.subr.bf16.mxu0 %v3347_v24  ;;  %1072 = vmatprep.subr.bf16.mxu1 %v3347_v24  ;;  %5235 = vst [vmem:[#allocation60_spill] sm:$0xff] %v3512_v23 }
  0x55   :  { %880 = vmatpush1.bf16.msra.mxu0 %v3351_v25  ;;  %1073 = vmatpush1.bf16.msra.mxu1 %v3351_v25  ;;  %v3509_v25 = vld [vmem:[#allocation6 + $0x210] ss:$8 sps:$4 sm:$0xff]  }
  0x56   :  { %881 = vmatprep.subr.bf16.mxu0 %v3355_v26  ;;  %1074 = vmatprep.subr.bf16.mxu1 %v3355_v26  ;;  %v3506_v26 = vld [vmem:[#allocation3 + $0x20] sm:$0xff]  ;;  %5234 = vst [vmem:[#allocation59_spill] sm:$0xff] %v3509_v25 }
  0x57   :  { %v2534_v22 = vcombine.high %v3506_v26, %v3506_v26 }
  0x59   :  { %882 = vmatpush1.bf16.msra.mxu0 %v3359_v27  ;;  %1075 = vmatpush1.bf16.msra.mxu1 %v3359_v27  ;;  %v1024_v27 = vld [vmem:[#allocation3 + $0x18] sm:$0xff] }
  0x5a   :  { %883 = vmatprep.subr.bf16.mxu0 %v3363_v28  ;;  %1076 = vmatprep.subr.bf16.mxu1 %v3363_v28  ;;  %v3504_v28 = vld [vmem:[#allocation6 + $0x214] ss:$8 sps:$4 sm:$0xff]   ;;  %v2532_v24 = vcombine.high %v1024_v27, %v1024_v27 }
  0x5b   :  { %5233 = vst [vmem:[#allocation58_spill] sm:$0xff] %v3504_v28 }
  0x5c   :  { %1082 = vmatprep.mubr.bf16.mxu1 %v2532_v24  ;;  %v3525_v24 = vld [vmem:[#allocation6 + $0x230] ss:$8 sps:$4 sm:$0xff]  }
  0x5d   :  { %884 = vmatpush1.bf16.msra.mxu0 %v3367_v29  ;;  %1077 = vmatpush1.bf16.msra.mxu1 %v3367_v29  ;;  %5238 = vst [vmem:[#allocation63_spill] sm:$0xff] %v3525_v24 }
  0x5e   :  { %885 = vmatprep.subr.bf16.mxu0 %v3371_v30  ;;  %1078 = vmatprep.subr.bf16.mxu1 %v3371_v30  ;;  %v3499_v30 = vld [vmem:[#allocation6 + $0x200] ss:$8 sps:$4 sm:$0xff]  }
  0x5f   :  { %5232 = vst [vmem:[#allocation57_spill] sm:$0xff] %v3499_v30 }
  0x61   :  { %886 = vmatpush1.bf16.msra.mxu0 %v3375_v31  ;;  %1079 = vmatpush1.bf16.msra.mxu1 %v3375_v31  ;;  %v2399_v31 = vcombine.low %v3389_v35, %v3389_v35  ;;  %v2531_v35 = vcombine.low %v1024_v27, %v1024_v27  ;;  %v3529_v27 = vld [vmem:[#allocation6 + $0x244] ss:$8 sps:$4 sm:$0xff]  }
  0x62   :  { %887 = vmatprep.subr.bf16.mxu0 %v3379_v32  ;;  %1080 = vmatprep.subr.bf16.mxu1 %v3379_v32  ;;  %v3494_v32 = vld [vmem:[#allocation3 + $0x10] sm:$0xff]  ;;  %5239 = vst [vmem:[#allocation64_spill] sm:$0xff] %v3529_v27 }
  0x63   :  { %v2402_v29 = vcombine.high %v3494_v32, %v3494_v32 }
  0x65   :  { %888 = vmatpush1.bf16.msra.mxu0 %v3383_v33  ;;  %1081 = vmatpush1.bf16.msra.mxu1 %v3383_v33  ;;  %v3492_v33 = vld [vmem:[#allocation6 + $0x204] ss:$8 sps:$4 sm:$0xff]  }
  0x66   :  { %898 = vmatprep.subr.bf16.mxu0 %v3387_v34  ;;  %1091 = vmatprep.subr.bf16.mxu1 %v3387_v34  ;;  %v3489_v34 = vld [vmem:[#allocation6 + $0x1f0] ss:$8 sps:$4 sm:$0xff]   ;;  %5231 = vst [vmem:[#allocation56_spill] sm:$0xff] %v3492_v33 }
  0x67   :  { %5230 = vst [vmem:[#allocation55_spill] sm:$0xff] %v3489_v34 }
  0x68   :  { %890 = vmatmul.mubr.bf16.vlgmr.msra.gmra.mrb[0].mxu0 %v2397_v36  ;;  %v3483_v36 = vld [vmem:[#allocation6 + $0x1e0] ss:$8 sps:$4 sm:$0xff]   ;;  %1083 = vmatmul.mubr.bf16.vlgmr.msra.gmra.mrb[0].mxu1 %v2531_v35 }
  0x69   :  { %899 = vmatpush1.bf16.msra.mxu0 %v3395_v37  ;;  %930 = vmatprep.mubr.bf16.mxu0 %v2400_v38  ;;  %5228 = vst [vmem:[#allocation53_spill] sm:$0xff] %v3483_v36  ;;  %v3486_v38 = vld [vmem:[#allocation6 + $0x1f4] ss:$8 sps:$4 sm:$0xff]   ;;  %v3533_v35 = vld [vmem:[#allocation6 + $0x240] ss:$8 sps:$4 sm:$0xff]  }
  0x6a   :  { %900 = vmatprep.subr.bf16.mxu0 %v3401_v39  ;;  %5229 = vst [vmem:[#allocation54_spill] sm:$0xff] %v3486_v38  ;;  %1092 = vmatpush1.bf16.msra.mxu1 %v3395_v37  ;;  %5240 = vst [vmem:[#allocation65_spill] sm:$0xff] %v3533_v35  ;;  %v2533_v37 = vcombine.low %v3506_v26, %v3506_v26  ;;  %v3662_v26 = vld [vmem:[#allocation6 + $0x330] ss:$8 sps:$4 sm:$0xff]  }
  0x6b   :  { %1093 = vmatprep.subr.bf16.mxu1 %v3401_v39  ;;  %1123 = vmatprep.mubr.bf16.mxu1 %v2534_v22  ;;  %v3537_v22 = vld [vmem:[#allocation6 + $0x254] ss:$8 sps:$4 sm:$0xff]   ;;  %v3631_v39 = vld [vmem:[#allocation6 + $0x300] ss:$8 sps:$4 sm:$0xff]  }
  0x6c   :  { %5241 = vst [vmem:[#allocation66_spill] sm:$0xff] %v3537_v22 }
  0x6d   :  { %901 = vmatpush1.bf16.msra.mxu0 %v3405_v40 }
  0x6e   :  { %902 = vmatprep.subr.bf16.mxu0 %v3408_v41  ;;  %1094 = vmatpush1.bf16.msra.mxu1 %v3405_v40  ;;  %v3541_v40 = vld [vmem:[#allocation6 + $0x250] ss:$8 sps:$4 sm:$0xff]  }
  0x6f   :  { %1095 = vmatprep.subr.bf16.mxu1 %v3408_v41  ;;  %5242 = vst [vmem:[#allocation67_spill] sm:$0xff] %v3541_v40  ;;  %v3545_v41 = vld [vmem:[#allocation6 + $0x264] ss:$8 sps:$4 sm:$0xff]  }
  0x70   :  { %5243 = vst [vmem:[#allocation68_spill] sm:$0xff] %v3545_v41 }
  0x71   :  { %903 = vmatpush1.bf16.msra.mxu0 %v3411_v42 }
  0x72   :  { %904 = vmatprep.subr.bf16.mxu0 %v3414_v43  ;;  %1096 = vmatpush1.bf16.msra.mxu1 %v3411_v42  ;;  %v3549_v42 = vld [vmem:[#allocation6 + $0x260] ss:$8 sps:$4 sm:$0xff]  }
  0x73   :  { %1097 = vmatprep.subr.bf16.mxu1 %v3414_v43  ;;  %5244 = vst [vmem:[#allocation69_spill] sm:$0xff] %v3549_v42  ;;  %v3553_v43 = vld [vmem:[#allocation6 + $0x274] ss:$8 sps:$4 sm:$0xff]  }
  0x74   :  { %5245 = vst [vmem:[#allocation70_spill] sm:$0xff] %v3553_v43 }
  0x75   :  { %905 = vmatpush1.bf16.msra.mxu0 %v3417_v44 }
  0x76   :  { %906 = vmatprep.subr.bf16.mxu0 %v3420_v45  ;;  %1098 = vmatpush1.bf16.msra.mxu1 %v3417_v44  ;;  %v3557_v44 = vld [vmem:[#allocation6 + $0x270] ss:$8 sps:$4 sm:$0xff]  }
  0x77   :  { %1099 = vmatprep.subr.bf16.mxu1 %v3420_v45  ;;  %5246 = vst [vmem:[#allocation71_spill] sm:$0xff] %v3557_v44  ;;  %v3561_v45 = vld [vmem:[#allocation6 + $0x284] ss:$8 sps:$4 sm:$0xff]  }
  0x78   :  { %5247 = vst [vmem:[#allocation72_spill] sm:$0xff] %v3561_v45 }
  0x79   :  { %907 = vmatpush1.bf16.msra.mxu0 %v3423_v46 }
  0x7a   :  { %908 = vmatprep.subr.bf16.mxu0 %v3426_v47  ;;  %1100 = vmatpush1.bf16.msra.mxu1 %v3423_v46  ;;  %v3565_v46 = vld [vmem:[#allocation6 + $0x280] ss:$8 sps:$4 sm:$0xff]  }
  0x7b   :  { %1101 = vmatprep.subr.bf16.mxu1 %v3426_v47  ;;  %5248 = vst [vmem:[#allocation73_spill] sm:$0xff] %v3565_v46  ;;  %v3569_v47 = vld [vmem:[#allocation6 + $0x294] ss:$8 sps:$4 sm:$0xff]  }
  0x7c   :  { %5249 = vst [vmem:[#allocation74_spill] sm:$0xff] %v3569_v47 }
  0x7d   :  { %909 = vmatpush1.bf16.msra.mxu0 %v3429_v48 }
  0x7e   :  { %910 = vmatprep.subr.bf16.mxu0 %v3432_v49  ;;  %1102 = vmatpush1.bf16.msra.mxu1 %v3429_v48  ;;  %v3573_v48 = vld [vmem:[#allocation6 + $0x290] ss:$8 sps:$4 sm:$0xff]  }
  0x7f   :  { %1103 = vmatprep.subr.bf16.mxu1 %v3432_v49  ;;  %5250 = vst [vmem:[#allocation75_spill] sm:$0xff] %v3573_v48  ;;  %v3577_v49 = vld [vmem:[#allocation6 + $0x2a4] ss:$8 sps:$4 sm:$0xff]  }
  0x80   :  { %5251 = vst [vmem:[#allocation76_spill] sm:$0xff] %v3577_v49 }
  0x81   :  { %911 = vmatpush1.bf16.msra.mxu0 %v3435_v50 }
  0x82   :  { %912 = vmatprep.subr.bf16.mxu0 %v3438_v51  ;;  %1104 = vmatpush1.bf16.msra.mxu1 %v3435_v50  ;;  %v3581_v50 = vld [vmem:[#allocation6 + $0x2a0] ss:$8 sps:$4 sm:$0xff]  }
  0x83   :  { %1105 = vmatprep.subr.bf16.mxu1 %v3438_v51  ;;  %5252 = vst [vmem:[#allocation77_spill] sm:$0xff] %v3581_v50  ;;  %v3585_v51 = vld [vmem:[#allocation6 + $0x2b4] ss:$8 sps:$4 sm:$0xff]  }
  0x84   :  { %5253 = vst [vmem:[#allocation78_spill] sm:$0xff] %v3585_v51 }
  0x85   :  { %913 = vmatpush1.bf16.msra.mxu0 %v3441_v52 }
  0x86   :  { %914 = vmatprep.subr.bf16.mxu0 %v3444_v53  ;;  %1106 = vmatpush1.bf16.msra.mxu1 %v3441_v52  ;;  %v3589_v52 = vld [vmem:[#allocation6 + $0x2b0] ss:$8 sps:$4 sm:$0xff]  }
  0x87   :  { %1107 = vmatprep.subr.bf16.mxu1 %v3444_v53  ;;  %v3593_v53 = vld [vmem:[#allocation6 + $0x2c4] ss:$8 sps:$4 sm:$0xff]  }
  0x89   :  { %915 = vmatpush1.bf16.msra.mxu0 %v3447_v54 }
  0x8a   :  { %916 = vmatprep.subr.bf16.mxu0 %v3450_v55  ;;  %1108 = vmatpush1.bf16.msra.mxu1 %v3447_v54  ;;  %v3597_v54 = vld [vmem:[#allocation6 + $0x2c0] ss:$8 sps:$4 sm:$0xff]  }
  0x8b   :  { %1109 = vmatprep.subr.bf16.mxu1 %v3450_v55  ;;  %5254 = vst [vmem:[#allocation79_spill] sm:$0xff] %v3597_v54  ;;  %v3601_v55 = vld [vmem:[#allocation6 + $0x2d4] ss:$8 sps:$4 sm:$0xff]  }
  0x8c   :  { %5255 = vst [vmem:[#allocation80_spill] sm:$0xff] %v3601_v55 }
  0x8d   :  { %917 = vmatpush1.bf16.msra.mxu0 %v3453_v56 }
  0x8e   :  { %918 = vmatprep.subr.bf16.mxu0 %v3456_v57  ;;  %1110 = vmatpush1.bf16.msra.mxu1 %v3453_v56  ;;  %v3605_v56 = vld [vmem:[#allocation6 + $0x2d0] ss:$8 sps:$4 sm:$0xff]  }
  0x8f   :  { %1111 = vmatprep.subr.bf16.mxu1 %v3456_v57  ;;  %v3609_v57 = vld [vmem:[#allocation6 + $0x2e4] ss:$8 sps:$4 sm:$0xff]  }
  0x91   :  { %919 = vmatpush1.bf16.msra.mxu0 %v3459_v58 }
  0x92   :  { %920 = vmatprep.subr.bf16.mxu0 %v3462_v59  ;;  %1112 = vmatpush1.bf16.msra.mxu1 %v3459_v58  ;;  %v3613_v58 = vld [vmem:[#allocation6 + $0x2e0] ss:$8 sps:$4 sm:$0xff]  }
  0x93   :  { %1113 = vmatprep.subr.bf16.mxu1 %v3462_v59  ;;  %v3617_v59 = vld [vmem:[#allocation6 + $0x2f4] ss:$8 sps:$4 sm:$0xff]  }
  0x95   :  { %921 = vmatpush1.bf16.msra.mxu0 %v3465_v60 }
  0x96   :  { %922 = vmatprep.subr.bf16.mxu0 %v3468_v61  ;;  %1114 = vmatpush1.bf16.msra.mxu1 %v3465_v60  ;;  %v3621_v60 = vld [vmem:[#allocation6 + $0x2f0] ss:$8 sps:$4 sm:$0xff]  }
  0x97   :  { %1115 = vmatprep.subr.bf16.mxu1 %v3468_v61  ;;  %v3625_v61 = vld [vmem:[#allocation6 + $0x304] ss:$8 sps:$4 sm:$0xff]  }
  0x99   :  { %923 = vmatpush1.bf16.msra.mxu0 %v3471_v62 }
  0x9a   :  { %924 = vmatprep.subr.bf16.mxu0 %v3474_v63  ;;  %1116 = vmatpush1.bf16.msra.mxu1 %v3471_v62  ;;  %v2401_v62 = vcombine.low %v3494_v32, %v3494_v32  ;;  %v4907_v32 = vmov 0.0|0.0  }
  0x9b   :  { %1117 = vmatprep.subr.bf16.mxu1 %v3474_v63  ;;  %v3635_v63 = vld [vmem:[#allocation6 + $0x314] ss:$8 sps:$4 sm:$0xff]  }
  0x9d   :  { %925 = vmatpush1.bf16.msra.mxu0 %v3477_v13 }
  0x9e   :  { %926 = vmatprep.subr.bf16.mxu0 %v3480_v14  ;;  %1118 = vmatpush1.bf16.msra.mxu1 %v3477_v13  ;;  %v3638_v13 = vld [vmem:[#allocation3 + $0x28] sm:$0xff] }
  0x9f   :  { %1119 = vmatprep.subr.bf16.mxu1 %v3480_v14  ;;  %v3641_v14 = vld [vmem:[#allocation6 + $0x310] ss:$8 sps:$4 sm:$0xff]  }
  0xa1   :  { %927 = vmatpush1.bf16.msra.mxu0 %v3483_v36 }
  0xa2   :  { %928 = vmatprep.subr.bf16.mxu0 %v3486_v38  ;;  %1120 = vmatpush1.bf16.msra.mxu1 %v3483_v36  ;;  %v3647_v36 = vld [vmem:[#allocation6 + $0x324] ss:$8 sps:$4 sm:$0xff]  }
  0xa3   :  { %1121 = vmatprep.subr.bf16.mxu1 %v3486_v38  ;;  %v3654_v38 = vld [vmem:[#allocation6 + $0x320] ss:$8 sps:$4 sm:$0xff]  }
  0xa5   :  { %929 = vmatpush1.bf16.msra.mxu0 %v3489_v34 }
  0xa6   :  { %939 = vmatprep.subr.bf16.mxu0 %v3492_v33  ;;  %1122 = vmatpush1.bf16.msra.mxu1 %v3489_v34 }
  0xa7   :  { %1132 = vmatprep.subr.bf16.mxu1 %v3492_v33  ;;  %v3665_v33 = vld [vmem:[#allocation6 + $0x344] ss:$8 sps:$4 sm:$0xff]  }
  0xa8   :  { %931 = vmatmul.mubr.bf16.vlgmr.msra.gmra.mrb[0].mxu0 %v2399_v31  ;;  %v3517_v31 = vld [vmem:[#allocation6 + $0x220] ss:$8 sps:$4 sm:$0xff]  }
  0xa9   :  { %940 = vmatpush1.bf16.msra.mxu0 %v3499_v30  ;;  %971 = vmatprep.mubr.bf16.mxu0 %v2402_v29  ;;  %5236 = vst [vmem:[#allocation61_spill] sm:$0xff] %v3517_v31  ;;  %v3521_v29 = vld [vmem:[#allocation6 + $0x234] ss:$8 sps:$4 sm:$0xff]  }
  0xaa   :  { %941 = vmatprep.subr.bf16.mxu0 %v3504_v28  ;;  %5237 = vst [vmem:[#allocation62_spill] sm:$0xff] %v3521_v29  ;;  %1124 = vmatmul.mubr.bf16.vlgmr.msra.gmra.mrb[0].mxu1 %v2533_v37  ;;  %v3670_v37 = vld [vmem:[#allocation6 + $0x340] ss:$8 sps:$4 sm:$0xff]  }
  0xab   :  { %1133 = vmatpush1.bf16.msra.mxu1 %v3499_v30 }
  0xac   :  { %1134 = vmatprep.subr.bf16.mxu1 %v3504_v28  ;;  %v3673_v28 = vld [vmem:[#allocation6 + $0x354] ss:$8 sps:$4 sm:$0xff]  }
  0xad   :  { %942 = vmatpush1.bf16.msra.mxu0 %v3509_v25 }
  0xae   :  { %943 = vmatprep.subr.bf16.mxu0 %v3512_v23 }
  0xaf   :  { %1135 = vmatpush1.bf16.msra.mxu1 %v3509_v25  ;;  %v3681_v25 = vld [vmem:[#allocation6 + $0x364] ss:$8 sps:$4 sm:$0xff]  }
  0xb0   :  { %1136 = vmatprep.subr.bf16.mxu1 %v3512_v23  ;;  %v3686_v23 = vld [vmem:[#allocation6 + $0x360] ss:$8 sps:$4 sm:$0xff]  }
  0xb1   :  { %944 = vmatpush1.bf16.msra.mxu0 %v3517_v31 }
  0xb2   :  { %945 = vmatprep.subr.bf16.mxu0 %v3521_v29 }
  0xb3   :  { %1137 = vmatpush1.bf16.msra.mxu1 %v3517_v31  ;;  %v3689_v31 = vld [vmem:[#allocation6 + $0x374] ss:$8 sps:$4 sm:$0xff]  }
  0xb4   :  { %1138 = vmatprep.subr.bf16.mxu1 %v3521_v29  ;;  %v3694_v29 = vld [vmem:[#allocation6 + $0x370] ss:$8 sps:$4 sm:$0xff]  }
  0xb5   :  { %946 = vmatpush1.bf16.msra.mxu0 %v3525_v24 }
  0xb6   :  { %947 = vmatprep.subr.bf16.mxu0 %v3529_v27 }
  0xb7   :  { %1139 = vmatpush1.bf16.msra.mxu1 %v3525_v24  ;;  %v3697_v24 = vld [vmem:[#allocation6 + $0x384] ss:$8 sps:$4 sm:$0xff]  }
  0xb8   :  { %1140 = vmatprep.subr.bf16.mxu1 %v3529_v27  ;;  %v3702_v27 = vld [vmem:[#allocation6 + $0x380] ss:$8 sps:$4 sm:$0xff]  }
  0xb9   :  { %948 = vmatpush1.bf16.msra.mxu0 %v3533_v35 }
  0xba   :  { %949 = vmatprep.subr.bf16.mxu0 %v3537_v22 }
  0xbb   :  { %1141 = vmatpush1.bf16.msra.mxu1 %v3533_v35  ;;  %v3705_v35 = vld [vmem:[#allocation6 + $0x394] ss:$8 sps:$4 sm:$0xff]  }
  0xbc   :  { %1142 = vmatprep.subr.bf16.mxu1 %v3537_v22  ;;  %v3710_v22 = vld [vmem:[#allocation6 + $0x390] ss:$8 sps:$4 sm:$0xff]  }
  0xbd   :  { %950 = vmatpush1.bf16.msra.mxu0 %v3541_v40 }
  0xbe   :  { %951 = vmatprep.subr.bf16.mxu0 %v3545_v41 }
  0xbf   :  { %1143 = vmatpush1.bf16.msra.mxu1 %v3541_v40  ;;  %v3713_v40 = vld [vmem:[#allocation6 + $0x3a4] ss:$8 sps:$4 sm:$0xff]  }
  0xc0   :  { %1144 = vmatprep.subr.bf16.mxu1 %v3545_v41  ;;  %v3718_v41 = vld [vmem:[#allocation6 + $0x3a0] ss:$8 sps:$4 sm:$0xff]  }
  0xc1   :  { %952 = vmatpush1.bf16.msra.mxu0 %v3549_v42 }
  0xc2   :  { %953 = vmatprep.subr.bf16.mxu0 %v3553_v43 }
  0xc3   :  { %1145 = vmatpush1.bf16.msra.mxu1 %v3549_v42  ;;  %v3721_v42 = vld [vmem:[#allocation6 + $0x3b4] ss:$8 sps:$4 sm:$0xff]  }
  0xc4   :  { %1146 = vmatprep.subr.bf16.mxu1 %v3553_v43  ;;  %v3726_v43 = vld [vmem:[#allocation6 + $0x3b0] ss:$8 sps:$4 sm:$0xff]  }
  0xc5   :  { %954 = vmatpush1.bf16.msra.mxu0 %v3557_v44 }
  0xc6   :  { %955 = vmatprep.subr.bf16.mxu0 %v3561_v45 }
  0xc7   :  { %1147 = vmatpush1.bf16.msra.mxu1 %v3557_v44  ;;  %v3729_v44 = vld [vmem:[#allocation6 + $0x3c4] ss:$8 sps:$4 sm:$0xff]  }
  0xc8   :  { %1148 = vmatprep.subr.bf16.mxu1 %v3561_v45  ;;  %v3734_v45 = vld [vmem:[#allocation6 + $0x3c0] ss:$8 sps:$4 sm:$0xff]  }
  0xc9   :  { %956 = vmatpush1.bf16.msra.mxu0 %v3565_v46 }
  0xca   :  { %957 = vmatprep.subr.bf16.mxu0 %v3569_v47 }
  0xcb   :  { %1149 = vmatpush1.bf16.msra.mxu1 %v3565_v46  ;;  %v3737_v46 = vld [vmem:[#allocation6 + $0x3d4] ss:$8 sps:$4 sm:$0xff]  }
  0xcc   :  { %1150 = vmatprep.subr.bf16.mxu1 %v3569_v47  ;;  %5256 = vst [vmem:[#allocation81_spill] sm:$0xff] %v3737_v46  ;;  %v3742_v47 = vld [vmem:[#allocation6 + $0x3d0] ss:$8 sps:$4 sm:$0xff]  }
  0xcd   :  { %958 = vmatpush1.bf16.msra.mxu0 %v3573_v48  ;;  %5257 = vst [vmem:[#allocation82_spill] sm:$0xff] %v3742_v47 }
  0xce   :  { %959 = vmatprep.subr.bf16.mxu0 %v3577_v49 }
  0xcf   :  { %1151 = vmatpush1.bf16.msra.mxu1 %v3573_v48  ;;  %v3745_v48 = vld [vmem:[#allocation6 + $0x3e4] ss:$8 sps:$4 sm:$0xff]  }
  0xd0   :  { %1152 = vmatprep.subr.bf16.mxu1 %v3577_v49  ;;  %5258 = vst [vmem:[#allocation83_spill] sm:$0xff] %v3745_v48  ;;  %v3750_v49 = vld [vmem:[#allocation6 + $0x3e0] ss:$8 sps:$4 sm:$0xff]  }
  0xd1   :  { %960 = vmatpush1.bf16.msra.mxu0 %v3581_v50  ;;  %5259 = vst [vmem:[#allocation84_spill] sm:$0xff] %v3750_v49 }
  0xd2   :  { %961 = vmatprep.subr.bf16.mxu0 %v3585_v51 }
  0xd3   :  { %1153 = vmatpush1.bf16.msra.mxu1 %v3581_v50  ;;  %v3753_v50 = vld [vmem:[#allocation6 + $0x3f4] ss:$8 sps:$4 sm:$0xff]  }
  0xd4   :  { %1154 = vmatprep.subr.bf16.mxu1 %v3585_v51  ;;  %5260 = vst [vmem:[#allocation85_spill] sm:$0xff] %v3753_v50  ;;  %v3758_v51 = vld [vmem:[#allocation6 + $0x3f0] ss:$8 sps:$4 sm:$0xff]  }
  0xd5   :  { %962 = vmatpush1.bf16.msra.mxu0 %v3589_v52 }
  0xd6   :  { %963 = vmatprep.subr.bf16.mxu0 %v3593_v53 }
  0xd7   :  { %1155 = vmatpush1.bf16.msra.mxu1 %v3589_v52 }
  0xd8   :  { %1156 = vmatprep.subr.bf16.mxu1 %v3593_v53 }
  0xd9   :  { %964 = vmatpush1.bf16.msra.mxu0 %v3597_v54 }
  0xda   :  { %965 = vmatprep.subr.bf16.mxu0 %v3601_v55 }
  0xdb   :  { %1157 = vmatpush1.bf16.msra.mxu1 %v3597_v54  ;;  %v5261_v54 = vmov 0.0|0.0  }
  0xdc   :  { %1158 = vmatprep.subr.bf16.mxu1 %v3601_v55  ;;  %v2535_v55 = vcombine.low %v3638_v13, %v3638_v13 }
  0xdd   :  { %966 = vmatpush1.bf16.msra.mxu0 %v3605_v56 }
  0xde   :  { %967 = vmatprep.subr.bf16.mxu0 %v3609_v57 }
  0xdf   :  { %1159 = vmatpush1.bf16.msra.mxu1 %v3605_v56 }
  0xe0   :  { %1160 = vmatprep.subr.bf16.mxu1 %v3609_v57 }
  0xe1   :  { %968 = vmatpush1.bf16.msra.mxu0 %v3613_v58 }
  0xe2   :  { %969 = vmatprep.subr.bf16.mxu0 %v3617_v59 }
  0xe3   :  { %1161 = vmatpush1.bf16.msra.mxu1 %v3613_v58 }
  0xe4   :  { %1162 = vmatprep.subr.bf16.mxu1 %v3617_v59 }
  0xe5   :  { %970 = vmatpush1.bf16.msra.mxu0 %v3621_v60 }
  0xe6   :  { %980 = vmatprep.subr.bf16.mxu0 %v3625_v61 }
  0xe7   :  { %1163 = vmatpush1.bf16.msra.mxu1 %v3621_v60 }
  0xe8   :  { %972 = vmatmul.mubr.bf16.vlgmr.msra.gmra.mrb[0].mxu0 %v2401_v62  ;;  %v2536_v62 = vcombine.high %v3638_v13, %v3638_v13  ;;  %1173 = vmatprep.subr.bf16.mxu1 %v3625_v61  ;;  %v5279_v13 = vld [vmem:[#allocation28_spill] sm:$0xff] }
  0xe9   :  { %981 = vmatpush1.bf16.msra.mxu0 %v3631_v39  ;;  %1012 = vmatprep.mubr.bf16.mxu0 %v4907_v32  ;;  %v3657_v32 = vld [vmem:[#allocation6 + $0x334] ss:$8 sps:$4 sm:$0xff]  }
  0xea   :  { %982 = vmatprep.subr.bf16.mxu0 %v3635_v63  ;;  %1164 = vmatprep.mubr.bf16.mxu1 %v2536_v62  ;;  %v3678_v62 = vld [vmem:[#allocation6 + $0x350] ss:$8 sps:$4 sm:$0xff]  }
  0xeb   :  { %1165 = vmatmul.mubr.bf16.vlgmr.msra.gmra.mrb[0].mxu1 %v2535_v55  ;;  %v5278_v55 = vld [vmem:[#allocation27_spill] sm:$0xff] }
  0xec   :  { %1174 = vmatpush1.bf16.msra.mxu1 %v3631_v39 }
  0xed   :  { %983 = vmatpush1.bf16.msra.mxu0 %v3641_v14  ;;  %1175 = vmatprep.subr.bf16.mxu1 %v3635_v63 }
  0xee   :  { %984 = vmatprep.subr.bf16.mxu0 %v3647_v36 }
  0xf0   :  { %1176 = vmatpush1.bf16.msra.mxu1 %v3641_v14 }
  0xf1   :  { %985 = vmatpush1.bf16.msra.mxu0 %v3654_v38  ;;  %1177 = vmatprep.subr.bf16.mxu1 %v3647_v36 }
  0xf2   :  { %986 = vmatprep.subr.bf16.mxu0 %v3657_v32 }
  0xf4   :  { %1178 = vmatpush1.bf16.msra.mxu1 %v3654_v38 }
  0xf5   :  { %987 = vmatpush1.bf16.msra.mxu0 %v3662_v26  ;;  %1179 = vmatprep.subr.bf16.mxu1 %v3657_v32 }
  0xf6   :  { %988 = vmatprep.subr.bf16.mxu0 %v3665_v33 }
  0xf8   :  { %1180 = vmatpush1.bf16.msra.mxu1 %v3662_v26 }
  0xf9   :  { %989 = vmatpush1.bf16.msra.mxu0 %v3670_v37  ;;  %1181 = vmatprep.subr.bf16.mxu1 %v3665_v33 }
  0xfa   :  { %990 = vmatprep.subr.bf16.mxu0 %v3673_v28 }
  0xfc   :  { %1182 = vmatpush1.bf16.msra.mxu1 %v3670_v37 }
  0xfd   :  { %991 = vmatpush1.bf16.msra.mxu0 %v3678_v62  ;;  %1183 = vmatprep.subr.bf16.mxu1 %v3673_v28 }
  0xfe   :  { %992 = vmatprep.subr.bf16.mxu0 %v3681_v25 }
 0x100   :  { %1184 = vmatpush1.bf16.msra.mxu1 %v3678_v62 }
 0x101   :  { %993 = vmatpush1.bf16.msra.mxu0 %v3686_v23  ;;  %1185 = vmatprep.subr.bf16.mxu1 %v3681_v25 }
 0x102   :  { %994 = vmatprep.subr.bf16.mxu0 %v3689_v31 }
 0x104   :  { %1186 = vmatpush1.bf16.msra.mxu1 %v3686_v23 }
 0x105   :  { %995 = vmatpush1.bf16.msra.mxu0 %v3694_v29  ;;  %1187 = vmatprep.subr.bf16.mxu1 %v3689_v31 }
 0x106   :  { %996 = vmatprep.subr.bf16.mxu0 %v3697_v24 }
 0x108   :  { %1188 = vmatpush1.bf16.msra.mxu1 %v3694_v29 }
 0x109   :  { %997 = vmatpush1.bf16.msra.mxu0 %v3702_v27  ;;  %1189 = vmatprep.subr.bf16.mxu1 %v3697_v24 }
 0x10a   :  { %998 = vmatprep.subr.bf16.mxu0 %v3705_v35 }
 0x10c   :  { %1190 = vmatpush1.bf16.msra.mxu1 %v3702_v27 }
 0x10d   :  { %999 = vmatpush1.bf16.msra.mxu0 %v3710_v22  ;;  %1191 = vmatprep.subr.bf16.mxu1 %v3705_v35 }
 0x10e   :  { %1000 = vmatprep.subr.bf16.mxu0 %v3713_v40 }
 0x110   :  { %1192 = vmatpush1.bf16.msra.mxu1 %v3710_v22 }
 0x111   :  { %1001 = vmatpush1.bf16.msra.mxu0 %v3718_v41  ;;  %1193 = vmatprep.subr.bf16.mxu1 %v3713_v40 }
 0x112   :  { %1002 = vmatprep.subr.bf16.mxu0 %v3721_v42 }
 0x114   :  { %1194 = vmatpush1.bf16.msra.mxu1 %v3718_v41 }
 0x115   :  { %1003 = vmatpush1.bf16.msra.mxu0 %v3726_v43  ;;  %1195 = vmatprep.subr.bf16.mxu1 %v3721_v42 }
 0x116   :  { %1004 = vmatprep.subr.bf16.mxu0 %v3729_v44 }
 0x118   :  { %1196 = vmatpush1.bf16.msra.mxu1 %v3726_v43 }
 0x119   :  { %1005 = vmatpush1.bf16.msra.mxu0 %v3734_v45  ;;  %1197 = vmatprep.subr.bf16.mxu1 %v3729_v44 }
 0x11a   :  { %1006 = vmatprep.subr.bf16.mxu0 %v3737_v46 }
 0x11c   :  { %1198 = vmatpush1.bf16.msra.mxu1 %v3734_v45 }
 0x11d   :  { %1007 = vmatpush1.bf16.msra.mxu0 %v3742_v47  ;;  %1199 = vmatprep.subr.bf16.mxu1 %v3737_v46 }
 0x11e   :  { %1008 = vmatprep.subr.bf16.mxu0 %v3745_v48 }
 0x120   :  { %1200 = vmatpush1.bf16.msra.mxu1 %v3742_v47 }
 0x121   :  { %1009 = vmatpush1.bf16.msra.mxu0 %v3750_v49  ;;  %1201 = vmatprep.subr.bf16.mxu1 %v3745_v48 }
 0x122   :  { %1010 = vmatprep.subr.bf16.mxu0 %v3753_v50 }
 0x124   :  { %1202 = vmatpush1.bf16.msra.mxu1 %v3750_v49 }
 0x125   :  { %1011 = vmatpush1.bf16.msra.mxu0 %v3758_v51  ;;  %1203 = vmatprep.subr.bf16.mxu1 %v3753_v50 }
 0x126   :  { %1243 = vmatprep.subr.bf16.mxu0 %v3258_v0  ;;  %v5262_v0 = vld [vmem:[#allocation12_spill] sm:$0xff] }
 0x128   :  { %1013 = vmatmul.mubr.bf16.vlgmr.msra.gmra.mrb[0].mxu0 %v5261_v54  ;;  %1204 = vmatpush1.bf16.msra.mxu1 %v3758_v51  ;;  %v5277_v54 = vld [vmem:[#allocation26_spill] sm:$0xff] }
 0x129   :  { %1244 = vmatpush1.bf16.msra.mxu0 %v3260_v1  ;;  %v5263_v1 = vld [vmem:[#allocation13_spill] sm:$0xff] }
 0x12a   :  { %1245 = vmatprep.subr.bf16.mxu0 %v3263_v2  ;;  %v5264_v2 = vld [vmem:[#allocation14_spill] sm:$0xff] }
 0x12d   :  { %1246 = vmatpush1.bf16.msra.mxu0 %v3267_v3  ;;  %v5265_v3 = vld [vmem:[#allocation15_spill] sm:$0xff] }
 0x12e   :  { %1247 = vmatprep.subr.bf16.mxu0 %v3271_v4  ;;  %v5266_v4 = vld [vmem:[#allocation16_spill] sm:$0xff] }
 0x131   :  { %1248 = vmatpush1.bf16.msra.mxu0 %v3275_v5  ;;  %v5267_v5 = vld [vmem:[#allocation17_spill] sm:$0xff] }
 0x132   :  { %1249 = vmatprep.subr.bf16.mxu0 %v3279_v6  ;;  %v5268_v6 = vld [vmem:[#allocation18_spill] sm:$0xff] }
 0x135   :  { %1250 = vmatpush1.bf16.msra.mxu0 %v3283_v7  ;;  %v5269_v7 = vld [vmem:[#allocation19_spill] sm:$0xff] }
 0x136   :  { %1251 = vmatprep.subr.bf16.mxu0 %v3287_v8  ;;  %v5270_v8 = vld [vmem:[#allocation20_spill] sm:$0xff] }
 0x139   :  { %1252 = vmatpush1.bf16.msra.mxu0 %v3291_v9  ;;  %v5271_v9 = vld [vmem:[#allocation21_spill] sm:$0xff] }
 0x13a   :  { %1253 = vmatprep.subr.bf16.mxu0 %v3295_v10  ;;  %v5272_v10 = vld [vmem:[#allocation22_spill] sm:$0xff] }
 0x13d   :  { %1254 = vmatpush1.bf16.msra.mxu0 %v3299_v11  ;;  %v5273_v11 = vld [vmem:[#allocation23_spill] sm:$0xff] }
 0x13e   :  { %1255 = vmatprep.subr.bf16.mxu0 %v3303_v12  ;;  %v5274_v12 = vld [vmem:[#allocation24_spill] sm:$0xff] }
 0x141   :  { %1256 = vmatpush1.bf16.msra.mxu0 %v3311_v15  ;;  %v3835_v15 = vld [vmem:[#allocation6 + $0x4] ss:$8 sps:$4 sm:$0xff]  }
 0x142   :  { %1257 = vmatprep.subr.bf16.mxu0 %v3315_v16  ;;  %5275 = vst [vmem:[#allocation12_spill] sm:$0xff] %v3835_v15  ;;  %1436 = vmatprep.subr.bf16.mxu1 %v3835_v15  ;;  %v1217_v16 = vld [vmem:[#allocation3 + $0x30] sm:$0xff] }
 0x145   :  { %1258 = vmatpush1.bf16.msra.mxu0 %v3319_v17  ;;  %v1218_v17 = vld [vmem:[#allocation3 + $0x38] sm:$0xff] }
 0x146   :  { %1259 = vmatprep.subr.bf16.mxu0 %v3323_v18  ;;  %v2537_v18 = vcombine.low %v1217_v16, %v1217_v16 }
 0x149   :  { %1260 = vmatpush1.bf16.msra.mxu0 %v3327_v19  ;;  %v2538_v19 = vcombine.high %v1217_v16, %v1217_v16  ;;  %v5293_v16 = vld [vmem:[#allocation42_spill] sm:$0xff] }
 0x14a   :  { %1261 = vmatprep.subr.bf16.mxu0 %v3331_v20  ;;  %v2540_v20 = vcombine.high %v1218_v17, %v1218_v17 }
 0x14b   :  { %1275 = vmatprep.mubr.bf16.mxu0 %v2538_v19  ;;  %v5295_v19 = vld [vmem:[#allocation44_spill] sm:$0xff] }
 0x14d   :  { %1262 = vmatpush1.bf16.msra.mxu0 %v3335_v21  ;;  %v5276_v21 = vld [vmem:[#allocation25_spill] sm:$0xff] }
 0x14e   :  { %1263 = vmatprep.subr.bf16.mxu0 %v5262_v0  ;;  %v5280_v0 = vld [vmem:[#allocation29_spill] sm:$0xff] }
 0x151   :  { %1264 = vmatpush1.bf16.msra.mxu0 %v5263_v1  ;;  %v5281_v1 = vld [vmem:[#allocation30_spill] sm:$0xff] }
 0x152   :  { %1265 = vmatprep.subr.bf16.mxu0 %v5264_v2  ;;  %v5282_v2 = vld [vmem:[#allocation31_spill] sm:$0xff] }
 0x155   :  { %1266 = vmatpush1.bf16.msra.mxu0 %v5265_v3  ;;  %v5283_v3 = vld [vmem:[#allocation32_spill] sm:$0xff] }
 0x156   :  { %1267 = vmatprep.subr.bf16.mxu0 %v5266_v4  ;;  %v5284_v4 = vld [vmem:[#allocation33_spill] sm:$0xff] }
 0x159   :  { %1268 = vmatpush1.bf16.msra.mxu0 %v5267_v5  ;;  %v5285_v5 = vld [vmem:[#allocation34_spill] sm:$0xff] }
 0x15a   :  { %1269 = vmatprep.subr.bf16.mxu0 %v5268_v6  ;;  %v5286_v6 = vld [vmem:[#allocation35_spill] sm:$0xff] }
 0x15d   :  { %1270 = vmatpush1.bf16.msra.mxu0 %v5269_v7  ;;  %v5287_v7 = vld [vmem:[#allocation36_spill] sm:$0xff] }
 0x15e   :  { %1271 = vmatprep.subr.bf16.mxu0 %v5270_v8  ;;  %v5288_v8 = vld [vmem:[#allocation37_spill] sm:$0xff] }
 0x161   :  { %1272 = vmatpush1.bf16.msra.mxu0 %v5271_v9  ;;  %v5289_v9 = vld [vmem:[#allocation38_spill] sm:$0xff] }
 0x162   :  { %1273 = vmatprep.subr.bf16.mxu0 %v5272_v10  ;;  %v5290_v10 = vld [vmem:[#allocation39_spill] sm:$0xff] }
 0x165   :  { %1274 = vmatpush1.bf16.msra.mxu0 %v5273_v11  ;;  %v5291_v11 = vld [vmem:[#allocation40_spill] sm:$0xff] }
 0x166   :  { %1284 = vmatprep.subr.bf16.mxu0 %v5274_v12  ;;  %v5292_v12 = vld [vmem:[#allocation41_spill] sm:$0xff] }
 0x168   :  { %1276 = vmatmul.mubr.bf16.vlgmr.msra.gmra.mrb[4].mxu0 %v2537_v18  ;;  %v5294_v18 = vld [vmem:[#allocation43_spill] sm:$0xff] }
 0x169   :  { %1285 = vmatpush1.bf16.msra.mxu0 %v5276_v21  ;;  %1316 = vmatprep.mubr.bf16.mxu0 %v2540_v20  ;;  %v5296_v20 = vld [vmem:[#allocation45_spill] sm:$0xff]  ;;  %v5297_v21 = vld [vmem:[#allocation46_spill] sm:$0xff] }
 0x16a   :  { %1286 = vmatprep.subr.bf16.mxu0 %v5277_v54  ;;  %v5298_v54 = vld [vmem:[#allocation47_spill] sm:$0xff] }
 0x16d   :  { %1287 = vmatpush1.bf16.msra.mxu0 %v5278_v55  ;;  %v5299_v55 = vld [vmem:[#allocation48_spill] sm:$0xff] }
 0x16e   :  { %1288 = vmatprep.subr.bf16.mxu0 %v5279_v13  ;;  %v5300_v13 = vld [vmem:[#allocation49_spill] sm:$0xff] }
 0x171   :  { %1289 = vmatpush1.bf16.msra.mxu0 %v5280_v0  ;;  %v5301_v0 = vld [vmem:[#allocation50_spill] sm:$0xff] }
 0x172   :  { %1290 = vmatprep.subr.bf16.mxu0 %v5281_v1  ;;  %v5302_v1 = vld [vmem:[#allocation51_spill] sm:$0xff] }
 0x175   :  { %1291 = vmatpush1.bf16.msra.mxu0 %v5282_v2  ;;  %v5303_v2 = vld [vmem:[#allocation52_spill] sm:$0xff] }
 0x176   :  { %1292 = vmatprep.subr.bf16.mxu0 %v5283_v3  ;;  %v5304_v3 = vld [vmem:[#allocation53_spill] sm:$0xff] }
 0x179   :  { %1293 = vmatpush1.bf16.msra.mxu0 %v5284_v4 }
 0x17a   :  { %1294 = vmatprep.subr.bf16.mxu0 %v5285_v5 }
 0x17d   :  { %1295 = vmatpush1.bf16.msra.mxu0 %v5286_v6 }
 0x17e   :  { %1296 = vmatprep.subr.bf16.mxu0 %v5287_v7 }
 0x181   :  { %1297 = vmatpush1.bf16.msra.mxu0 %v5288_v8 }
 0x182   :  { %1298 = vmatprep.subr.bf16.mxu0 %v5289_v9 }
 0x185   :  { %1299 = vmatpush1.bf16.msra.mxu0 %v5290_v10 }
 0x186   :  { %1300 = vmatprep.subr.bf16.mxu0 %v5291_v11 }
 0x189   :  { %1301 = vmatpush1.bf16.msra.mxu0 %v5292_v12 }
 0x18a   :  { %1302 = vmatprep.subr.bf16.mxu0 %v5293_v16 }
 0x18d   :  { %1303 = vmatpush1.bf16.msra.mxu0 %v5294_v18  ;;  %v5305_v18 = vld [vmem:[#allocation54_spill] sm:$0xff] }
 0x18e   :  { %1304 = vmatprep.subr.bf16.mxu0 %v5295_v19  ;;  %v3868_v19 = vld [vmem:[#allocation3 + $0x40] sm:$0xff] }
 0x191   :  { %1305 = vmatpush1.bf16.msra.mxu0 %v5296_v20  ;;  %v2539_v20 = vcombine.low %v1218_v17, %v1218_v17  ;;  %v5311_v17 = vld [vmem:[#allocation62_spill] sm:$0xff] }
 0x192   :  { %1306 = vmatprep.subr.bf16.mxu0 %v5297_v21 }
 0x195   :  { %1307 = vmatpush1.bf16.msra.mxu0 %v5298_v54  ;;  %v5306_v54 = vld [vmem:[#allocation56_spill] sm:$0xff] }
 0x196   :  { %1308 = vmatprep.subr.bf16.mxu0 %v5299_v55  ;;  %v2542_v55 = vcombine.high %v3868_v19, %v3868_v19 }
 0x199   :  { %1309 = vmatpush1.bf16.msra.mxu0 %v5300_v13  ;;  %v5314_v13 = vld [vmem:[#allocation65_spill] sm:$0xff] }
 0x19a   :  { %1310 = vmatprep.subr.bf16.mxu0 %v5301_v0  ;;  %v5313_v0 = vld [vmem:[#allocation64_spill] sm:$0xff] }
 0x19d   :  { %1311 = vmatpush1.bf16.msra.mxu0 %v5302_v1  ;;  %v5307_v1 = vld [vmem:[#allocation58_spill] sm:$0xff] }
 0x19e   :  { %1312 = vmatprep.subr.bf16.mxu0 %v5303_v2  ;;  %v5308_v2 = vld [vmem:[#allocation59_spill] sm:$0xff] }
 0x1a1   :  { %1313 = vmatpush1.bf16.msra.mxu0 %v5304_v3  ;;  %v5309_v3 = vld [vmem:[#allocation60_spill] sm:$0xff] }
 0x1a2   :  { %1314 = vmatprep.subr.bf16.mxu0 %v5305_v18  ;;  %v5310_v18 = vld [vmem:[#allocation61_spill] sm:$0xff] }
 0x1a5   :  { %1315 = vmatpush1.bf16.msra.mxu0 %v3489_v34  ;;  %v5312_v34 = vld [vmem:[#allocation63_spill] sm:$0xff] }
 0x1a6   :  { %1325 = vmatprep.subr.bf16.mxu0 %v5306_v54  ;;  %v5322_v54 = vld [vmem:[#allocation73_spill] sm:$0xff] }
 0x1a8   :  { %1317 = vmatmul.mubr.bf16.vlgmr.msra.gmra.mrb[4].mxu0 %v2539_v20  ;;  %v5315_v20 = vld [vmem:[#allocation66_spill] sm:$0xff] }
 0x1a9   :  { %1326 = vmatpush1.bf16.msra.mxu0 %v3499_v30  ;;  %1357 = vmatprep.mubr.bf16.mxu0 %v2542_v55  ;;  %v5316_v30 = vld [vmem:[#allocation67_spill] sm:$0xff]  ;;  %v5317_v55 = vld [vmem:[#allocation68_spill] sm:$0xff] }
 0x1aa   :  { %1327 = vmatprep.subr.bf16.mxu0 %v5307_v1  ;;  %v5318_v1 = vld [vmem:[#allocation69_spill] sm:$0xff] }
 0x1ad   :  { %1328 = vmatpush1.bf16.msra.mxu0 %v5308_v2  ;;  %v5319_v2 = vld [vmem:[#allocation70_spill] sm:$0xff] }
 0x1ae   :  { %1329 = vmatprep.subr.bf16.mxu0 %v5309_v3  ;;  %v51_v3 = vlaneseq }
 0x1b1   :  { %1330 = vmatpush1.bf16.msra.mxu0 %v5310_v18  ;;  %v5320_v18 = vld [vmem:[#allocation71_spill] sm:$0xff] }
 0x1b2   :  { %1331 = vmatprep.subr.bf16.mxu0 %v5311_v17  ;;  %v5321_v17 = vld [vmem:[#allocation72_spill] sm:$0xff] }
 0x1b5   :  { %1332 = vmatpush1.bf16.msra.mxu0 %v5312_v34  ;;  %v52_v34 = vshrl.u32 %v51_v3, 7 }
 0x1b6   :  { %1333 = vmatprep.subr.bf16.mxu0 %v5313_v0  ;;  %v5323_v0 = vld [vmem:[#allocation74_spill] sm:$0xff] }
 0x1b9   :  { %1334 = vmatpush1.bf16.msra.mxu0 %v5314_v13  ;;  %v53_v13 = vsub.s32 0, %v52_v34 }
 0x1ba   :  { %1335 = vmatprep.subr.bf16.mxu0 %v5315_v20  ;;  %v5324_v20 = vld [vmem:[#allocation75_spill] sm:$0xff] }
 0x1bd   :  { %1336 = vmatpush1.bf16.msra.mxu0 %v5316_v30  ;;  %v49_v30 = vld [vmem:[%s4840_s2] sm:$0x3]  ;;  %s3213_s2 = smov [#allocation8]  }
 0x1be   :  { %1337 = vmatprep.subr.bf16.mxu0 %v5317_v55  ;;  %v57_v55 = vsub.s32 1, %v52_v34  ;;  %s2387_s13 = sshll.u32 %s3213_s2, 4  ;;  %s2388_s13 = int_to_ptr.vmem [resolvable:$true] %s2387_s13 }
 0x1bf   :  { %s3178_s14 = scalar_lea.vmem %s2388_s13, 256  ;;  %p3183_p3 = scmp.lt.s32.totalorder %s2388_s13, %s2388_s13 }
 0x1c0   :  { %p3179_p2 = scmp.ne.s32.totalorder %s2388_s13, %s3178_s14  ;;  %p3184_p4 = scmp.lt.s32.totalorder %s3178_s14, %s3178_s14 }
 0x1c1   :  { %1338 = vmatpush1.bf16.msra.mxu0 %v5318_v1  ;;  %v5325_v1 = vld [vmem:[#allocation76_spill] sm:$0xff] }
 0x1c2   :  { %1339 = vmatprep.subr.bf16.mxu0 %v5319_v2  ;;  %v3897_v2 = vrot.slane %v49_v30, %v53_v13  ;;  %v5330_v13 = vld [vmem:[#allocation80_spill] sm:$0xff]  ;;  %p3185_p5 = por %p3184_p4, %p3183_p3 }
 0x1c4   :  { %5326 = vst [vmem:[#allocation13_spill] sm:$0xff] %v3897_v2  ;;  %p3186_p6 = pnand %p3185_p5, %p3179_p2 }
 0x1c5   :  { %1340 = vmatpush1.bf16.msra.mxu0 %v5320_v18  ;;  %v3899_v18 = vrot.slane %v49_v30, %v57_v55  ;;  %v5329_v30 = vld [vmem:[#allocation79_spill] sm:$0xff] }
 0x1c6   :  { %1341 = vmatprep.subr.bf16.mxu0 %v5321_v17  ;;  %v5327_v17 = vld [vmem:[#allocation77_spill] sm:$0xff] }
 0x1c9   :  { %1342 = vmatpush1.bf16.msra.mxu0 %v5322_v54  ;;  %v5328_v54 = vld [vmem:[#allocation78_spill] sm:$0xff] }
 0x1ca   :  { %1343 = vmatprep.subr.bf16.mxu0 %v5323_v0 }
 0x1cd   :  { %1344 = vmatpush1.bf16.msra.mxu0 %v5324_v20 }
 0x1ce   :  { %1345 = vmatprep.subr.bf16.mxu0 %v5325_v1 }
 0x1d1   :  { %1346 = vmatpush1.bf16.msra.mxu0 %v5327_v17 }
 0x1d2   :  { %1347 = vmatprep.subr.bf16.mxu0 %v5328_v54 }
 0x1d5   :  { %1348 = vmatpush1.bf16.msra.mxu0 %v3589_v52 }
 0x1d6   :  { %1349 = vmatprep.subr.bf16.mxu0 %v3593_v53 }
 0x1d9   :  { %1350 = vmatpush1.bf16.msra.mxu0 %v5329_v30 }
 0x1da   :  { %1351 = vmatprep.subr.bf16.mxu0 %v5330_v13 }
 0x1dd   :  { %1352 = vmatpush1.bf16.msra.mxu0 %v3605_v56 }
 0x1de   :  { %1353 = vmatprep.subr.bf16.mxu0 %v3609_v57 }
 0x1e1   :  { %1354 = vmatpush1.bf16.msra.mxu0 %v3613_v58 }
 0x1e2   :  { %1355 = vmatprep.subr.bf16.mxu0 %v3617_v59 }
 0x1e5   :  { %1356 = vmatpush1.bf16.msra.mxu0 %v3621_v60 }
 0x1e6   :  { %1366 = vmatprep.subr.bf16.mxu0 %v3625_v61 }
 0x1fb   :  { %v1014_v3 = vpop.f32.mrb[0].mxu0 }
 0x1fc   :  { %v2573_v0 = vadd.f32 %v1014_v3, %v3897_v2  ;;  %v1016_v21 = vpop.f32.mrb[1].mxu0 }
 0x1fd   :  { %v2574_v16 = vadd.f32 %v1016_v21, %v3899_v18  ;;  %v1018_v12 = vpop.f32.mrb[2].mxu0  ;;  %v3916_v21 = vld [vmem:[#allocation6] ss:$8 sps:$4 sm:$0xff]  }
 0x1fe   :  { %2933 = vtanh.f32 %v2573_v0  ;;  %v1019_v34 = vpop.f32.mrb[3].mxu0  ;;  %v3920_v0 = vld [vmem:[#allocation6 + $0x14] ss:$8 sps:$4 sm:$0xff]  }
 0x1ff   :  { %2935 = vtanh.f32 %v2574_v16  ;;  %v2541_v16 = vcombine.low %v3868_v19, %v3868_v19  ;;  %v3928_v19 = vld [vmem:[#allocation6 + $0x24] ss:$8 sps:$4 sm:$0xff]   ;;  %v3932_v34 = vld [vmem:[#allocation6 + $0x20] ss:$8 sps:$4 sm:$0xff]  }
 0x201   :  { %1358 = vmatmul.mubr.bf16.vlgmr.msra.gmra.mrb[4].mxu0 %v2541_v16  ;;  %v3948_v16 = vld [vmem:[#allocation6 + $0x40] ss:$8 sps:$4 sm:$0xff]  }
 0x202   :  { %1367 = vmatpush1.bf16.msra.mxu0 %v3631_v39  ;;  %5334 = vst [vmem:[#allocation17_spill] sm:$0xff] %v3948_v16 }
 0x203   :  { %1368 = vmatprep.subr.bf16.mxu0 %v3635_v63 }
 0x206   :  { %1369 = vmatpush1.bf16.msra.mxu0 %v3641_v14 }
 0x207   :  { %1370 = vmatprep.subr.bf16.mxu0 %v3647_v36 }
 0x208   :  { %v2934_v55 = vpop.eup %2933 }
 0x209   :  { %v2936_v3 = vpop.eup %2935  ;;  %v1027_v12 = vpack.c.bf16 %v2934_v55, %v2934_v55  ;;  %v3936_v55 = vld [vmem:[#allocation6 + $0x34] ss:$8 sps:$4 sm:$0xff]  }
 0x20a   :  { %v1028_v2 = vpack.c.bf16 %v2936_v3, %v2936_v3  ;;  %5331 = vst [vmem:[#allocation14_spill] sm:$0xff] %v3936_v55  ;;  %1371 = vmatpush1.bf16.msra.mxu0 %v3654_v38  ;;  %v3940_v3 = vld [vmem:[#allocation6 + $0x30] ss:$8 sps:$4 sm:$0xff]  }
 0x20b   :  { %5332 = vst [vmem:[#allocation15_spill] sm:$0xff] %v3940_v3  ;;  %1372 = vmatprep.subr.bf16.mxu0 %v3657_v32 }
 0x20c   :  { %1205 = vmatprep.mubr.bf16.mxu1 %v1028_v2  ;;  %v3924_v2 = vld [vmem:[#allocation6 + $0x10] ss:$8 sps:$4 sm:$0xff]  }
 0x20d   :  { %1206 = vmatmul.mubr.bf16.vlgmr.msra.gmra.mrb[0].mxu1 %v1027_v12  ;;  %v3944_v12 = vld [vmem:[#allocation6 + $0x44] ss:$8 sps:$4 sm:$0xff]  }
 0x20e   :  { %1437 = vmatpush1.bf16.msra.mxu1 %v3916_v21  ;;  %5333 = vst [vmem:[#allocation16_spill] sm:$0xff] %v3944_v12  ;;  %1373 = vmatpush1.bf16.msra.mxu0 %v3662_v26 }
 0x20f   :  { %1438 = vmatprep.subr.bf16.mxu1 %v3920_v0  ;;  %1374 = vmatprep.subr.bf16.mxu0 %v3665_v33 }
 0x212   :  { %1439 = vmatpush1.bf16.msra.mxu1 %v3924_v2  ;;  %1375 = vmatpush1.bf16.msra.mxu0 %v3670_v37 }
 0x213   :  { %1440 = vmatprep.subr.bf16.mxu1 %v3928_v19  ;;  %1376 = vmatprep.subr.bf16.mxu0 %v3673_v28 }
 0x216   :  { %1441 = vmatpush1.bf16.msra.mxu1 %v3932_v34  ;;  %1377 = vmatpush1.bf16.msra.mxu0 %v3678_v62 }
 0x217   :  { %1442 = vmatprep.subr.bf16.mxu1 %v3936_v55  ;;  %v3952_v55 = vld [vmem:[#allocation6 + $0x54] ss:$8 sps:$4 sm:$0xff]   ;;  %1378 = vmatprep.subr.bf16.mxu0 %v3681_v25 }
 0x218   :  { %5335 = vst [vmem:[#allocation18_spill] sm:$0xff] %v3952_v55 }
 0x21a   :  { %1443 = vmatpush1.bf16.msra.mxu1 %v3940_v3  ;;  %v3956_v3 = vld [vmem:[#allocation6 + $0x50] ss:$8 sps:$4 sm:$0xff]   ;;  %1379 = vmatpush1.bf16.msra.mxu0 %v3686_v23 }
 0x21b   :  { %1444 = vmatprep.subr.bf16.mxu1 %v3944_v12  ;;  %5336 = vst [vmem:[#allocation19_spill] sm:$0xff] %v3956_v3  ;;  %v3960_v12 = vld [vmem:[#allocation6 + $0x64] ss:$8 sps:$4 sm:$0xff]   ;;  %1380 = vmatprep.subr.bf16.mxu0 %v3689_v31 }
 0x21c   :  { %5337 = vst [vmem:[#allocation20_spill] sm:$0xff] %v3960_v12 }
 0x21e   :  { %1445 = vmatpush1.bf16.msra.mxu1 %v3948_v16  ;;  %v3964_v16 = vld [vmem:[#allocation6 + $0x60] ss:$8 sps:$4 sm:$0xff]   ;;  %1381 = vmatpush1.bf16.msra.mxu0 %v3694_v29 }
 0x21f   :  { %1446 = vmatprep.subr.bf16.mxu1 %v3952_v55  ;;  %5338 = vst [vmem:[#allocation21_spill] sm:$0xff] %v3964_v16  ;;  %v3968_v55 = vld [vmem:[#allocation6 + $0x74] ss:$8 sps:$4 sm:$0xff]   ;;  %1382 = vmatprep.subr.bf16.mxu0 %v3697_v24 }
 0x220   :  { %5339 = vst [vmem:[#allocation22_spill] sm:$0xff] %v3968_v55 }
 0x222   :  { %1447 = vmatpush1.bf16.msra.mxu1 %v3956_v3  ;;  %v3972_v3 = vld [vmem:[#allocation6 + $0x70] ss:$8 sps:$4 sm:$0xff]   ;;  %1383 = vmatpush1.bf16.msra.mxu0 %v3702_v27 }
 0x223   :  { %1448 = vmatprep.subr.bf16.mxu1 %v3960_v12  ;;  %5340 = vst [vmem:[#allocation23_spill] sm:$0xff] %v3972_v3  ;;  %v3976_v12 = vld [vmem:[#allocation6 + $0x84] ss:$8 sps:$4 sm:$0xff]   ;;  %1384 = vmatprep.subr.bf16.mxu0 %v3705_v35 }
 0x224   :  { %5341 = vst [vmem:[#allocation24_spill] sm:$0xff] %v3976_v12 }
 0x226   :  { %1449 = vmatpush1.bf16.msra.mxu1 %v3964_v16  ;;  %v3980_v16 = vld [vmem:[#allocation6 + $0x80] ss:$8 sps:$4 sm:$0xff]   ;;  %1385 = vmatpush1.bf16.msra.mxu0 %v3710_v22 }
 0x227   :  { %1450 = vmatprep.subr.bf16.mxu1 %v3968_v55  ;;  %5342 = vst [vmem:[#allocation25_spill] sm:$0xff] %v3980_v16  ;;  %v3984_v55 = vld [vmem:[#allocation6 + $0x94] ss:$8 sps:$4 sm:$0xff]   ;;  %1386 = vmatprep.subr.bf16.mxu0 %v3713_v40 }
 0x228   :  { %5343 = vst [vmem:[#allocation26_spill] sm:$0xff] %v3984_v55 }
 0x22a   :  { %1451 = vmatpush1.bf16.msra.mxu1 %v3972_v3  ;;  %v3988_v3 = vld [vmem:[#allocation6 + $0x90] ss:$8 sps:$4 sm:$0xff]   ;;  %1387 = vmatpush1.bf16.msra.mxu0 %v3718_v41 }
 0x22b   :  { %1452 = vmatprep.subr.bf16.mxu1 %v3976_v12  ;;  %5344 = vst [vmem:[#allocation27_spill] sm:$0xff] %v3988_v3  ;;  %v3992_v12 = vld [vmem:[#allocation6 + $0xa4] ss:$8 sps:$4 sm:$0xff]   ;;  %1388 = vmatprep.subr.bf16.mxu0 %v3721_v42 }
 0x22c   :  { %5345 = vst [vmem:[#allocation28_spill] sm:$0xff] %v3992_v12 }
 0x22e   :  { %1453 = vmatpush1.bf16.msra.mxu1 %v3980_v16  ;;  %v3996_v16 = vld [vmem:[#allocation6 + $0xa0] ss:$8 sps:$4 sm:$0xff]   ;;  %1389 = vmatpush1.bf16.msra.mxu0 %v3726_v43 }
 0x22f   :  { %1454 = vmatprep.subr.bf16.mxu1 %v3984_v55  ;;  %5346 = vst [vmem:[#allocation29_spill] sm:$0xff] %v3996_v16  ;;  %v4000_v55 = vld [vmem:[#allocation6 + $0xb4] ss:$8 sps:$4 sm:$0xff]   ;;  %1390 = vmatprep.subr.bf16.mxu0 %v3729_v44 }
 0x230   :  { %5347 = vst [vmem:[#allocation30_spill] sm:$0xff] %v4000_v55 }
 0x232   :  { %1455 = vmatpush1.bf16.msra.mxu1 %v3988_v3  ;;  %v4004_v3 = vld [vmem:[#allocation6 + $0xb0] ss:$8 sps:$4 sm:$0xff]   ;;  %1391 = vmatpush1.bf16.msra.mxu0 %v3734_v45 }
 0x233   :  { %1456 = vmatprep.subr.bf16.mxu1 %v3992_v12  ;;  %5348 = vst [vmem:[#allocation31_spill] sm:$0xff] %v4004_v3  ;;  %v4008_v12 = vld [vmem:[#allocation6 + $0xc4] ss:$8 sps:$4 sm:$0xff]   ;;  %1392 = vmatprep.subr.bf16.mxu0 %v3737_v46 }
 0x234   :  { %5349 = vst [vmem:[#allocation32_spill] sm:$0xff] %v4008_v12 }
 0x236   :  { %1457 = vmatpush1.bf16.msra.mxu1 %v3996_v16  ;;  %v4012_v16 = vld [vmem:[#allocation6 + $0xc0] ss:$8 sps:$4 sm:$0xff]   ;;  %1393 = vmatpush1.bf16.msra.mxu0 %v3742_v47 }
 0x237   :  { %1458 = vmatprep.subr.bf16.mxu1 %v4000_v55  ;;  %5350 = vst [vmem:[#allocation33_spill] sm:$0xff] %v4012_v16  ;;  %v4016_v55 = vld [vmem:[#allocation6 + $0xd4] ss:$8 sps:$4 sm:$0xff]   ;;  %1394 = vmatprep.subr.bf16.mxu0 %v3745_v48  ;;  %v1410_v48 = vld [vmem:[#allocation3 + $0x48] sm:$0xff] }
 0x238   :  { %5351 = vst [vmem:[#allocation34_spill] sm:$0xff] %v4016_v55  ;;  %v2543_v47 = vcombine.low %v1410_v48, %v1410_v48 }
 0x23a   :  { %1459 = vmatpush1.bf16.msra.mxu1 %v4004_v3  ;;  %v4020_v3 = vld [vmem:[#allocation6 + $0xd0] ss:$8 sps:$4 sm:$0xff]   ;;  %1395 = vmatpush1.bf16.msra.mxu0 %v3750_v49  ;;  %v4045_v49 = vld [vmem:[#allocation6 + $0x100] ss:$8 sps:$4 sm:$0xff]  }
 0x23b   :  { %1460 = vmatprep.subr.bf16.mxu1 %v4008_v12  ;;  %5352 = vst [vmem:[#allocation35_spill] sm:$0xff] %v4020_v3  ;;  %v4024_v12 = vld [vmem:[#allocation6 + $0xe4] ss:$8 sps:$4 sm:$0xff]   ;;  %1396 = vmatprep.subr.bf16.mxu0 %v3753_v50  ;;  %v4048_v50 = vld [vmem:[#allocation6 + $0x114] ss:$8 sps:$4 sm:$0xff]  }
 0x23c   :  { %5353 = vst [vmem:[#allocation36_spill] sm:$0xff] %v4024_v12 }
 0x23e   :  { %1461 = vmatpush1.bf16.msra.mxu1 %v4012_v16  ;;  %v4028_v16 = vld [vmem:[#allocation6 + $0xe0] ss:$8 sps:$4 sm:$0xff]   ;;  %1397 = vmatpush1.bf16.msra.mxu0 %v3758_v51 }
 0x23f   :  { %1462 = vmatprep.subr.bf16.mxu1 %v4016_v55  ;;  %5354 = vst [vmem:[#allocation37_spill] sm:$0xff] %v4028_v16  ;;  %v4032_v55 = vld [vmem:[#allocation6 + $0xf4] ss:$8 sps:$4 sm:$0xff]   ;;  %1629 = vmatprep.subr.bf16.mxu0 %v3835_v15  ;;  %v4054_v15 = vld [vmem:[#allocation6 + $0x124] ss:$8 sps:$4 sm:$0xff]  }
 0x240   :  { %5355 = vst [vmem:[#allocation38_spill] sm:$0xff] %v4032_v55 }
 0x242   :  { %1463 = vmatpush1.bf16.msra.mxu1 %v4020_v3  ;;  %v4036_v3 = vld [vmem:[#allocation6 + $0xf0] ss:$8 sps:$4 sm:$0xff]  }
 0x243   :  { %1464 = vmatprep.subr.bf16.mxu1 %v4024_v12  ;;  %v4040_v12 = vld [vmem:[#allocation6 + $0x104] ss:$8 sps:$4 sm:$0xff]  }
 0x244   :  { %5356 = vst [vmem:[#allocation39_spill] sm:$0xff] %v4040_v12 }
 0x246   :  { %1465 = vmatpush1.bf16.msra.mxu1 %v4028_v16  ;;  %v1411_v16 = vld [vmem:[#allocation3 + $0x50] sm:$0xff] }
 0x247   :  { %1466 = vmatprep.subr.bf16.mxu1 %v4032_v55  ;;  %v2544_v55 = vcombine.high %v1410_v48, %v1410_v48  ;;  %v2546_v46 = vcombine.high %v1411_v16, %v1411_v16  ;;  %v4057_v48 = vld [vmem:[#allocation6 + $0x120] ss:$8 sps:$4 sm:$0xff]  }
 0x248   :  { %5357 = vst [vmem:[#allocation40_spill] sm:$0xff] %v4057_v48 }
 0x249   :  { %1468 = vmatprep.mubr.bf16.mxu1 %v2544_v55  ;;  %v4066_v55 = vld [vmem:[#allocation6 + $0x144] ss:$8 sps:$4 sm:$0xff]  }
 0x24a   :  { %1467 = vmatpush1.bf16.msra.mxu1 %v4036_v3  ;;  %5360 = vst [vmem:[#allocation77_spill] sm:$0xff] %v4066_v55 }
 0x24b   :  { %1477 = vmatprep.subr.bf16.mxu1 %v4040_v12  ;;  %v4051_v12 = vld [vmem:[#allocation6 + $0x110] ss:$8 sps:$4 sm:$0xff]  }
 0x24d   :  { %1469 = vmatmul.mubr.bf16.vlgmr.msra.gmra.mrb[4].mxu1 %v2543_v47  ;;  %v4060_v47 = vld [vmem:[#allocation6 + $0x134] ss:$8 sps:$4 sm:$0xff]  }
 0x24e   :  { %1478 = vmatpush1.bf16.msra.mxu1 %v4045_v49  ;;  %1509 = vmatprep.mubr.bf16.mxu1 %v2546_v46  ;;  %5358 = vst [vmem:[#allocation75_spill] sm:$0xff] %v4060_v47  ;;  %v4063_v46 = vld [vmem:[#allocation6 + $0x130] ss:$8 sps:$4 sm:$0xff]  }
 0x24f   :  { %1479 = vmatprep.subr.bf16.mxu1 %v4048_v50  ;;  %5359 = vst [vmem:[#allocation76_spill] sm:$0xff] %v4063_v46 }
 0x252   :  { %1480 = vmatpush1.bf16.msra.mxu1 %v4051_v12 }
 0x253   :  { %1481 = vmatprep.subr.bf16.mxu1 %v4054_v15 }
 0x256   :  { %1482 = vmatpush1.bf16.msra.mxu1 %v4057_v48  ;;  %v5375_v48 = vld [vmem:[#allocation55_spill] sm:$0xff] }
 0x257   :  { %1483 = vmatprep.subr.bf16.mxu1 %v4060_v47  ;;  %v5362_v47 = vld [vmem:[#allocation42_spill] sm:$0xff] }
 0x25a   :  { %1484 = vmatpush1.bf16.msra.mxu1 %v4063_v46  ;;  %v5361_v46 = vld [vmem:[#allocation41_spill] sm:$0xff] }
 0x25b   :  { %1485 = vmatprep.subr.bf16.mxu1 %v4066_v55  ;;  %v5363_v55 = vld [vmem:[#allocation43_spill] sm:$0xff] }
 0x25e   :  { %1486 = vmatpush1.bf16.msra.mxu1 %v5284_v4  ;;  %v5364_v4 = vld [vmem:[#allocation44_spill] sm:$0xff] }
 0x25f   :  { %1487 = vmatprep.subr.bf16.mxu1 %v5285_v5  ;;  %v5365_v5 = vld [vmem:[#allocation45_spill] sm:$0xff] }
 0x262   :  { %1488 = vmatpush1.bf16.msra.mxu1 %v5286_v6  ;;  %v5366_v6 = vld [vmem:[#allocation46_spill] sm:$0xff] }
 0x263   :  { %1489 = vmatprep.subr.bf16.mxu1 %v5287_v7  ;;  %v5367_v7 = vld [vmem:[#allocation47_spill] sm:$0xff] }
 0x266   :  { %1490 = vmatpush1.bf16.msra.mxu1 %v5288_v8  ;;  %v5368_v8 = vld [vmem:[#allocation48_spill] sm:$0xff] }
 0x267   :  { %1491 = vmatprep.subr.bf16.mxu1 %v5289_v9  ;;  %v5369_v9 = vld [vmem:[#allocation49_spill] sm:$0xff] }
 0x26a   :  { %1492 = vmatpush1.bf16.msra.mxu1 %v5290_v10  ;;  %v5370_v10 = vld [vmem:[#allocation50_spill] sm:$0xff] }
 0x26b   :  { %1493 = vmatprep.subr.bf16.mxu1 %v5291_v11  ;;  %v5371_v11 = vld [vmem:[#allocation51_spill] sm:$0xff] }
 0x26e   :  { %1494 = vmatpush1.bf16.msra.mxu1 %v5361_v46  ;;  %v5372_v46 = vld [vmem:[#allocation52_spill] sm:$0xff] }
 0x26f   :  { %1495 = vmatprep.subr.bf16.mxu1 %v5362_v47  ;;  %v5373_v47 = vld [vmem:[#allocation53_spill] sm:$0xff] }
 0x272   :  { %1496 = vmatpush1.bf16.msra.mxu1 %v5363_v55  ;;  %v5374_v55 = vld [vmem:[#allocation54_spill] sm:$0xff] }
 0x273   :  { %1497 = vmatprep.subr.bf16.mxu1 %v5364_v4  ;;  %v1412_v4 = vld [vmem:[#allocation3 + $0x58] sm:$0xff] }
 0x276   :  { %1498 = vmatpush1.bf16.msra.mxu1 %v5365_v5  ;;  %v2545_v5 = vcombine.low %v1411_v16, %v1411_v16  ;;  %v5383_v16 = vld [vmem:[#allocation63_spill] sm:$0xff] }
 0x277   :  { %1499 = vmatprep.subr.bf16.mxu1 %v5366_v6  ;;  %v2548_v6 = vcombine.high %v1412_v4, %v1412_v4 }
 0x27a   :  { %1500 = vmatpush1.bf16.msra.mxu1 %v5367_v7  ;;  %v5376_v7 = vld [vmem:[#allocation56_spill] sm:$0xff] }
 0x27b   :  { %1501 = vmatprep.subr.bf16.mxu1 %v5368_v8  ;;  %v5377_v8 = vld [vmem:[#allocation57_spill] sm:$0xff] }
 0x27e   :  { %1502 = vmatpush1.bf16.msra.mxu1 %v5369_v9  ;;  %v5378_v9 = vld [vmem:[#allocation58_spill] sm:$0xff] }
 0x27f   :  { %1503 = vmatprep.subr.bf16.mxu1 %v5370_v10  ;;  %v5379_v10 = vld [vmem:[#allocation59_spill] sm:$0xff] }
 0x282   :  { %1504 = vmatpush1.bf16.msra.mxu1 %v5371_v11  ;;  %v5380_v11 = vld [vmem:[#allocation60_spill] sm:$0xff] }
 0x283   :  { %1505 = vmatprep.subr.bf16.mxu1 %v5372_v46  ;;  %v5381_v46 = vld [vmem:[#allocation61_spill] sm:$0xff] }
 0x286   :  { %1506 = vmatpush1.bf16.msra.mxu1 %v5373_v47  ;;  %v5382_v47 = vld [vmem:[#allocation62_spill] sm:$0xff] }
 0x287   :  { %1507 = vmatprep.subr.bf16.mxu1 %v5374_v55  ;;  %v5385_v55 = vld [vmem:[#allocation65_spill] sm:$0xff] }
 0x28a   :  { %1508 = vmatpush1.bf16.msra.mxu1 %v5375_v48  ;;  %v5384_v48 = vld [vmem:[#allocation64_spill] sm:$0xff] }
 0x28b   :  { %1518 = vmatprep.subr.bf16.mxu1 %v5376_v7  ;;  %v5387_v7 = vld [vmem:[#allocation67_spill] sm:$0xff] }
 0x28d   :  { %1510 = vmatmul.mubr.bf16.vlgmr.msra.gmra.mrb[4].mxu1 %v2545_v5  ;;  %v5386_v5 = vld [vmem:[#allocation66_spill] sm:$0xff] }
 0x28e   :  { %1519 = vmatpush1.bf16.msra.mxu1 %v5377_v8  ;;  %1550 = vmatprep.mubr.bf16.mxu1 %v2548_v6  ;;  %v5388_v6 = vld [vmem:[#allocation68_spill] sm:$0xff]  ;;  %v5389_v8 = vld [vmem:[#allocation69_spill] sm:$0xff] }
 0x28f   :  { %1520 = vmatprep.subr.bf16.mxu1 %v5378_v9  ;;  %v5390_v9 = vld [vmem:[#allocation70_spill] sm:$0xff] }
 0x292   :  { %1521 = vmatpush1.bf16.msra.mxu1 %v5379_v10  ;;  %v5391_v10 = vld [vmem:[#allocation71_spill] sm:$0xff] }
 0x293   :  { %1522 = vmatprep.subr.bf16.mxu1 %v5380_v11  ;;  %v5392_v11 = vld [vmem:[#allocation72_spill] sm:$0xff] }
 0x296   :  { %1523 = vmatpush1.bf16.msra.mxu1 %v5381_v46  ;;  %v5393_v46 = vld [vmem:[#allocation73_spill] sm:$0xff] }
 0x297   :  { %1524 = vmatprep.subr.bf16.mxu1 %v5382_v47  ;;  %v5394_v47 = vld [vmem:[#allocation74_spill] sm:$0xff] }
 0x29a   :  { %1525 = vmatpush1.bf16.msra.mxu1 %v5383_v16 }
 0x29b   :  { %1526 = vmatprep.subr.bf16.mxu1 %v5384_v48  ;;  %v5395_v48 = vld [vmem:[#allocation13_spill] sm:$0xff] }
 0x29e   :  { %1527 = vmatpush1.bf16.msra.mxu1 %v5385_v55 }
 0x29f   :  { %1528 = vmatprep.subr.bf16.mxu1 %v5386_v5 }
 0x2a2   :  { %1529 = vmatpush1.bf16.msra.mxu1 %v5387_v7 }
 0x2a3   :  { %1530 = vmatprep.subr.bf16.mxu1 %v5388_v6 }
 0x2a6   :  { %1531 = vmatpush1.bf16.msra.mxu1 %v5389_v8 }
 0x2a7   :  { %1532 = vmatprep.subr.bf16.mxu1 %v5390_v9 }
 0x2aa   :  { %1533 = vmatpush1.bf16.msra.mxu1 %v5391_v10 }
 0x2ab   :  { %1534 = vmatprep.subr.bf16.mxu1 %v5392_v11  ;;  %v5429_v11 = vld [vmem:[#allocation75_spill] sm:$0xff] }
 0x2ae   :  { %1535 = vmatpush1.bf16.msra.mxu1 %v5393_v46  ;;  %v5430_v46 = vld [vmem:[#allocation76_spill] sm:$0xff] }
 0x2af   :  { %1536 = vmatprep.subr.bf16.mxu1 %v5394_v47  ;;  %v5431_v47 = vld [vmem:[#allocation77_spill] sm:$0xff] }
 0x2b2   :  { %1537 = vmatpush1.bf16.msra.mxu1 %v5324_v20 }
 0x2b3   :  { %1538 = vmatprep.subr.bf16.mxu1 %v5325_v1 }
 0x2b6   :  { %1539 = vmatpush1.bf16.msra.mxu1 %v5327_v17 }
 0x2b7   :  { %1540 = vmatprep.subr.bf16.mxu1 %v5328_v54 }
 0x2ba   :  { %1541 = vmatpush1.bf16.msra.mxu1 %v3589_v52  ;;  %v2547_v52 = vcombine.low %v1412_v4, %v1412_v4 }
 0x2bb   :  { %1542 = vmatprep.subr.bf16.mxu1 %v3593_v53  ;;  %v5396_v53 = vld [vmem:[#allocation14_spill] sm:$0xff] }
 0x2be   :  { %1543 = vmatpush1.bf16.msra.mxu1 %v5329_v30  ;;  %v1603_v30 = vld [vmem:[#allocation3 + $0x60] sm:$0xff] }
 0x2bf   :  { %1544 = vmatprep.subr.bf16.mxu1 %v5330_v13  ;;  %v4191_v13 = vld [vmem:[#allocation3 + $0x68] sm:$0xff]  ;;  %v2549_v4 = vcombine.low %v1603_v30, %v1603_v30  ;;  %v2550_v9 = vcombine.high %v1603_v30, %v1603_v30 }
 0x2c0   :  { %v2552_v10 = vcombine.high %v4191_v13, %v4191_v13  ;;  %v4251_v30 = vld [vmem:[#allocation6 + $0x1c0] ss:$8 sps:$4 sm:$0xff]  }
 0x2c1   :  { %5445 = vst [vmem:[#allocation51_spill] sm:$0xff] %v4251_v30 }
 0x2c2   :  { %1545 = vmatpush1.bf16.msra.mxu1 %v3605_v56  ;;  %v5397_v56 = vld [vmem:[#allocation15_spill] sm:$0xff] }
 0x2c3   :  { %1546 = vmatprep.subr.bf16.mxu1 %v3609_v57  ;;  %v5399_v57 = vld [vmem:[#allocation17_spill] sm:$0xff] }
 0x2c6   :  { %1547 = vmatpush1.bf16.msra.mxu1 %v3613_v58  ;;  %v5400_v58 = vld [vmem:[#allocation18_spill] sm:$0xff] }
 0x2c7   :  { %1548 = vmatprep.subr.bf16.mxu1 %v3617_v59  ;;  %v5401_v59 = vld [vmem:[#allocation19_spill] sm:$0xff] }
 0x2ca   :  { %1549 = vmatpush1.bf16.msra.mxu1 %v3621_v60  ;;  %v5402_v60 = vld [vmem:[#allocation20_spill] sm:$0xff] }
 0x2cb   :  { %1559 = vmatprep.subr.bf16.mxu1 %v3625_v61  ;;  %v5403_v61 = vld [vmem:[#allocation21_spill] sm:$0xff] }
 0x2cd   :  { %1551 = vmatmul.mubr.bf16.vlgmr.msra.gmra.mrb[4].mxu1 %v2547_v52  ;;  %v4233_v52 = vld [vmem:[#allocation6 + $0x190] ss:$8 sps:$4 sm:$0xff]  }
 0x2ce   :  { %1560 = vmatpush1.bf16.msra.mxu1 %v3631_v39  ;;  %v5398_v39 = vld [vmem:[#allocation16_spill] sm:$0xff]  ;;  %5439 = vst [vmem:[#allocation45_spill] sm:$0xff] %v4233_v52 }
 0x2cf   :  { %1561 = vmatprep.subr.bf16.mxu1 %v3635_v63  ;;  %v5404_v63 = vld [vmem:[#allocation22_spill] sm:$0xff] }
 0x2d2   :  { %1562 = vmatpush1.bf16.msra.mxu1 %v3641_v14  ;;  %v5406_v14 = vld [vmem:[#allocation24_spill] sm:$0xff] }
 0x2d3   :  { %1563 = vmatprep.subr.bf16.mxu1 %v3647_v36  ;;  %v5408_v36 = vld [vmem:[#allocation26_spill] sm:$0xff] }
 0x2d6   :  { %1564 = vmatpush1.bf16.msra.mxu1 %v3654_v38  ;;  %v5411_v38 = vld [vmem:[#allocation29_spill] sm:$0xff] }
 0x2d7   :  { %1565 = vmatprep.subr.bf16.mxu1 %v3657_v32  ;;  %v5420_v32 = vld [vmem:[#allocation82_spill] sm:$0xff] }
 0x2da   :  { %1566 = vmatpush1.bf16.msra.mxu1 %v3662_v26  ;;  %v5422_v26 = vld [vmem:[#allocation83_spill] sm:$0xff] }
 0x2db   :  { %1567 = vmatprep.subr.bf16.mxu1 %v3665_v33  ;;  %v5405_v33 = vld [vmem:[#allocation23_spill] sm:$0xff] }
 0x2de   :  { %1568 = vmatpush1.bf16.msra.mxu1 %v3670_v37  ;;  %v5424_v37 = vld [vmem:[#allocation84_spill] sm:$0xff] }
 0x2df   :  { %1569 = vmatprep.subr.bf16.mxu1 %v3673_v28  ;;  %v5407_v28 = vld [vmem:[#allocation25_spill] sm:$0xff] }
 0x2e0   :  { %v1207_v16 = vpop.f32.mrb[0].mxu1 }
 0x2e1   :  { %v2575_v55 = vadd.f32 %v1207_v16, %v5395_v48  ;;  %v1209_v5 = vpop.f32.mrb[1].mxu1  ;;  %v4203_v16 = vld [vmem:[#allocation6 + $0x140] ss:$8 sps:$4 sm:$0xff]  }
 0x2e2   :  { %v2576_v7 = vadd.f32 %v1209_v5, %v3899_v18  ;;  %v1211_v6 = vpop.f32.mrb[2].mxu1  ;;  %1570 = vmatpush1.bf16.msra.mxu1 %v3678_v62  ;;  %v5427_v62 = vld [vmem:[#allocation12_spill] sm:$0xff] }
 0x2e3   :  { %2937 = vtanh.f32 %v2575_v55  ;;  %v1212_v8 = vpop.f32.mrb[3].mxu1  ;;  %1571 = vmatprep.subr.bf16.mxu1 %v3681_v25  ;;  %v5409_v25 = vld [vmem:[#allocation27_spill] sm:$0xff]  ;;  %v4206_v55 = vld [vmem:[#allocation6 + $0x154] ss:$8 sps:$4 sm:$0xff]   ;;  %v4209_v5 = vld [vmem:[#allocation6 + $0x150] ss:$8 sps:$4 sm:$0xff]  }
 0x2e4   :  { %2939 = vtanh.f32 %v2576_v7  ;;  %v4212_v7 = vld [vmem:[#allocation6 + $0x164] ss:$8 sps:$4 sm:$0xff]   ;;  %v4215_v6 = vld [vmem:[#allocation6 + $0x160] ss:$8 sps:$4 sm:$0xff]   ;;  %v4218_v8 = vld [vmem:[#allocation6 + $0x174] ss:$8 sps:$4 sm:$0xff]  }
 0x2e5   :  { %5432 = vst [vmem:[#allocation78_spill] sm:$0xff] %v4212_v7  ;;  %5433 = vst [vmem:[#allocation79_spill] sm:$0xff] %v4215_v6 }
 0x2e6   :  { %1572 = vmatpush1.bf16.msra.mxu1 %v3686_v23  ;;  %v5410_v23 = vld [vmem:[#allocation28_spill] sm:$0xff]  ;;  %5434 = vst [vmem:[#allocation80_spill] sm:$0xff] %v4218_v8 }
 0x2e7   :  { %1573 = vmatprep.subr.bf16.mxu1 %v3689_v31  ;;  %v5412_v31 = vld [vmem:[#allocation30_spill] sm:$0xff] }
 0x2ea   :  { %1574 = vmatpush1.bf16.msra.mxu1 %v3694_v29  ;;  %v5413_v29 = vld [vmem:[#allocation31_spill] sm:$0xff] }
 0x2eb   :  { %1575 = vmatprep.subr.bf16.mxu1 %v3697_v24  ;;  %v5414_v24 = vld [vmem:[#allocation32_spill] sm:$0xff] }
 0x2ed   :  { %v2938_v54 = vpop.eup %2937 }
 0x2ee   :  { %v2940_v1 = vpop.eup %2939  ;;  %v1220_v20 = vpack.c.bf16 %v2938_v54, %v2938_v54  ;;  %1576 = vmatpush1.bf16.msra.mxu1 %v3702_v27  ;;  %v5415_v27 = vld [vmem:[#allocation33_spill] sm:$0xff] }
 0x2ef   :  { %v1221_v17 = vpack.c.bf16 %v2940_v1, %v2940_v1  ;;  %1577 = vmatprep.subr.bf16.mxu1 %v3705_v35  ;;  %v5416_v35 = vld [vmem:[#allocation34_spill] sm:$0xff]  ;;  %v4221_v54 = vld [vmem:[#allocation6 + $0x170] ss:$8 sps:$4 sm:$0xff]  }
 0x2f0   :  { %5435 = vst [vmem:[#allocation41_spill] sm:$0xff] %v4221_v54  ;;  %v4224_v1 = vld [vmem:[#allocation6 + $0x184] ss:$8 sps:$4 sm:$0xff]  }
 0x2f1   :  { %1398 = vmatprep.mubr.bf16.mxu0 %v1221_v17  ;;  %5436 = vst [vmem:[#allocation42_spill] sm:$0xff] %v4224_v1  ;;  %v4227_v17 = vld [vmem:[#allocation6 + $0x180] ss:$8 sps:$4 sm:$0xff]  }
 0x2f2   :  { %1399 = vmatmul.mubr.bf16.vlgmr.msra.gmra.mrb[4].mxu0 %v1220_v20  ;;  %1578 = vmatpush1.bf16.msra.mxu1 %v3710_v22  ;;  %v5418_v22 = vld [vmem:[#allocation81_spill] sm:$0xff]  ;;  %5437 = vst [vmem:[#allocation43_spill] sm:$0xff] %v4227_v17 }
 0x2f3   :  { %1630 = vmatpush1.bf16.msra.mxu0 %v3916_v21  ;;  %1579 = vmatprep.subr.bf16.mxu1 %v3713_v40  ;;  %v5417_v40 = vld [vmem:[#allocation35_spill] sm:$0xff]  ;;  %v4230_v20 = vld [vmem:[#allocation6 + $0x194] ss:$8 sps:$4 sm:$0xff]  }
 0x2f4   :  { %1631 = vmatprep.subr.bf16.mxu0 %v3920_v0  ;;  %1661 = vmatprep.mubr.bf16.mxu0 %v2550_v9  ;;  %5438 = vst [vmem:[#allocation44_spill] sm:$0xff] %v4230_v20  ;;  %v4257_v9 = vld [vmem:[#allocation6 + $0x1d0] ss:$8 sps:$4 sm:$0xff]  }
 0x2f5   :  { %5447 = vst [vmem:[#allocation53_spill] sm:$0xff] %v4257_v9 }
 0x2f6   :  { %1580 = vmatpush1.bf16.msra.mxu1 %v3718_v41  ;;  %v5419_v41 = vld [vmem:[#allocation36_spill] sm:$0xff] }
 0x2f7   :  { %1632 = vmatpush1.bf16.msra.mxu0 %v3924_v2  ;;  %1581 = vmatprep.subr.bf16.mxu1 %v3721_v42  ;;  %v5421_v42 = vld [vmem:[#allocation37_spill] sm:$0xff] }
 0x2f8   :  { %1633 = vmatprep.subr.bf16.mxu0 %v3928_v19 }
 0x2fa   :  { %1582 = vmatpush1.bf16.msra.mxu1 %v3726_v43  ;;  %v5423_v43 = vld [vmem:[#allocation38_spill] sm:$0xff] }
 0x2fb   :  { %1634 = vmatpush1.bf16.msra.mxu0 %v3932_v34  ;;  %1583 = vmatprep.subr.bf16.mxu1 %v3729_v44  ;;  %v5425_v44 = vld [vmem:[#allocation85_spill] sm:$0xff] }
 0x2fc   :  { %1635 = vmatprep.subr.bf16.mxu0 %v5396_v53 }
 0x2fe   :  { %1584 = vmatpush1.bf16.msra.mxu1 %v3734_v45  ;;  %v5426_v45 = vld [vmem:[#allocation39_spill] sm:$0xff] }
 0x2ff   :  { %1636 = vmatpush1.bf16.msra.mxu0 %v5397_v56  ;;  %1585 = vmatprep.subr.bf16.mxu1 %v5418_v22  ;;  %v4236_v22 = vld [vmem:[#allocation6 + $0x1a4] ss:$8 sps:$4 sm:$0xff]  }
 0x300   :  { %1637 = vmatprep.subr.bf16.mxu0 %v5398_v39  ;;  %5440 = vst [vmem:[#allocation46_spill] sm:$0xff] %v4236_v22 }
 0x302   :  { %1586 = vmatpush1.bf16.msra.mxu1 %v5420_v32  ;;  %v4239_v32 = vld [vmem:[#allocation6 + $0x1a0] ss:$8 sps:$4 sm:$0xff]  }
 0x303   :  { %1638 = vmatpush1.bf16.msra.mxu0 %v5399_v57  ;;  %1587 = vmatprep.subr.bf16.mxu1 %v5422_v26  ;;  %5441 = vst [vmem:[#allocation47_spill] sm:$0xff] %v4239_v32  ;;  %v4242_v26 = vld [vmem:[#allocation6 + $0x1b4] ss:$8 sps:$4 sm:$0xff]  }
 0x304   :  { %1639 = vmatprep.subr.bf16.mxu0 %v5400_v58  ;;  %5442 = vst [vmem:[#allocation48_spill] sm:$0xff] %v4242_v26 }
 0x306   :  { %1588 = vmatpush1.bf16.msra.mxu1 %v5424_v37  ;;  %v4245_v37 = vld [vmem:[#allocation6 + $0x1b0] ss:$8 sps:$4 sm:$0xff]  }
 0x307   :  { %1640 = vmatpush1.bf16.msra.mxu0 %v5401_v59  ;;  %1589 = vmatprep.subr.bf16.mxu1 %v5425_v44  ;;  %5443 = vst [vmem:[#allocation49_spill] sm:$0xff] %v4245_v37  ;;  %v4248_v44 = vld [vmem:[#allocation6 + $0x1c4] ss:$8 sps:$4 sm:$0xff]  }
 0x308   :  { %1641 = vmatprep.subr.bf16.mxu0 %v5402_v60  ;;  %5444 = vst [vmem:[#allocation50_spill] sm:$0xff] %v4248_v44 }
 0x30a   :  { %1590 = vmatpush1.bf16.msra.mxu1 %v3758_v51  ;;  %v5428_v51 = vld [vmem:[#allocation40_spill] sm:$0xff] }
 0x30b   :  { %1642 = vmatpush1.bf16.msra.mxu0 %v5403_v61  ;;  %1822 = vmatprep.subr.bf16.mxu1 %v5427_v62 }
 0x30c   :  { %1643 = vmatprep.subr.bf16.mxu0 %v5404_v63 }
 0x30f   :  { %1644 = vmatpush1.bf16.msra.mxu0 %v5405_v33 }
 0x310   :  { %1645 = vmatprep.subr.bf16.mxu0 %v5406_v14 }
 0x313   :  { %1646 = vmatpush1.bf16.msra.mxu0 %v5407_v28 }
 0x314   :  { %1647 = vmatprep.subr.bf16.mxu0 %v5408_v36 }
 0x317   :  { %1648 = vmatpush1.bf16.msra.mxu0 %v5409_v25 }
 0x318   :  { %1649 = vmatprep.subr.bf16.mxu0 %v5410_v23 }
 0x31b   :  { %1650 = vmatpush1.bf16.msra.mxu0 %v5411_v38 }
 0x31c   :  { %1651 = vmatprep.subr.bf16.mxu0 %v5412_v31 }
 0x31f   :  { %1652 = vmatpush1.bf16.msra.mxu0 %v5413_v29 }
 0x320   :  { %1653 = vmatprep.subr.bf16.mxu0 %v5414_v24 }
 0x323   :  { %1654 = vmatpush1.bf16.msra.mxu0 %v5415_v27 }
 0x324   :  { %1655 = vmatprep.subr.bf16.mxu0 %v5416_v35 }
 0x327   :  { %1656 = vmatpush1.bf16.msra.mxu0 %v5417_v40 }
 0x328   :  { %1657 = vmatprep.subr.bf16.mxu0 %v5419_v41 }
 0x32b   :  { %1658 = vmatpush1.bf16.msra.mxu0 %v5421_v42 }
 0x32c   :  { %1659 = vmatprep.subr.bf16.mxu0 %v5423_v43 }
 0x32f   :  { %1660 = vmatpush1.bf16.msra.mxu0 %v4036_v3 }
 0x330   :  { %1670 = vmatprep.subr.bf16.mxu0 %v5426_v45 }
 0x332   :  { %1662 = vmatmul.mubr.bf16.vlgmr.msra.gmra.mrb[8].mxu0 %v2549_v4  ;;  %v4254_v4 = vld [vmem:[#allocation6 + $0x1d4] ss:$8 sps:$4 sm:$0xff]  }
 0x333   :  { %1671 = vmatpush1.bf16.msra.mxu0 %v4045_v49  ;;  %1702 = vmatprep.mubr.bf16.mxu0 %v2552_v10  ;;  %5446 = vst [vmem:[#allocation52_spill] sm:$0xff] %v4254_v4  ;;  %v4260_v10 = vld [vmem:[#allocation6 + $0x1e4] ss:$8 sps:$4 sm:$0xff]  }
 0x334   :  { %1672 = vmatprep.subr.bf16.mxu0 %v4048_v50  ;;  %5448 = vst [vmem:[#allocation54_spill] sm:$0xff] %v4260_v10 }
 0x337   :  { %1673 = vmatpush1.bf16.msra.mxu0 %v4051_v12 }
 0x338   :  { %1674 = vmatprep.subr.bf16.mxu0 %v4054_v15 }
 0x33b   :  { %1675 = vmatpush1.bf16.msra.mxu0 %v5428_v51 }
 0x33c   :  { %1676 = vmatprep.subr.bf16.mxu0 %v5429_v11 }
 0x33f   :  { %1677 = vmatpush1.bf16.msra.mxu0 %v5430_v46 }
 0x340   :  { %1678 = vmatprep.subr.bf16.mxu0 %v5431_v47 }
 0x343   :  { %1679 = vmatpush1.bf16.msra.mxu0 %v4203_v16 }
 0x344   :  { %1680 = vmatprep.subr.bf16.mxu0 %v4206_v55 }
 0x347   :  { %1681 = vmatpush1.bf16.msra.mxu0 %v4209_v5 }
 0x348   :  { %1682 = vmatprep.subr.bf16.mxu0 %v4212_v7 }
 0x34b   :  { %1683 = vmatpush1.bf16.msra.mxu0 %v4215_v6 }
 0x34c   :  { %1684 = vmatprep.subr.bf16.mxu0 %v4218_v8 }
 0x34f   :  { %1685 = vmatpush1.bf16.msra.mxu0 %v4221_v54 }
 0x350   :  { %1686 = vmatprep.subr.bf16.mxu0 %v4224_v1 }
 0x353   :  { %1687 = vmatpush1.bf16.msra.mxu0 %v4227_v17 }
 0x354   :  { %1688 = vmatprep.subr.bf16.mxu0 %v4230_v20 }
 0x357   :  { %1689 = vmatpush1.bf16.msra.mxu0 %v4233_v52  ;;  %v4349_v52 = vld [vmem:[#allocation6 + $0x2b0] ss:$8 sps:$4 sm:$0xff]  }
 0x358   :  { %1690 = vmatprep.subr.bf16.mxu0 %v4236_v22  ;;  %5475 = vst [vmem:[#allocation20_spill] sm:$0xff] %v4349_v52 }
 0x35b   :  { %1691 = vmatpush1.bf16.msra.mxu0 %v4239_v32  ;;  %v4293_v32 = vld [vmem:[#allocation6 + $0x220] ss:$8 sps:$4 sm:$0xff]  }
 0x35c   :  { %1692 = vmatprep.subr.bf16.mxu0 %v4242_v26  ;;  %v4273_v26 = vld [vmem:[#allocation6 + $0x1f0] ss:$8 sps:$4 sm:$0xff]   ;;  %5457 = vst [vmem:[#allocation63_spill] sm:$0xff] %v4293_v32 }
 0x35d   :  { %5451 = vst [vmem:[#allocation57_spill] sm:$0xff] %v4273_v26 }
 0x35f   :  { %1693 = vmatpush1.bf16.msra.mxu0 %v4245_v37  ;;  %v4263_v37 = vld [vmem:[#allocation6 + $0x1e0] ss:$8 sps:$4 sm:$0xff]  }
 0x360   :  { %1694 = vmatprep.subr.bf16.mxu0 %v4248_v44  ;;  %5449 = vst [vmem:[#allocation55_spill] sm:$0xff] %v4263_v37  ;;  %v4266_v44 = vld [vmem:[#allocation6 + $0x1f4] ss:$8 sps:$4 sm:$0xff]  }
 0x361   :  { %5450 = vst [vmem:[#allocation56_spill] sm:$0xff] %v4266_v44 }
 0x363   :  { %1695 = vmatpush1.bf16.msra.mxu0 %v4251_v30  ;;  %v4269_v30 = vld [vmem:[#allocation3 + $0x70] sm:$0xff] }
 0x364   :  { %1696 = vmatprep.subr.bf16.mxu0 %v4254_v4  ;;  %v2551_v4 = vcombine.low %v4191_v13, %v4191_v13  ;;  %v4287_v13 = vld [vmem:[#allocation6 + $0x210] ss:$8 sps:$4 sm:$0xff]  }
 0x365   :  { %5455 = vst [vmem:[#allocation61_spill] sm:$0xff] %v4287_v13 }
 0x367   :  { %1697 = vmatpush1.bf16.msra.mxu0 %v4257_v9  ;;  %v4278_v9 = vld [vmem:[#allocation6 + $0x204] ss:$8 sps:$4 sm:$0xff]  }
 0x368   :  { %1698 = vmatprep.subr.bf16.mxu0 %v4260_v10  ;;  %v2554_v10 = vcombine.high %v4269_v30, %v4269_v30  ;;  %5452 = vst [vmem:[#allocation58_spill] sm:$0xff] %v4278_v9 }
 0x36b   :  { %1699 = vmatpush1.bf16.msra.mxu0 %v4263_v37  ;;  %v4281_v37 = vld [vmem:[#allocation6 + $0x200] ss:$8 sps:$4 sm:$0xff]  }
 0x36c   :  { %1700 = vmatprep.subr.bf16.mxu0 %v4266_v44  ;;  %5453 = vst [vmem:[#allocation59_spill] sm:$0xff] %v4281_v37  ;;  %v4284_v44 = vld [vmem:[#allocation6 + $0x214] ss:$8 sps:$4 sm:$0xff]  }
 0x36d   :  { %5454 = vst [vmem:[#allocation60_spill] sm:$0xff] %v4284_v44 }
 0x36f   :  { %1701 = vmatpush1.bf16.msra.mxu0 %v4273_v26  ;;  %v4290_v26 = vld [vmem:[#allocation6 + $0x224] ss:$8 sps:$4 sm:$0xff]  }
 0x370   :  { %1711 = vmatprep.subr.bf16.mxu0 %v4278_v9  ;;  %5456 = vst [vmem:[#allocation62_spill] sm:$0xff] %v4290_v26 }
 0x372   :  { %1703 = vmatmul.mubr.bf16.vlgmr.msra.gmra.mrb[8].mxu0 %v2551_v4  ;;  %v4296_v4 = vld [vmem:[#allocation6 + $0x234] ss:$8 sps:$4 sm:$0xff]  }
 0x373   :  { %1712 = vmatpush1.bf16.msra.mxu0 %v4281_v37  ;;  %1743 = vmatprep.mubr.bf16.mxu0 %v2554_v10  ;;  %5458 = vst [vmem:[#allocation64_spill] sm:$0xff] %v4296_v4  ;;  %v4299_v10 = vld [vmem:[#allocation6 + $0x230] ss:$8 sps:$4 sm:$0xff]   ;;  %v4344_v37 = vld [vmem:[#allocation6 + $0x2b4] ss:$8 sps:$4 sm:$0xff]  }
 0x374   :  { %1713 = vmatprep.subr.bf16.mxu0 %v4284_v44  ;;  %5459 = vst [vmem:[#allocation65_spill] sm:$0xff] %v4299_v10  ;;  %v4302_v44 = vld [vmem:[#allocation6 + $0x244] ss:$8 sps:$4 sm:$0xff]   ;;  %5474 = vst [vmem:[#allocation19_spill] sm:$0xff] %v4344_v37 }
 0x375   :  { %5460 = vst [vmem:[#allocation66_spill] sm:$0xff] %v4302_v44 }
 0x377   :  { %1714 = vmatpush1.bf16.msra.mxu0 %v4287_v13  ;;  %v4305_v13 = vld [vmem:[#allocation6 + $0x240] ss:$8 sps:$4 sm:$0xff]  }
 0x378   :  { %1715 = vmatprep.subr.bf16.mxu0 %v4290_v26  ;;  %5461 = vst [vmem:[#allocation67_spill] sm:$0xff] %v4305_v13  ;;  %v4308_v26 = vld [vmem:[#allocation6 + $0x254] ss:$8 sps:$4 sm:$0xff]  }
 0x379   :  { %5462 = vst [vmem:[#allocation68_spill] sm:$0xff] %v4308_v26 }
 0x37b   :  { %1716 = vmatpush1.bf16.msra.mxu0 %v4293_v32  ;;  %v4311_v32 = vld [vmem:[#allocation6 + $0x250] ss:$8 sps:$4 sm:$0xff]  }
 0x37c   :  { %1717 = vmatprep.subr.bf16.mxu0 %v4296_v4  ;;  %5463 = vst [vmem:[#allocation69_spill] sm:$0xff] %v4311_v32  ;;  %v4314_v4 = vld [vmem:[#allocation6 + $0x264] ss:$8 sps:$4 sm:$0xff]  }
 0x37d   :  { %5464 = vst [vmem:[#allocation70_spill] sm:$0xff] %v4314_v4 }
 0x37f   :  { %1718 = vmatpush1.bf16.msra.mxu0 %v4299_v10  ;;  %v4317_v10 = vld [vmem:[#allocation6 + $0x260] ss:$8 sps:$4 sm:$0xff]  }
 0x380   :  { %1719 = vmatprep.subr.bf16.mxu0 %v4302_v44  ;;  %5465 = vst [vmem:[#allocation71_spill] sm:$0xff] %v4317_v10  ;;  %v4320_v44 = vld [vmem:[#allocation6 + $0x274] ss:$8 sps:$4 sm:$0xff]  }
 0x381   :  { %5466 = vst [vmem:[#allocation72_spill] sm:$0xff] %v4320_v44 }
 0x383   :  { %1720 = vmatpush1.bf16.msra.mxu0 %v4305_v13  ;;  %v4323_v13 = vld [vmem:[#allocation6 + $0x270] ss:$8 sps:$4 sm:$0xff]  }
 0x384   :  { %1721 = vmatprep.subr.bf16.mxu0 %v4308_v26  ;;  %5467 = vst [vmem:[#allocation73_spill] sm:$0xff] %v4323_v13  ;;  %v4326_v26 = vld [vmem:[#allocation6 + $0x284] ss:$8 sps:$4 sm:$0xff]  }
 0x385   :  { %5468 = vst [vmem:[#allocation74_spill] sm:$0xff] %v4326_v26 }
 0x387   :  { %1722 = vmatpush1.bf16.msra.mxu0 %v4311_v32  ;;  %v4329_v32 = vld [vmem:[#allocation6 + $0x280] ss:$8 sps:$4 sm:$0xff]  }
 0x388   :  { %1723 = vmatprep.subr.bf16.mxu0 %v4314_v4  ;;  %5469 = vst [vmem:[#allocation14_spill] sm:$0xff] %v4329_v32  ;;  %v4332_v4 = vld [vmem:[#allocation6 + $0x294] ss:$8 sps:$4 sm:$0xff]  }
 0x389   :  { %5470 = vst [vmem:[#allocation15_spill] sm:$0xff] %v4332_v4 }
 0x38b   :  { %1724 = vmatpush1.bf16.msra.mxu0 %v4317_v10  ;;  %v4335_v10 = vld [vmem:[#allocation6 + $0x290] ss:$8 sps:$4 sm:$0xff]  }
 0x38c   :  { %1725 = vmatprep.subr.bf16.mxu0 %v4320_v44  ;;  %5471 = vst [vmem:[#allocation16_spill] sm:$0xff] %v4335_v10  ;;  %v4338_v44 = vld [vmem:[#allocation6 + $0x2a4] ss:$8 sps:$4 sm:$0xff]  }
 0x38d   :  { %5472 = vst [vmem:[#allocation17_spill] sm:$0xff] %v4338_v44 }
 0x38f   :  { %1726 = vmatpush1.bf16.msra.mxu0 %v4323_v13  ;;  %v4341_v13 = vld [vmem:[#allocation6 + $0x2a0] ss:$8 sps:$4 sm:$0xff]  }
 0x390   :  { %1727 = vmatprep.subr.bf16.mxu0 %v4326_v26  ;;  %5473 = vst [vmem:[#allocation18_spill] sm:$0xff] %v4341_v13 }
 0x393   :  { %1728 = vmatpush1.bf16.msra.mxu0 %v4329_v32 }
 0x394   :  { %1729 = vmatprep.subr.bf16.mxu0 %v4332_v4 }
 0x397   :  { %1730 = vmatpush1.bf16.msra.mxu0 %v4335_v10 }
 0x398   :  { %1731 = vmatprep.subr.bf16.mxu0 %v4338_v44  ;;  %v4352_v44 = vld [vmem:[#allocation6 + $0x2c4] ss:$8 sps:$4 sm:$0xff]  }
 0x399   :  { %5476 = vst [vmem:[#allocation21_spill] sm:$0xff] %v4352_v44 }
 0x39b   :  { %1732 = vmatpush1.bf16.msra.mxu0 %v4341_v13  ;;  %v4355_v13 = vld [vmem:[#allocation6 + $0x2c0] ss:$8 sps:$4 sm:$0xff]  }
 0x39c   :  { %1733 = vmatprep.subr.bf16.mxu0 %v4344_v37  ;;  %5477 = vst [vmem:[#allocation22_spill] sm:$0xff] %v4355_v13 }
 0x39f   :  { %1734 = vmatpush1.bf16.msra.mxu0 %v4349_v52  ;;  %v4370_v52 = vld [vmem:[#allocation6 + $0x2f4] ss:$8 sps:$4 sm:$0xff]  }
 0x3a0   :  { %1735 = vmatprep.subr.bf16.mxu0 %v4352_v44  ;;  %v4367_v44 = vld [vmem:[#allocation6 + $0x2e0] ss:$8 sps:$4 sm:$0xff]  }
 0x3a3   :  { %1736 = vmatpush1.bf16.msra.mxu0 %v4355_v13 }
 0x3c5   :  { %v1400_v26 = vpop.f32.mrb[4].mxu0 }
 0x3c6   :  { %v2577_v32 = vadd.f32 %v1400_v26, %v5395_v48  ;;  %v1402_v4 = vpop.f32.mrb[5].mxu0  ;;  %v4358_v26 = vld [vmem:[#allocation6 + $0x2d4] ss:$8 sps:$4 sm:$0xff]  }
 0x3c7   :  { %v2578_v9 = vadd.f32 %v1402_v4, %v3899_v18  ;;  %v1404_v22 = vpop.f32.mrb[6].mxu0  ;;  %5478 = vst [vmem:[#allocation23_spill] sm:$0xff] %v4358_v26  ;;  %1737 = vmatprep.subr.bf16.mxu0 %v4358_v26  ;;  %v4375_v26 = vld [vmem:[#allocation6 + $0x2f0] ss:$8 sps:$4 sm:$0xff]  }
 0x3c8   :  { %2941 = vtanh.f32 %v2577_v32  ;;  %v1405_v10 = vpop.f32.mrb[7].mxu0  ;;  %v4361_v22 = vld [vmem:[#allocation6 + $0x2d0] ss:$8 sps:$4 sm:$0xff]   ;;  %v4364_v32 = vld [vmem:[#allocation6 + $0x2e4] ss:$8 sps:$4 sm:$0xff]  }
 0x3c9   :  { %2943 = vtanh.f32 %v2578_v9  ;;  %5479 = vst [vmem:[#allocation24_spill] sm:$0xff] %v4361_v22  ;;  %1738 = vmatpush1.bf16.msra.mxu0 %v4361_v22  ;;  %v2553_v22 = vcombine.low %v4269_v30, %v4269_v30  ;;  %v4387_v30 = vld [vmem:[#allocation6 + $0x314] ss:$8 sps:$4 sm:$0xff]  }
 0x3ca   :  { %1739 = vmatprep.subr.bf16.mxu0 %v4364_v32  ;;  %5480 = vst [vmem:[#allocation25_spill] sm:$0xff] %v4387_v30 }
 0x3cd   :  { %1740 = vmatpush1.bf16.msra.mxu0 %v4367_v44 }
 0x3ce   :  { %1741 = vmatprep.subr.bf16.mxu0 %v4370_v52 }
 0x3d1   :  { %1742 = vmatpush1.bf16.msra.mxu0 %v4375_v26 }
 0x3d2   :  { %v2942_v9 = vpop.eup %2941 }
 0x3d3   :  { %v2944_v4 = vpop.eup %2943  ;;  %v1413_v13 = vpack.c.bf16 %v2942_v9, %v2942_v9  ;;  %v4383_v9 = vld [vmem:[#allocation6 + $0x300] ss:$8 sps:$4 sm:$0xff]  }
 0x3d4   :  { %v1414_v10 = vpack.c.bf16 %v2944_v4, %v2944_v4  ;;  %v4379_v4 = vld [vmem:[#allocation6 + $0x304] ss:$8 sps:$4 sm:$0xff]   ;;  %1744 = vmatmul.mubr.bf16.vlgmr.msra.gmra.mrb[8].mxu0 %v2553_v22  ;;  %v4399_v22 = vld [vmem:[#allocation6 + $0x320] ss:$8 sps:$4 sm:$0xff]  }
 0x3d5   :  { %1752 = vmatprep.subr.bf16.mxu0 %v4379_v4  ;;  %5483 = vst [vmem:[#allocation28_spill] sm:$0xff] %v4399_v22 }
 0x3d6   :  { %1591 = vmatprep.mubr.bf16.mxu1 %v1414_v10  ;;  %1753 = vmatpush1.bf16.msra.mxu0 %v4383_v9  ;;  %v4395_v10 = vld [vmem:[#allocation6 + $0x324] ss:$8 sps:$4 sm:$0xff]  }
 0x3d7   :  { %1592 = vmatmul.mubr.bf16.vlgmr.msra.gmra.mrb[4].mxu1 %v1413_v13  ;;  %1754 = vmatprep.subr.bf16.mxu0 %v4387_v30  ;;  %v4391_v13 = vld [vmem:[#allocation6 + $0x310] ss:$8 sps:$4 sm:$0xff]   ;;  %5482 = vst [vmem:[#allocation27_spill] sm:$0xff] %v4395_v10  ;;  %v4403_v30 = vld [vmem:[#allocation6 + $0x334] ss:$8 sps:$4 sm:$0xff]  }
 0x3d8   :  { %1823 = vmatpush1.bf16.msra.mxu1 %v3916_v21  ;;  %5481 = vst [vmem:[#allocation26_spill] sm:$0xff] %v4391_v13  ;;  %5484 = vst [vmem:[#allocation29_spill] sm:$0xff] %v4403_v30 }
 0x3d9   :  { %1824 = vmatprep.subr.bf16.mxu1 %v3920_v0 }
 0x3da   :  { %1755 = vmatpush1.bf16.msra.mxu0 %v4391_v13  ;;  %v4407_v13 = vld [vmem:[#allocation6 + $0x330] ss:$8 sps:$4 sm:$0xff]  }
 0x3db   :  { %1756 = vmatprep.subr.bf16.mxu0 %v4395_v10  ;;  %5485 = vst [vmem:[#allocation30_spill] sm:$0xff] %v4407_v13  ;;  %v4411_v10 = vld [vmem:[#allocation6 + $0x344] ss:$8 sps:$4 sm:$0xff]  }
 0x3dc   :  { %1825 = vmatpush1.bf16.msra.mxu1 %v3924_v2  ;;  %5486 = vst [vmem:[#allocation31_spill] sm:$0xff] %v4411_v10 }
 0x3dd   :  { %1826 = vmatprep.subr.bf16.mxu1 %v3928_v19 }
 0x3de   :  { %1757 = vmatpush1.bf16.msra.mxu0 %v4399_v22  ;;  %v4415_v22 = vld [vmem:[#allocation6 + $0x340] ss:$8 sps:$4 sm:$0xff]  }
 0x3df   :  { %1758 = vmatprep.subr.bf16.mxu0 %v4403_v30  ;;  %5487 = vst [vmem:[#allocation32_spill] sm:$0xff] %v4415_v22  ;;  %v4419_v30 = vld [vmem:[#allocation6 + $0x354] ss:$8 sps:$4 sm:$0xff]  }
 0x3e0   :  { %1827 = vmatpush1.bf16.msra.mxu1 %v3932_v34  ;;  %5488 = vst [vmem:[#allocation33_spill] sm:$0xff] %v4419_v30 }
 0x3e1   :  { %1828 = vmatprep.subr.bf16.mxu1 %v5396_v53 }
 0x3e2   :  { %1759 = vmatpush1.bf16.msra.mxu0 %v4407_v13  ;;  %v4423_v13 = vld [vmem:[#allocation6 + $0x350] ss:$8 sps:$4 sm:$0xff]  }
 0x3e3   :  { %1760 = vmatprep.subr.bf16.mxu0 %v4411_v10  ;;  %5489 = vst [vmem:[#allocation34_spill] sm:$0xff] %v4423_v13  ;;  %v4427_v10 = vld [vmem:[#allocation6 + $0x364] ss:$8 sps:$4 sm:$0xff]  }
 0x3e4   :  { %1829 = vmatpush1.bf16.msra.mxu1 %v5397_v56  ;;  %5490 = vst [vmem:[#allocation81_spill] sm:$0xff] %v4427_v10 }
 0x3e5   :  { %1830 = vmatprep.subr.bf16.mxu1 %v5398_v39 }
 0x3e6   :  { %1761 = vmatpush1.bf16.msra.mxu0 %v4415_v22  ;;  %v4431_v22 = vld [vmem:[#allocation6 + $0x360] ss:$8 sps:$4 sm:$0xff]  }
 0x3e7   :  { %1762 = vmatprep.subr.bf16.mxu0 %v4419_v30  ;;  %5491 = vst [vmem:[#allocation82_spill] sm:$0xff] %v4431_v22  ;;  %v4435_v30 = vld [vmem:[#allocation6 + $0x374] ss:$8 sps:$4 sm:$0xff]  }
 0x3e8   :  { %1831 = vmatpush1.bf16.msra.mxu1 %v5399_v57  ;;  %5492 = vst [vmem:[#allocation83_spill] sm:$0xff] %v4435_v30 }
 0x3e9   :  { %1832 = vmatprep.subr.bf16.mxu1 %v5400_v58 }
 0x3ea   :  { %1763 = vmatpush1.bf16.msra.mxu0 %v4423_v13  ;;  %v4439_v13 = vld [vmem:[#allocation6 + $0x370] ss:$8 sps:$4 sm:$0xff]  }
 0x3eb   :  { %1764 = vmatprep.subr.bf16.mxu0 %v4427_v10  ;;  %5493 = vst [vmem:[#allocation84_spill] sm:$0xff] %v4439_v13  ;;  %v4443_v10 = vld [vmem:[#allocation6 + $0x384] ss:$8 sps:$4 sm:$0xff]  }
 0x3ec   :  { %1833 = vmatpush1.bf16.msra.mxu1 %v5401_v59  ;;  %5494 = vst [vmem:[#allocation85_spill] sm:$0xff] %v4443_v10 }
 0x3ed   :  { %1834 = vmatprep.subr.bf16.mxu1 %v5402_v60 }
 0x3ee   :  { %1765 = vmatpush1.bf16.msra.mxu0 %v4431_v22  ;;  %v4447_v22 = vld [vmem:[#allocation6 + $0x380] ss:$8 sps:$4 sm:$0xff]  }
 0x3ef   :  { %1766 = vmatprep.subr.bf16.mxu0 %v4435_v30  ;;  %5495 = vst [vmem:[#allocation39_spill] sm:$0xff] %v4447_v22  ;;  %v4451_v30 = vld [vmem:[#allocation6 + $0x394] ss:$8 sps:$4 sm:$0xff]  }
 0x3f0   :  { %1835 = vmatpush1.bf16.msra.mxu1 %v5403_v61  ;;  %5496 = vst [vmem:[#allocation12_spill] sm:$0xff] %v4451_v30 }
 0x3f1   :  { %1836 = vmatprep.subr.bf16.mxu1 %v5404_v63 }
 0x3f2   :  { %1767 = vmatpush1.bf16.msra.mxu0 %v4439_v13  ;;  %v4455_v13 = vld [vmem:[#allocation6 + $0x390] ss:$8 sps:$4 sm:$0xff]  }
 0x3f3   :  { %1768 = vmatprep.subr.bf16.mxu0 %v4443_v10  ;;  %5497 = vst [vmem:[#allocation40_spill] sm:$0xff] %v4455_v13  ;;  %v4459_v10 = vld [vmem:[#allocation6 + $0x3a4] ss:$8 sps:$4 sm:$0xff]  }
 0x3f4   :  { %1837 = vmatpush1.bf16.msra.mxu1 %v5405_v33  ;;  %5498 = vst [vmem:[#allocation75_spill] sm:$0xff] %v4459_v10 }
 0x3f5   :  { %1838 = vmatprep.subr.bf16.mxu1 %v5406_v14 }
 0x3f6   :  { %1769 = vmatpush1.bf16.msra.mxu0 %v4447_v22  ;;  %v4463_v22 = vld [vmem:[#allocation6 + $0x3a0] ss:$8 sps:$4 sm:$0xff]  }
 0x3f7   :  { %1770 = vmatprep.subr.bf16.mxu0 %v4451_v30  ;;  %5499 = vst [vmem:[#allocation76_spill] sm:$0xff] %v4463_v22  ;;  %v4467_v30 = vld [vmem:[#allocation6 + $0x3b4] ss:$8 sps:$4 sm:$0xff]  }
 0x3f8   :  { %1839 = vmatpush1.bf16.msra.mxu1 %v5407_v28  ;;  %5500 = vst [vmem:[#allocation77_spill] sm:$0xff] %v4467_v30 }
 0x3f9   :  { %1840 = vmatprep.subr.bf16.mxu1 %v5408_v36 }
 0x3fa   :  { %1771 = vmatpush1.bf16.msra.mxu0 %v4455_v13  ;;  %v4471_v13 = vld [vmem:[#allocation6 + $0x3b0] ss:$8 sps:$4 sm:$0xff]  }
 0x3fb   :  { %1772 = vmatprep.subr.bf16.mxu0 %v4459_v10  ;;  %5501 = vst [vmem:[#allocation86_spill] sm:$0xff] %v4471_v13  ;;  %v4475_v10 = vld [vmem:[#allocation6 + $0x3c4] ss:$8 sps:$4 sm:$0xff]  }
 0x3fc   :  { %1841 = vmatpush1.bf16.msra.mxu1 %v5409_v25  ;;  %5502 = vst [vmem:[#allocation87_spill] sm:$0xff] %v4475_v10 }
 0x3fd   :  { %1842 = vmatprep.subr.bf16.mxu1 %v5410_v23 }
 0x3fe   :  { %1773 = vmatpush1.bf16.msra.mxu0 %v4463_v22  ;;  %v4479_v22 = vld [vmem:[#allocation6 + $0x3c0] ss:$8 sps:$4 sm:$0xff]  }
 0x3ff   :  { %1774 = vmatprep.subr.bf16.mxu0 %v4467_v30  ;;  %5503 = vst [vmem:[#allocation88_spill] sm:$0xff] %v4479_v22  ;;  %v4483_v30 = vld [vmem:[#allocation6 + $0x3d4] ss:$8 sps:$4 sm:$0xff]  }
 0x400   :  { %1843 = vmatpush1.bf16.msra.mxu1 %v5411_v38  ;;  %5504 = vst [vmem:[#allocation89_spill] sm:$0xff] %v4483_v30 }
 0x401   :  { %1844 = vmatprep.subr.bf16.mxu1 %v5412_v31 }
 0x402   :  { %1775 = vmatpush1.bf16.msra.mxu0 %v4471_v13  ;;  %v4487_v13 = vld [vmem:[#allocation6 + $0x3d0] ss:$8 sps:$4 sm:$0xff]  }
 0x403   :  { %1776 = vmatprep.subr.bf16.mxu0 %v4475_v10  ;;  %5505 = vst [vmem:[#allocation90_spill] sm:$0xff] %v4487_v13  ;;  %v4491_v10 = vld [vmem:[#allocation6 + $0x3e4] ss:$8 sps:$4 sm:$0xff]  }
 0x404   :  { %1845 = vmatpush1.bf16.msra.mxu1 %v5413_v29  ;;  %5506 = vst [vmem:[#allocation91_spill] sm:$0xff] %v4491_v10 }
 0x405   :  { %1846 = vmatprep.subr.bf16.mxu1 %v5414_v24 }
 0x406   :  { %1777 = vmatpush1.bf16.msra.mxu0 %v4479_v22  ;;  %v4495_v22 = vld [vmem:[#allocation6 + $0x3e0] ss:$8 sps:$4 sm:$0xff]  }
 0x407   :  { %1778 = vmatprep.subr.bf16.mxu0 %v4483_v30  ;;  %5507 = vst [vmem:[#allocation92_spill] sm:$0xff] %v4495_v22  ;;  %v4499_v30 = vld [vmem:[#allocation6 + $0x3f4] ss:$8 sps:$4 sm:$0xff]  }
 0x408   :  { %1847 = vmatpush1.bf16.msra.mxu1 %v5415_v27  ;;  %5508 = vst [vmem:[#allocation93_spill] sm:$0xff] %v4499_v30 }
 0x409   :  { %1848 = vmatprep.subr.bf16.mxu1 %v5416_v35 }
 0x40a   :  { %1779 = vmatpush1.bf16.msra.mxu0 %v4487_v13  ;;  %v4503_v13 = vld [vmem:[#allocation6 + $0x3f0] ss:$8 sps:$4 sm:$0xff]  }
 0x40b   :  { %1780 = vmatprep.subr.bf16.mxu0 %v4491_v10  ;;  %5509 = vst [vmem:[#allocation94_spill] sm:$0xff] %v4503_v13  ;;  %v1796_v10 = vld [vmem:[#allocation3 + $0x78] sm:$0xff] }
 0x40c   :  { %1849 = vmatpush1.bf16.msra.mxu1 %v5417_v40 }
 0x40d   :  { %1850 = vmatprep.subr.bf16.mxu1 %v5419_v41  ;;  %v2556_v41 = vcombine.high %v1796_v10, %v1796_v10 }
 0x40e   :  { %1781 = vmatpush1.bf16.msra.mxu0 %v4495_v22 }
 0x40f   :  { %1782 = vmatprep.subr.bf16.mxu0 %v4499_v30  ;;  %1854 = vmatprep.mubr.bf16.mxu1 %v2556_v41  ;;  %v5511_v41 = vld [vmem:[#allocation46_spill] sm:$0xff] }
 0x410   :  { %1851 = vmatpush1.bf16.msra.mxu1 %v5421_v42  ;;  %v2555_v42 = vcombine.low %v1796_v10, %v1796_v10  ;;  %v5514_v10 = vld [vmem:[#allocation49_spill] sm:$0xff] }
 0x411   :  { %1852 = vmatprep.subr.bf16.mxu1 %v5423_v43  ;;  %v1797_v43 = vld [vmem:[#allocation3 + $0x80] sm:$0xff] }
 0x412   :  { %1783 = vmatpush1.bf16.msra.mxu0 %v4503_v13  ;;  %v2558_v40 = vcombine.high %v1797_v43, %v1797_v43 }
 0x413   :  { %2015 = vmatprep.subr.bf16.mxu0 %v5427_v62  ;;  %v5513_v62 = vld [vmem:[#allocation48_spill] sm:$0xff] }
 0x414   :  { %1853 = vmatpush1.bf16.msra.mxu1 %v4036_v3 }
 0x415   :  { %1863 = vmatprep.subr.bf16.mxu1 %v5426_v45 }
 0x417   :  { %1855 = vmatmul.mubr.bf16.vlgmr.msra.gmra.mrb[8].mxu1 %v2555_v42  ;;  %v5512_v42 = vld [vmem:[#allocation47_spill] sm:$0xff] }
 0x418   :  { %1864 = vmatpush1.bf16.msra.mxu1 %v4045_v49  ;;  %1895 = vmatprep.mubr.bf16.mxu1 %v2558_v40  ;;  %v5510_v40 = vld [vmem:[#allocation45_spill] sm:$0xff] }
 0x419   :  { %1865 = vmatprep.subr.bf16.mxu1 %v4048_v50 }
 0x41c   :  { %1866 = vmatpush1.bf16.msra.mxu1 %v4051_v12 }
 0x41d   :  { %1867 = vmatprep.subr.bf16.mxu1 %v4054_v15 }
 0x420   :  { %1868 = vmatpush1.bf16.msra.mxu1 %v5428_v51 }
 0x421   :  { %1869 = vmatprep.subr.bf16.mxu1 %v5429_v11 }
 0x424   :  { %1870 = vmatpush1.bf16.msra.mxu1 %v5430_v46 }
 0x425   :  { %1871 = vmatprep.subr.bf16.mxu1 %v5431_v47 }
 0x428   :  { %1872 = vmatpush1.bf16.msra.mxu1 %v4203_v16 }
 0x429   :  { %1873 = vmatprep.subr.bf16.mxu1 %v4206_v55 }
 0x42c   :  { %1874 = vmatpush1.bf16.msra.mxu1 %v4209_v5 }
 0x42d   :  { %1875 = vmatprep.subr.bf16.mxu1 %v4212_v7  ;;  %v5522_v7 = vld [vmem:[#allocation57_spill] sm:$0xff] }
 0x430   :  { %1876 = vmatpush1.bf16.msra.mxu1 %v4215_v6  ;;  %v5515_v6 = vld [vmem:[#allocation50_spill] sm:$0xff] }
 0x431   :  { %1877 = vmatprep.subr.bf16.mxu1 %v4218_v8  ;;  %v5516_v8 = vld [vmem:[#allocation51_spill] sm:$0xff] }
 0x434   :  { %1878 = vmatpush1.bf16.msra.mxu1 %v4221_v54  ;;  %v5517_v54 = vld [vmem:[#allocation52_spill] sm:$0xff] }
 0x435   :  { %1879 = vmatprep.subr.bf16.mxu1 %v4224_v1  ;;  %v5518_v1 = vld [vmem:[#allocation53_spill] sm:$0xff] }
 0x438   :  { %1880 = vmatpush1.bf16.msra.mxu1 %v4227_v17  ;;  %v5519_v17 = vld [vmem:[#allocation54_spill] sm:$0xff] }
 0x439   :  { %1881 = vmatprep.subr.bf16.mxu1 %v4230_v20  ;;  %v5520_v20 = vld [vmem:[#allocation55_spill] sm:$0xff] }
 0x43c   :  { %1882 = vmatpush1.bf16.msra.mxu1 %v5510_v40  ;;  %v5521_v40 = vld [vmem:[#allocation56_spill] sm:$0xff] }
 0x43d   :  { %1883 = vmatprep.subr.bf16.mxu1 %v5511_v41  ;;  %v1798_v41 = vld [vmem:[#allocation3 + $0x88] sm:$0xff] }
 0x440   :  { %1884 = vmatpush1.bf16.msra.mxu1 %v5512_v42  ;;  %v2557_v42 = vcombine.low %v1797_v43, %v1797_v43  ;;  %v5530_v43 = vld [vmem:[#allocation65_spill] sm:$0xff] }
 0x441   :  { %1885 = vmatprep.subr.bf16.mxu1 %v5513_v62  ;;  %v2560_v62 = vcombine.high %v1798_v41, %v1798_v41 }
 0x444   :  { %1886 = vmatpush1.bf16.msra.mxu1 %v5514_v10  ;;  %v5523_v10 = vld [vmem:[#allocation58_spill] sm:$0xff] }
 0x445   :  { %1887 = vmatprep.subr.bf16.mxu1 %v5515_v6  ;;  %v5524_v6 = vld [vmem:[#allocation59_spill] sm:$0xff] }
 0x448   :  { %1888 = vmatpush1.bf16.msra.mxu1 %v5516_v8  ;;  %v5532_v8 = vld [vmem:[#allocation67_spill] sm:$0xff] }
 0x449   :  { %1889 = vmatprep.subr.bf16.mxu1 %v5517_v54  ;;  %v5525_v54 = vld [vmem:[#allocation60_spill] sm:$0xff] }
 0x44c   :  { %1890 = vmatpush1.bf16.msra.mxu1 %v5518_v1  ;;  %v5526_v1 = vld [vmem:[#allocation61_spill] sm:$0xff] }
 0x44d   :  { %1891 = vmatprep.subr.bf16.mxu1 %v5519_v17  ;;  %v5527_v17 = vld [vmem:[#allocation62_spill] sm:$0xff] }
 0x450   :  { %1892 = vmatpush1.bf16.msra.mxu1 %v5520_v20  ;;  %v5528_v20 = vld [vmem:[#allocation63_spill] sm:$0xff] }
 0x451   :  { %1893 = vmatprep.subr.bf16.mxu1 %v5521_v40  ;;  %v5529_v40 = vld [vmem:[#allocation64_spill] sm:$0xff] }
 0x454   :  { %1894 = vmatpush1.bf16.msra.mxu1 %v5522_v7  ;;  %v5531_v7 = vld [vmem:[#allocation66_spill] sm:$0xff] }
 0x455   :  { %1904 = vmatprep.subr.bf16.mxu1 %v5523_v10 }
 0x457   :  { %1896 = vmatmul.mubr.bf16.vlgmr.msra.gmra.mrb[8].mxu1 %v2557_v42  ;;  %v5533_v42 = vld [vmem:[#allocation68_spill] sm:$0xff] }
 0x458   :  { %1905 = vmatpush1.bf16.msra.mxu1 %v5524_v6  ;;  %1936 = vmatprep.mubr.bf16.mxu1 %v2560_v62  ;;  %v5534_v6 = vld [vmem:[#allocation69_spill] sm:$0xff]  ;;  %v5535_v62 = vld [vmem:[#allocation70_spill] sm:$0xff] }
 0x459   :  { %1906 = vmatprep.subr.bf16.mxu1 %v5525_v54  ;;  %v5536_v54 = vld [vmem:[#allocation71_spill] sm:$0xff] }
 0x45c   :  { %1907 = vmatpush1.bf16.msra.mxu1 %v5526_v1  ;;  %v5537_v1 = vld [vmem:[#allocation72_spill] sm:$0xff] }
 0x45d   :  { %1908 = vmatprep.subr.bf16.mxu1 %v5527_v17  ;;  %v5538_v17 = vld [vmem:[#allocation73_spill] sm:$0xff] }
 0x460   :  { %1909 = vmatpush1.bf16.msra.mxu1 %v5528_v20  ;;  %v5539_v20 = vld [vmem:[#allocation74_spill] sm:$0xff] }
 0x461   :  { %1910 = vmatprep.subr.bf16.mxu1 %v5529_v40  ;;  %v5540_v40 = vld [vmem:[#allocation14_spill] sm:$0xff] }
 0x464   :  { %1911 = vmatpush1.bf16.msra.mxu1 %v5530_v43  ;;  %v5541_v43 = vld [vmem:[#allocation15_spill] sm:$0xff] }
 0x465   :  { %1912 = vmatprep.subr.bf16.mxu1 %v5531_v7  ;;  %v5542_v7 = vld [vmem:[#allocation16_spill] sm:$0xff] }
 0x468   :  { %1913 = vmatpush1.bf16.msra.mxu1 %v5532_v8  ;;  %v5543_v8 = vld [vmem:[#allocation17_spill] sm:$0xff] }
 0x469   :  { %1914 = vmatprep.subr.bf16.mxu1 %v5533_v42  ;;  %v5544_v42 = vld [vmem:[#allocation18_spill] sm:$0xff] }
 0x46c   :  { %1915 = vmatpush1.bf16.msra.mxu1 %v5534_v6 }
 0x46d   :  { %1916 = vmatprep.subr.bf16.mxu1 %v5535_v62 }
 0x470   :  { %1917 = vmatpush1.bf16.msra.mxu1 %v5536_v54 }
 0x471   :  { %1918 = vmatprep.subr.bf16.mxu1 %v5537_v1 }
 0x474   :  { %1919 = vmatpush1.bf16.msra.mxu1 %v5538_v17 }
 0x475   :  { %1920 = vmatprep.subr.bf16.mxu1 %v5539_v20 }
 0x478   :  { %1921 = vmatpush1.bf16.msra.mxu1 %v5540_v40  ;;  %v5545_v40 = vld [vmem:[#allocation20_spill] sm:$0xff] }
 0x479   :  { %1922 = vmatprep.subr.bf16.mxu1 %v5541_v43  ;;  %v5546_v43 = vld [vmem:[#allocation21_spill] sm:$0xff] }
 0x47c   :  { %1923 = vmatpush1.bf16.msra.mxu1 %v5542_v7  ;;  %v5547_v7 = vld [vmem:[#allocation22_spill] sm:$0xff] }
 0x47d   :  { %1924 = vmatprep.subr.bf16.mxu1 %v5543_v8  ;;  %v5548_v8 = vld [vmem:[#allocation23_spill] sm:$0xff] }
 0x480   :  { %1925 = vmatpush1.bf16.msra.mxu1 %v5544_v42  ;;  %v5549_v42 = vld [vmem:[#allocation24_spill] sm:$0xff] }
 0x481   :  { %1926 = vmatprep.subr.bf16.mxu1 %v4344_v37 }
 0x484   :  { %1927 = vmatpush1.bf16.msra.mxu1 %v5545_v40 }
 0x485   :  { %1928 = vmatprep.subr.bf16.mxu1 %v5546_v43 }
 0x488   :  { %1929 = vmatpush1.bf16.msra.mxu1 %v5547_v7 }
 0x489   :  { %1930 = vmatprep.subr.bf16.mxu1 %v5548_v8 }
 0x48c   :  { %1931 = vmatpush1.bf16.msra.mxu1 %v5549_v42 }
 0x48d   :  { %1932 = vmatprep.subr.bf16.mxu1 %v4364_v32 }
 0x490   :  { %1933 = vmatpush1.bf16.msra.mxu1 %v4367_v44 }
 0x491   :  { %1934 = vmatprep.subr.bf16.mxu1 %v4370_v52 }
 0x494   :  { %1935 = vmatpush1.bf16.msra.mxu1 %v4375_v26 }
 0x495   :  { %1945 = vmatprep.subr.bf16.mxu1 %v4379_v4 }
 0x4aa   :  { %v1593_v6 = vpop.f32.mrb[4].mxu1 }
 0x4ab   :  { %v2579_v54 = vadd.f32 %v1593_v6, %v5395_v48  ;;  %v1595_v1 = vpop.f32.mrb[5].mxu1 }
 0x4ac   :  { %v2580_v17 = vadd.f32 %v1595_v1, %v3899_v18  ;;  %v1597_v62 = vpop.f32.mrb[6].mxu1  ;;  %v2559_v1 = vcombine.low %v1798_v41, %v1798_v41  ;;  %v5576_v41 = vld [vmem:[#allocation36_spill] sm:$0xff] }
 0x4ad   :  { %2945 = vtanh.f32 %v2579_v54  ;;  %v1598_v20 = vpop.f32.mrb[7].mxu1  ;;  %v5578_v62 = vld [vmem:[#allocation37_spill] sm:$0xff] }
 0x4ae   :  { %2947 = vtanh.f32 %v2580_v17  ;;  %1937 = vmatmul.mubr.bf16.vlgmr.msra.gmra.mrb[8].mxu1 %v2559_v1  ;;  %v5551_v17 = vld [vmem:[#allocation26_spill] sm:$0xff]  ;;  %v5552_v20 = vld [vmem:[#allocation27_spill] sm:$0xff] }
 0x4af   :  { %1946 = vmatpush1.bf16.msra.mxu1 %v4383_v9 }
 0x4b7   :  { %v2946_v6 = vpop.eup %2945 }
 0x4b8   :  { %v2948_v48 = vpop.eup %2947  ;;  %v1606_v54 = vpack.c.bf16 %v2946_v6, %v2946_v6  ;;  %v5580_v6 = vld [vmem:[#allocation38_spill] sm:$0xff] }
 0x4b9   :  { %v1607_v37 = vpack.c.bf16 %v2948_v48, %v2948_v48  ;;  %v5550_v48 = vld [vmem:[#allocation25_spill] sm:$0xff] }
 0x4ba   :  { %1947 = vmatprep.subr.bf16.mxu1 %v5550_v48 }
 0x4bb   :  { %1784 = vmatprep.mubr.bf16.mxu0 %v1607_v37  ;;  %1948 = vmatpush1.bf16.msra.mxu1 %v5551_v17  ;;  %v5574_v37 = vld [vmem:[#allocation35_spill] sm:$0xff] }
 0x4bc   :  { %1785 = vmatmul.mubr.bf16.vlgmr.msra.gmra.mrb[8].mxu0 %v1606_v54  ;;  %1949 = vmatprep.subr.bf16.mxu1 %v5552_v20  ;;  %v1990_v54 = vld [vmem:[#allocation3 + $0x98] sm:$0xff] }
 0x4bd   :  { %2016 = vmatpush1.bf16.msra.mxu0 %v3916_v21  ;;  %v5553_v21 = vld [vmem:[#allocation28_spill] sm:$0xff] }
 0x4be   :  { %2017 = vmatprep.subr.bf16.mxu0 %v3920_v0  ;;  %v5554_v0 = vld [vmem:[#allocation29_spill] sm:$0xff] }
 0x4bf   :  { %1950 = vmatpush1.bf16.msra.mxu1 %v5553_v21 }
 0x4c0   :  { %1951 = vmatprep.subr.bf16.mxu1 %v5554_v0 }
 0x4c1   :  { %2018 = vmatpush1.bf16.msra.mxu0 %v3924_v2  ;;  %v5555_v2 = vld [vmem:[#allocation30_spill] sm:$0xff] }
 0x4c2   :  { %2019 = vmatprep.subr.bf16.mxu0 %v3928_v19  ;;  %v5556_v19 = vld [vmem:[#allocation31_spill] sm:$0xff] }
 0x4c3   :  { %1952 = vmatpush1.bf16.msra.mxu1 %v5555_v2 }
 0x4c4   :  { %1953 = vmatprep.subr.bf16.mxu1 %v5556_v19 }
 0x4c5   :  { %2020 = vmatpush1.bf16.msra.mxu0 %v3932_v34  ;;  %v5557_v34 = vld [vmem:[#allocation32_spill] sm:$0xff] }
 0x4c6   :  { %2021 = vmatprep.subr.bf16.mxu0 %v5396_v53  ;;  %v5558_v53 = vld [vmem:[#allocation33_spill] sm:$0xff] }
 0x4c7   :  { %1954 = vmatpush1.bf16.msra.mxu1 %v5557_v34 }
 0x4c8   :  { %1955 = vmatprep.subr.bf16.mxu1 %v5558_v53 }
 0x4c9   :  { %2022 = vmatpush1.bf16.msra.mxu0 %v5397_v56  ;;  %v5559_v56 = vld [vmem:[#allocation34_spill] sm:$0xff] }
 0x4ca   :  { %2023 = vmatprep.subr.bf16.mxu0 %v5398_v39  ;;  %v5560_v39 = vld [vmem:[#allocation81_spill] sm:$0xff] }
 0x4cb   :  { %1956 = vmatpush1.bf16.msra.mxu1 %v5559_v56 }
 0x4cc   :  { %1957 = vmatprep.subr.bf16.mxu1 %v5560_v39 }
 0x4cd   :  { %2024 = vmatpush1.bf16.msra.mxu0 %v5399_v57  ;;  %v5561_v57 = vld [vmem:[#allocation82_spill] sm:$0xff] }
 0x4ce   :  { %2025 = vmatprep.subr.bf16.mxu0 %v5400_v58  ;;  %v5562_v58 = vld [vmem:[#allocation83_spill] sm:$0xff] }
 0x4cf   :  { %1958 = vmatpush1.bf16.msra.mxu1 %v5561_v57 }
 0x4d0   :  { %1959 = vmatprep.subr.bf16.mxu1 %v5562_v58 }
 0x4d1   :  { %2026 = vmatpush1.bf16.msra.mxu0 %v5401_v59  ;;  %v5563_v59 = vld [vmem:[#allocation84_spill] sm:$0xff] }
 0x4d2   :  { %2027 = vmatprep.subr.bf16.mxu0 %v5402_v60  ;;  %v5564_v60 = vld [vmem:[#allocation85_spill] sm:$0xff] }
 0x4d3   :  { %1960 = vmatpush1.bf16.msra.mxu1 %v5563_v59 }
 0x4d4   :  { %1961 = vmatprep.subr.bf16.mxu1 %v5564_v60 }
 0x4d5   :  { %2028 = vmatpush1.bf16.msra.mxu0 %v5403_v61  ;;  %v5565_v61 = vld [vmem:[#allocation39_spill] sm:$0xff] }
 0x4d6   :  { %2029 = vmatprep.subr.bf16.mxu0 %v5404_v63  ;;  %v5566_v63 = vld [vmem:[#allocation12_spill] sm:$0xff] }
 0x4d7   :  { %1962 = vmatpush1.bf16.msra.mxu1 %v5565_v61 }
 0x4d8   :  { %1963 = vmatprep.subr.bf16.mxu1 %v5566_v63 }
 0x4d9   :  { %2030 = vmatpush1.bf16.msra.mxu0 %v5405_v33  ;;  %v5567_v33 = vld [vmem:[#allocation40_spill] sm:$0xff] }
 0x4da   :  { %2031 = vmatprep.subr.bf16.mxu0 %v5406_v14  ;;  %v5568_v14 = vld [vmem:[#allocation75_spill] sm:$0xff] }
 0x4db   :  { %1964 = vmatpush1.bf16.msra.mxu1 %v5567_v33 }
 0x4dc   :  { %1965 = vmatprep.subr.bf16.mxu1 %v5568_v14 }
 0x4dd   :  { %2032 = vmatpush1.bf16.msra.mxu0 %v5407_v28  ;;  %v5569_v28 = vld [vmem:[#allocation76_spill] sm:$0xff] }
 0x4de   :  { %2033 = vmatprep.subr.bf16.mxu0 %v5408_v36  ;;  %v5570_v36 = vld [vmem:[#allocation77_spill] sm:$0xff] }
 0x4df   :  { %1966 = vmatpush1.bf16.msra.mxu1 %v5569_v28 }
 0x4e0   :  { %1967 = vmatprep.subr.bf16.mxu1 %v5570_v36 }
 0x4e1   :  { %2034 = vmatpush1.bf16.msra.mxu0 %v5409_v25  ;;  %v5571_v25 = vld [vmem:[#allocation86_spill] sm:$0xff] }
 0x4e2   :  { %2035 = vmatprep.subr.bf16.mxu0 %v5410_v23  ;;  %v5572_v23 = vld [vmem:[#allocation87_spill] sm:$0xff] }
 0x4e3   :  { %1968 = vmatpush1.bf16.msra.mxu1 %v5571_v25 }
 0x4e4   :  { %1969 = vmatprep.subr.bf16.mxu1 %v5572_v23 }
 0x4e5   :  { %2036 = vmatpush1.bf16.msra.mxu0 %v5411_v38  ;;  %v5573_v38 = vld [vmem:[#allocation88_spill] sm:$0xff] }
 0x4e6   :  { %2037 = vmatprep.subr.bf16.mxu0 %v5412_v31  ;;  %v5575_v31 = vld [vmem:[#allocation89_spill] sm:$0xff] }
 0x4e7   :  { %1970 = vmatpush1.bf16.msra.mxu1 %v5573_v38 }
 0x4e8   :  { %1971 = vmatprep.subr.bf16.mxu1 %v5575_v31 }
 0x4e9   :  { %2038 = vmatpush1.bf16.msra.mxu0 %v5413_v29  ;;  %v5577_v29 = vld [vmem:[#allocation90_spill] sm:$0xff] }
 0x4ea   :  { %2039 = vmatprep.subr.bf16.mxu0 %v5414_v24  ;;  %v5579_v24 = vld [vmem:[#allocation91_spill] sm:$0xff] }
 0x4eb   :  { %1972 = vmatpush1.bf16.msra.mxu1 %v5577_v29 }
 0x4ec   :  { %1973 = vmatprep.subr.bf16.mxu1 %v5579_v24 }
 0x4ed   :  { %2040 = vmatpush1.bf16.msra.mxu0 %v5415_v27  ;;  %v3093_v27 = vld [vmem:[#allocation6 + $0x4] ss:$8 sps:$4 sm:$0xff]  }
 0x4ee   :  { %2041 = vmatprep.subr.bf16.mxu0 %v5416_v35  ;;  %v1989_v35 = vld [vmem:[#allocation3 + $0x90] sm:$0xff] }
 0x4ef   :  { %1974 = vmatpush1.bf16.msra.mxu1 %v4495_v22  ;;  %v2561_v1 = vcombine.low %v1989_v35, %v1989_v35 }
 0x4f0   :  { %1975 = vmatprep.subr.bf16.mxu1 %v4499_v30 }
 0x4f1   :  { %2042 = vmatpush1.bf16.msra.mxu0 %v5574_v37  ;;  %v2562_v37 = vcombine.high %v1989_v35, %v1989_v35  ;;  %v5594_v35 = vld [vmem:[#allocation51_spill] sm:$0xff] }
 0x4f2   :  { %2043 = vmatprep.subr.bf16.mxu0 %v5576_v41  ;;  %v2564_v41 = vcombine.high %v1990_v54, %v1990_v54 }
 0x4f3   :  { %1976 = vmatpush1.bf16.msra.mxu1 %v4503_v13  ;;  %2047 = vmatprep.mubr.bf16.mxu0 %v2562_v37  ;;  %v5596_v37 = vld [vmem:[#allocation53_spill] sm:$0xff] }
 0x4f4   :  { %2208 = vmatprep.subr.bf16.mxu1 %v3093_v27  ;;  %v5593_v27 = vld [vmem:[#allocation50_spill] sm:$0xff] }
 0x4f5   :  { %2044 = vmatpush1.bf16.msra.mxu0 %v5578_v62  ;;  %v5591_v62 = vld [vmem:[#allocation48_spill] sm:$0xff] }
 0x4f6   :  { %2045 = vmatprep.subr.bf16.mxu0 %v5580_v6  ;;  %v5592_v6 = vld [vmem:[#allocation49_spill] sm:$0xff] }
 0x4f9   :  { %2046 = vmatpush1.bf16.msra.mxu0 %v4036_v3  ;;  %v5583_v3 = vld [vmem:[#allocation80_spill] sm:$0xff] }
 0x4fa   :  { %2056 = vmatprep.subr.bf16.mxu0 %v5426_v45  ;;  %v5586_v45 = vld [vmem:[#allocation43_spill] sm:$0xff] }
 0x4fc   :  { %2048 = vmatmul.mubr.bf16.vlgmr.msra.gmra.mrb[12].mxu0 %v2561_v1  ;;  %v5595_v1 = vld [vmem:[#allocation52_spill] sm:$0xff] }
 0x4fd   :  { %2057 = vmatpush1.bf16.msra.mxu0 %v4045_v49  ;;  %2088 = vmatprep.mubr.bf16.mxu0 %v2564_v41  ;;  %v5581_v49 = vld [vmem:[#allocation78_spill] sm:$0xff] }
 0x4fe   :  { %2058 = vmatprep.subr.bf16.mxu0 %v4048_v50  ;;  %v5582_v50 = vld [vmem:[#allocation79_spill] sm:$0xff]  ;;  %v5597_v41 = vld [vmem:[#allocation54_spill] sm:$0xff] }
 0x501   :  { %2059 = vmatpush1.bf16.msra.mxu0 %v4051_v12  ;;  %v5585_v12 = vld [vmem:[#allocation42_spill] sm:$0xff] }
 0x502   :  { %2060 = vmatprep.subr.bf16.mxu0 %v4054_v15  ;;  %v5584_v15 = vld [vmem:[#allocation41_spill] sm:$0xff] }
 0x505   :  { %2061 = vmatpush1.bf16.msra.mxu0 %v5428_v51  ;;  %v5587_v51 = vld [vmem:[#allocation44_spill] sm:$0xff] }
 0x506   :  { %2062 = vmatprep.subr.bf16.mxu0 %v5429_v11  ;;  %v5588_v11 = vld [vmem:[#allocation45_spill] sm:$0xff] }
 0x509   :  { %2063 = vmatpush1.bf16.msra.mxu0 %v5430_v46  ;;  %v5589_v46 = vld [vmem:[#allocation46_spill] sm:$0xff] }
 0x50a   :  { %2064 = vmatprep.subr.bf16.mxu0 %v5431_v47  ;;  %v5590_v47 = vld [vmem:[#allocation47_spill] sm:$0xff] }
 0x50d   :  { %2065 = vmatpush1.bf16.msra.mxu0 %v4203_v16 }
 0x50e   :  { %2066 = vmatprep.subr.bf16.mxu0 %v4206_v55 }
 0x511   :  { %2067 = vmatpush1.bf16.msra.mxu0 %v4209_v5 }
 0x512   :  { %2068 = vmatprep.subr.bf16.mxu0 %v5581_v49 }
 0x515   :  { %2069 = vmatpush1.bf16.msra.mxu0 %v5582_v50 }
 0x516   :  { %2070 = vmatprep.subr.bf16.mxu0 %v5583_v3 }
 0x519   :  { %2071 = vmatpush1.bf16.msra.mxu0 %v5584_v15 }
 0x51a   :  { %2072 = vmatprep.subr.bf16.mxu0 %v5585_v12 }
 0x51d   :  { %2073 = vmatpush1.bf16.msra.mxu0 %v5586_v45  ;;  %v5600_v45 = vld [vmem:[#allocation57_spill] sm:$0xff] }
 0x51e   :  { %2074 = vmatprep.subr.bf16.mxu0 %v5587_v51  ;;  %v5598_v51 = vld [vmem:[#allocation55_spill] sm:$0xff] }
 0x521   :  { %2075 = vmatpush1.bf16.msra.mxu0 %v5588_v11  ;;  %v5599_v11 = vld [vmem:[#allocation56_spill] sm:$0xff] }
 0x522   :  { %2076 = vmatprep.subr.bf16.mxu0 %v5589_v46  ;;  %v1991_v46 = vld [vmem:[#allocation3 + $0xa0] sm:$0xff] }
 0x525   :  { %2077 = vmatpush1.bf16.msra.mxu0 %v5590_v47  ;;  %v2563_v47 = vcombine.low %v1990_v54, %v1990_v54  ;;  %v5607_v54 = vld [vmem:[#allocation65_spill] sm:$0xff] }
 0x526   :  { %2078 = vmatprep.subr.bf16.mxu0 %v5591_v62  ;;  %v2566_v62 = vcombine.high %v1991_v46, %v1991_v46 }
 0x529   :  { %2079 = vmatpush1.bf16.msra.mxu0 %v5592_v6 }
 0x52a   :  { %2080 = vmatprep.subr.bf16.mxu0 %v5593_v27  ;;  %v5601_v27 = vld [vmem:[#allocation59_spill] sm:$0xff] }
 0x52d   :  { %2081 = vmatpush1.bf16.msra.mxu0 %v5594_v35  ;;  %v5609_v35 = vld [vmem:[#allocation67_spill] sm:$0xff] }
 0x52e   :  { %2082 = vmatprep.subr.bf16.mxu0 %v5595_v1  ;;  %v5602_v1 = vld [vmem:[#allocation60_spill] sm:$0xff] }
 0x531   :  { %2083 = vmatpush1.bf16.msra.mxu0 %v5596_v37  ;;  %v5603_v37 = vld [vmem:[#allocation61_spill] sm:$0xff] }
 0x532   :  { %2084 = vmatprep.subr.bf16.mxu0 %v5597_v41  ;;  %v5604_v41 = vld [vmem:[#allocation62_spill] sm:$0xff] }
 0x535   :  { %2085 = vmatpush1.bf16.msra.mxu0 %v5598_v51  ;;  %v5605_v51 = vld [vmem:[#allocation63_spill] sm:$0xff] }
 0x536   :  { %2086 = vmatprep.subr.bf16.mxu0 %v5599_v11  ;;  %v5606_v11 = vld [vmem:[#allocation64_spill] sm:$0xff] }
 0x539   :  { %2087 = vmatpush1.bf16.msra.mxu0 %v5600_v45  ;;  %v5608_v45 = vld [vmem:[#allocation66_spill] sm:$0xff] }
 0x53a   :  { %2097 = vmatprep.subr.bf16.mxu0 %v5523_v10 }
 0x53c   :  { %2089 = vmatmul.mubr.bf16.vlgmr.msra.gmra.mrb[12].mxu0 %v2563_v47  ;;  %v5610_v47 = vld [vmem:[#allocation68_spill] sm:$0xff] }
 0x53d   :  { %2098 = vmatpush1.bf16.msra.mxu0 %v5601_v27  ;;  %2129 = vmatprep.mubr.bf16.mxu0 %v2566_v62  ;;  %v5611_v27 = vld [vmem:[#allocation69_spill] sm:$0xff]  ;;  %v5612_v62 = vld [vmem:[#allocation70_spill] sm:$0xff] }
 0x53e   :  { %2099 = vmatprep.subr.bf16.mxu0 %v5602_v1  ;;  %v5613_v1 = vld [vmem:[#allocation71_spill] sm:$0xff] }
 0x541   :  { %2100 = vmatpush1.bf16.msra.mxu0 %v5603_v37  ;;  %v5614_v37 = vld [vmem:[#allocation72_spill] sm:$0xff] }
 0x542   :  { %2101 = vmatprep.subr.bf16.mxu0 %v5604_v41  ;;  %v5615_v41 = vld [vmem:[#allocation73_spill] sm:$0xff] }
 0x545   :  { %2102 = vmatpush1.bf16.msra.mxu0 %v5605_v51  ;;  %v5616_v51 = vld [vmem:[#allocation74_spill] sm:$0xff] }
 0x546   :  { %2103 = vmatprep.subr.bf16.mxu0 %v5606_v11  ;;  %v5617_v11 = vld [vmem:[#allocation14_spill] sm:$0xff] }
 0x549   :  { %2104 = vmatpush1.bf16.msra.mxu0 %v5607_v54  ;;  %v5618_v54 = vld [vmem:[#allocation15_spill] sm:$0xff] }
 0x54a   :  { %2105 = vmatprep.subr.bf16.mxu0 %v5608_v45  ;;  %v5619_v45 = vld [vmem:[#allocation16_spill] sm:$0xff] }
 0x54d   :  { %2106 = vmatpush1.bf16.msra.mxu0 %v5609_v35  ;;  %v5620_v35 = vld [vmem:[#allocation17_spill] sm:$0xff] }
 0x54e   :  { %2107 = vmatprep.subr.bf16.mxu0 %v5610_v47  ;;  %v5621_v47 = vld [vmem:[#allocation18_spill] sm:$0xff] }
 0x551   :  { %2108 = vmatpush1.bf16.msra.mxu0 %v5611_v27 }
 0x552   :  { %2109 = vmatprep.subr.bf16.mxu0 %v5612_v62  ;;  %v5622_v62 = vld [vmem:[#allocation19_spill] sm:$0xff] }
 0x555   :  { %2110 = vmatpush1.bf16.msra.mxu0 %v5613_v1  ;;  %v5623_v1 = vld [vmem:[#allocation13_spill] sm:$0xff] }
 0x556   :  { %2111 = vmatprep.subr.bf16.mxu0 %v5614_v37 }
 0x559   :  { %2112 = vmatpush1.bf16.msra.mxu0 %v5615_v41 }
 0x55a   :  { %2113 = vmatprep.subr.bf16.mxu0 %v5616_v51 }
 0x55d   :  { %2114 = vmatpush1.bf16.msra.mxu0 %v5617_v11 }
 0x55e   :  { %2115 = vmatprep.subr.bf16.mxu0 %v5618_v54 }
 0x561   :  { %2116 = vmatpush1.bf16.msra.mxu0 %v5619_v45 }
 0x562   :  { %2117 = vmatprep.subr.bf16.mxu0 %v5620_v35 }
 0x565   :  { %2118 = vmatpush1.bf16.msra.mxu0 %v5621_v47 }
 0x566   :  { %2119 = vmatprep.subr.bf16.mxu0 %v5622_v62 }
 0x569   :  { %2120 = vmatpush1.bf16.msra.mxu0 %v5545_v40 }
 0x56a   :  { %2121 = vmatprep.subr.bf16.mxu0 %v5546_v43 }
 0x56d   :  { %2122 = vmatpush1.bf16.msra.mxu0 %v5547_v7 }
 0x56e   :  { %2123 = vmatprep.subr.bf16.mxu0 %v5548_v8 }
 0x571   :  { %2124 = vmatpush1.bf16.msra.mxu0 %v5549_v42 }
 0x572   :  { %2125 = vmatprep.subr.bf16.mxu0 %v4364_v32 }
 0x575   :  { %2126 = vmatpush1.bf16.msra.mxu0 %v4367_v44 }
 0x576   :  { %2127 = vmatprep.subr.bf16.mxu0 %v4370_v52 }
 0x579   :  { %2128 = vmatpush1.bf16.msra.mxu0 %v4375_v26 }
 0x57a   :  { %2138 = vmatprep.subr.bf16.mxu0 %v4379_v4 }
 0x58f   :  { %v1786_v27 = vpop.f32.mrb[8].mxu0 }
 0x590   :  { %v2581_v10 = vadd.f32 %v1786_v27, %v5623_v1  ;;  %v1788_v37 = vpop.f32.mrb[9].mxu0 }
 0x591   :  { %v2582_v41 = vadd.f32 %v1788_v37, %v3899_v18  ;;  %v1790_v6 = vpop.f32.mrb[10].mxu0  ;;  %v3095_v37 = vld [vmem:[#allocation6 + $0x14] ss:$8 sps:$4 sm:$0xff]  }
 0x592   :  { %2949 = vtanh.f32 %v2581_v10  ;;  %v1791_v51 = vpop.f32.mrb[11].mxu0  ;;  %v3094_v6 = vld [vmem:[#allocation6] ss:$8 sps:$4 sm:$0xff]  }
 0x593   :  { %2951 = vtanh.f32 %v2582_v41  ;;  %v2565_v51 = vcombine.low %v1991_v46, %v1991_v46  ;;  %v3097_v41 = vld [vmem:[#allocation6 + $0x24] ss:$8 sps:$4 sm:$0xff]   ;;  %v3098_v46 = vld [vmem:[#allocation6 + $0x20] ss:$8 sps:$4 sm:$0xff]  }
 0x595   :  { %2130 = vmatmul.mubr.bf16.vlgmr.msra.gmra.mrb[12].mxu0 %v2565_v51  ;;  %v3102_v51 = vld [vmem:[#allocation6 + $0x40] ss:$8 sps:$4 sm:$0xff]  }
 0x596   :  { %2139 = vmatpush1.bf16.msra.mxu0 %v4383_v9 }
 0x597   :  { %2140 = vmatprep.subr.bf16.mxu0 %v5550_v48 }
 0x59a   :  { %2141 = vmatpush1.bf16.msra.mxu0 %v5551_v17 }
 0x59b   :  { %2142 = vmatprep.subr.bf16.mxu0 %v5552_v20 }
 0x59c   :  { %v2950_v27 = vpop.eup %2949 }
 0x59d   :  { %v2952_v1 = vpop.eup %2951  ;;  %v1799_v10 = vpack.c.bf16 %v2950_v27, %v2950_v27  ;;  %v3100_v27 = vld [vmem:[#allocation6 + $0x30] ss:$8 sps:$4 sm:$0xff]  }
 0x59e   :  { %v1800_v62 = vpack.c.bf16 %v2952_v1, %v2952_v1  ;;  %v3096_v1 = vld [vmem:[#allocation6 + $0x10] ss:$8 sps:$4 sm:$0xff]   ;;  %2143 = vmatpush1.bf16.msra.mxu0 %v5553_v21 }
 0x59f   :  { %2144 = vmatprep.subr.bf16.mxu0 %v5554_v0 }
 0x5a0   :  { %1977 = vmatprep.mubr.bf16.mxu1 %v1800_v62  ;;  %v3099_v62 = vld [vmem:[#allocation6 + $0x34] ss:$8 sps:$4 sm:$0xff]  }
 0x5a1   :  { %1978 = vmatmul.mubr.bf16.vlgmr.msra.gmra.mrb[8].mxu1 %v1799_v10  ;;  %v3101_v10 = vld [vmem:[#allocation6 + $0x44] ss:$8 sps:$4 sm:$0xff]  }
 0x5a2   :  { %2209 = vmatpush1.bf16.msra.mxu1 %v3094_v6  ;;  %2145 = vmatpush1.bf16.msra.mxu0 %v5555_v2  ;;  %v3103_v6 = vld [vmem:[#allocation6 + $0x54] ss:$8 sps:$4 sm:$0xff]  }
 0x5a3   :  { %2210 = vmatprep.subr.bf16.mxu1 %v3095_v37  ;;  %2146 = vmatprep.subr.bf16.mxu0 %v5556_v19  ;;  %v3104_v37 = vld [vmem:[#allocation6 + $0x50] ss:$8 sps:$4 sm:$0xff]  }
 0x5a6   :  { %2211 = vmatpush1.bf16.msra.mxu1 %v3096_v1  ;;  %2147 = vmatpush1.bf16.msra.mxu0 %v5557_v34  ;;  %v3105_v1 = vld [vmem:[#allocation6 + $0x64] ss:$8 sps:$4 sm:$0xff]  }
 0x5a7   :  { %2212 = vmatprep.subr.bf16.mxu1 %v3097_v41  ;;  %2148 = vmatprep.subr.bf16.mxu0 %v5558_v53  ;;  %v3106_v41 = vld [vmem:[#allocation6 + $0x60] ss:$8 sps:$4 sm:$0xff]  }
 0x5aa   :  { %2213 = vmatpush1.bf16.msra.mxu1 %v3098_v46  ;;  %2149 = vmatpush1.bf16.msra.mxu0 %v5559_v56  ;;  %v3107_v46 = vld [vmem:[#allocation6 + $0x74] ss:$8 sps:$4 sm:$0xff]  }
 0x5ab   :  { %2214 = vmatprep.subr.bf16.mxu1 %v3099_v62  ;;  %2150 = vmatprep.subr.bf16.mxu0 %v5560_v39  ;;  %v3108_v62 = vld [vmem:[#allocation6 + $0x70] ss:$8 sps:$4 sm:$0xff]  }
 0x5ae   :  { %2215 = vmatpush1.bf16.msra.mxu1 %v3100_v27  ;;  %2151 = vmatpush1.bf16.msra.mxu0 %v5561_v57  ;;  %v3109_v27 = vld [vmem:[#allocation6 + $0x84] ss:$8 sps:$4 sm:$0xff]  }
 0x5af   :  { %2216 = vmatprep.subr.bf16.mxu1 %v3101_v10  ;;  %2152 = vmatprep.subr.bf16.mxu0 %v5562_v58  ;;  %v3110_v10 = vld [vmem:[#allocation6 + $0x80] ss:$8 sps:$4 sm:$0xff]  }
 0x5b2   :  { %2217 = vmatpush1.bf16.msra.mxu1 %v3102_v51  ;;  %2153 = vmatpush1.bf16.msra.mxu0 %v5563_v59  ;;  %v3111_v51 = vld [vmem:[#allocation6 + $0x94] ss:$8 sps:$4 sm:$0xff]  }
 0x5b3   :  { %2218 = vmatprep.subr.bf16.mxu1 %v3103_v6  ;;  %2154 = vmatprep.subr.bf16.mxu0 %v5564_v60  ;;  %v3112_v6 = vld [vmem:[#allocation6 + $0x90] ss:$8 sps:$4 sm:$0xff]  }
 0x5b6   :  { %2219 = vmatpush1.bf16.msra.mxu1 %v3104_v37  ;;  %2155 = vmatpush1.bf16.msra.mxu0 %v5565_v61  ;;  %v3113_v37 = vld [vmem:[#allocation6 + $0xa4] ss:$8 sps:$4 sm:$0xff]  }
 0x5b7   :  { %2220 = vmatprep.subr.bf16.mxu1 %v3105_v1  ;;  %2156 = vmatprep.subr.bf16.mxu0 %v5566_v63  ;;  %v3114_v1 = vld [vmem:[#allocation6 + $0xa0] ss:$8 sps:$4 sm:$0xff]  }
 0x5ba   :  { %2221 = vmatpush1.bf16.msra.mxu1 %v3106_v41  ;;  %2157 = vmatpush1.bf16.msra.mxu0 %v5567_v33  ;;  %v3115_v41 = vld [vmem:[#allocation6 + $0xb4] ss:$8 sps:$4 sm:$0xff]  }
 0x5bb   :  { %2222 = vmatprep.subr.bf16.mxu1 %v3107_v46  ;;  %2158 = vmatprep.subr.bf16.mxu0 %v5568_v14  ;;  %v3116_v46 = vld [vmem:[#allocation6 + $0xb0] ss:$8 sps:$4 sm:$0xff]  }
 0x5be   :  { %2223 = vmatpush1.bf16.msra.mxu1 %v3108_v62  ;;  %2159 = vmatpush1.bf16.msra.mxu0 %v5569_v28  ;;  %v3117_v62 = vld [vmem:[#allocation6 + $0xc4] ss:$8 sps:$4 sm:$0xff]  }
 0x5bf   :  { %2224 = vmatprep.subr.bf16.mxu1 %v3109_v27  ;;  %2160 = vmatprep.subr.bf16.mxu0 %v5570_v36  ;;  %v3118_v27 = vld [vmem:[#allocation6 + $0xc0] ss:$8 sps:$4 sm:$0xff]  }
 0x5c2   :  { %2225 = vmatpush1.bf16.msra.mxu1 %v3110_v10  ;;  %2161 = vmatpush1.bf16.msra.mxu0 %v5571_v25  ;;  %v3119_v10 = vld [vmem:[#allocation6 + $0xd4] ss:$8 sps:$4 sm:$0xff]  }
 0x5c3   :  { %2226 = vmatprep.subr.bf16.mxu1 %v3111_v51  ;;  %2162 = vmatprep.subr.bf16.mxu0 %v5572_v23  ;;  %v3120_v51 = vld [vmem:[#allocation6 + $0xd0] ss:$8 sps:$4 sm:$0xff]  }
 0x5c6   :  { %2227 = vmatpush1.bf16.msra.mxu1 %v3112_v6  ;;  %2163 = vmatpush1.bf16.msra.mxu0 %v5573_v38  ;;  %v3121_v6 = vld [vmem:[#allocation6 + $0xe4] ss:$8 sps:$4 sm:$0xff]  }
 0x5c7   :  { %2228 = vmatprep.subr.bf16.mxu1 %v3113_v37  ;;  %2164 = vmatprep.subr.bf16.mxu0 %v5575_v31  ;;  %v3122_v37 = vld [vmem:[#allocation6 + $0xe0] ss:$8 sps:$4 sm:$0xff]  }
 0x5ca   :  { %2229 = vmatpush1.bf16.msra.mxu1 %v3114_v1  ;;  %2165 = vmatpush1.bf16.msra.mxu0 %v5577_v29  ;;  %v3123_v1 = vld [vmem:[#allocation6 + $0xf4] ss:$8 sps:$4 sm:$0xff]  }
 0x5cb   :  { %2230 = vmatprep.subr.bf16.mxu1 %v3115_v41  ;;  %2166 = vmatprep.subr.bf16.mxu0 %v5579_v24  ;;  %v3124_v41 = vld [vmem:[#allocation6 + $0xf0] ss:$8 sps:$4 sm:$0xff]   ;;  %v3133_v24 = vld [vmem:[#allocation6 + $0x144] ss:$8 sps:$4 sm:$0xff]  }
 0x5ce   :  { %2231 = vmatpush1.bf16.msra.mxu1 %v3116_v46  ;;  %2167 = vmatpush1.bf16.msra.mxu0 %v4495_v22  ;;  %v3125_v46 = vld [vmem:[#allocation6 + $0x104] ss:$8 sps:$4 sm:$0xff]   ;;  %v3128_v22 = vld [vmem:[#allocation6 + $0x110] ss:$8 sps:$4 sm:$0xff]  }
 0x5cf   :  { %2232 = vmatprep.subr.bf16.mxu1 %v3117_v62  ;;  %2168 = vmatprep.subr.bf16.mxu0 %v4499_v30  ;;  %v2182_v62 = vld [vmem:[#allocation3 + $0xa8] sm:$0xff] }
 0x5d0   :  { %v3130_v30 = vld [vmem:[#allocation6 + $0x120] ss:$8 sps:$4 sm:$0xff]  }
 0x5d2   :  { %2233 = vmatpush1.bf16.msra.mxu1 %v3118_v27  ;;  %2169 = vmatpush1.bf16.msra.mxu0 %v4503_v13  ;;  %v2183_v27 = vld [vmem:[#allocation3 + $0xb0] sm:$0xff] }
 0x5d3   :  { %2234 = vmatprep.subr.bf16.mxu1 %v3119_v10  ;;  %v2567_v10 = vcombine.low %v2182_v62, %v2182_v62  ;;  %v3132_v13 = vld [vmem:[#allocation6 + $0x130] ss:$8 sps:$4 sm:$0xff]  }
 0x5d6   :  { %2235 = vmatpush1.bf16.msra.mxu1 %v3120_v51  ;;  %v2568_v51 = vcombine.high %v2182_v62, %v2182_v62  ;;  %v5636_v62 = vld [vmem:[#allocation55_spill] sm:$0xff] }
 0x5d7   :  { %2236 = vmatprep.subr.bf16.mxu1 %v3121_v6  ;;  %v2570_v6 = vcombine.high %v2183_v27, %v2183_v27 }
 0x5d8   :  { %2240 = vmatprep.mubr.bf16.mxu1 %v2568_v51  ;;  %v2184_v51 = vld [vmem:[#allocation3 + $0xb8] sm:$0xff] }
 0x5da   :  { %2237 = vmatpush1.bf16.msra.mxu1 %v3122_v37  ;;  %v3126_v37 = vld [vmem:[#allocation6 + $0x100] ss:$8 sps:$4 sm:$0xff]  }
 0x5db   :  { %2238 = vmatprep.subr.bf16.mxu1 %v3123_v1  ;;  %v3127_v1 = vld [vmem:[#allocation6 + $0x114] ss:$8 sps:$4 sm:$0xff]  }
 0x5de   :  { %2239 = vmatpush1.bf16.msra.mxu1 %v3124_v41  ;;  %v3129_v41 = vld [vmem:[#allocation6 + $0x124] ss:$8 sps:$4 sm:$0xff]  }
 0x5df   :  { %2249 = vmatprep.subr.bf16.mxu1 %v3125_v46  ;;  %v3131_v46 = vld [vmem:[#allocation6 + $0x134] ss:$8 sps:$4 sm:$0xff]  }
 0x5e1   :  { %2241 = vmatmul.mubr.bf16.vlgmr.msra.gmra.mrb[12].mxu1 %v2567_v10  ;;  %v5637_v10 = vld [vmem:[#allocation56_spill] sm:$0xff] }
 0x5e2   :  { %2250 = vmatpush1.bf16.msra.mxu1 %v3126_v37  ;;  %2281 = vmatprep.mubr.bf16.mxu1 %v2570_v6  ;;  %v2569_v6 = vcombine.low %v2183_v27, %v2183_v27  ;;  %v5638_v37 = vld [vmem:[#allocation57_spill] sm:$0xff] }
 0x5e3   :  { %2251 = vmatprep.subr.bf16.mxu1 %v3127_v1  ;;  %v2572_v1 = vcombine.high %v2184_v51, %v2184_v51  ;;  %v5646_v27 = vld [vmem:[#allocation65_spill] sm:$0xff] }
 0x5e6   :  { %2252 = vmatpush1.bf16.msra.mxu1 %v3128_v22  ;;  %v5626_v22 = vld [vmem:[#allocation45_spill] sm:$0xff] }
 0x5e7   :  { %2253 = vmatprep.subr.bf16.mxu1 %v3129_v41  ;;  %v5639_v41 = vld [vmem:[#allocation58_spill] sm:$0xff] }
 0x5ea   :  { %2254 = vmatpush1.bf16.msra.mxu1 %v3130_v30  ;;  %v5624_v30 = vld [vmem:[#allocation43_spill] sm:$0xff] }
 0x5eb   :  { %2255 = vmatprep.subr.bf16.mxu1 %v3131_v46  ;;  %v5640_v46 = vld [vmem:[#allocation59_spill] sm:$0xff] }
 0x5ee   :  { %2256 = vmatpush1.bf16.msra.mxu1 %v3132_v13  ;;  %v5625_v13 = vld [vmem:[#allocation44_spill] sm:$0xff] }
 0x5ef   :  { %2257 = vmatprep.subr.bf16.mxu1 %v3133_v24  ;;  %v5630_v24 = vld [vmem:[#allocation49_spill] sm:$0xff] }
 0x5f2   :  { %2258 = vmatpush1.bf16.msra.mxu1 %v4203_v16  ;;  %v5627_v16 = vld [vmem:[#allocation46_spill] sm:$0xff] }
 0x5f3   :  { %2259 = vmatprep.subr.bf16.mxu1 %v4206_v55  ;;  %v5628_v55 = vld [vmem:[#allocation47_spill] sm:$0xff] }
 0x5f6   :  { %2260 = vmatpush1.bf16.msra.mxu1 %v4209_v5  ;;  %v5629_v5 = vld [vmem:[#allocation48_spill] sm:$0xff] }
 0x5f7   :  { %2261 = vmatprep.subr.bf16.mxu1 %v5581_v49  ;;  %v5631_v49 = vld [vmem:[#allocation50_spill] sm:$0xff] }
 0x5fa   :  { %2262 = vmatpush1.bf16.msra.mxu1 %v5582_v50  ;;  %v5632_v50 = vld [vmem:[#allocation51_spill] sm:$0xff] }
 0x5fb   :  { %2263 = vmatprep.subr.bf16.mxu1 %v5583_v3  ;;  %v5633_v3 = vld [vmem:[#allocation52_spill] sm:$0xff] }
 0x5fe   :  { %2264 = vmatpush1.bf16.msra.mxu1 %v5584_v15  ;;  %v5634_v15 = vld [vmem:[#allocation53_spill] sm:$0xff] }
 0x5ff   :  { %2265 = vmatprep.subr.bf16.mxu1 %v5585_v12  ;;  %v5635_v12 = vld [vmem:[#allocation54_spill] sm:$0xff] }
 0x602   :  { %2266 = vmatpush1.bf16.msra.mxu1 %v5624_v30  ;;  %v5641_v30 = vld [vmem:[#allocation60_spill] sm:$0xff] }
 0x603   :  { %2267 = vmatprep.subr.bf16.mxu1 %v5625_v13  ;;  %v5642_v13 = vld [vmem:[#allocation61_spill] sm:$0xff] }
 0x606   :  { %2268 = vmatpush1.bf16.msra.mxu1 %v5626_v22  ;;  %v5643_v22 = vld [vmem:[#allocation62_spill] sm:$0xff] }
 0x607   :  { %2269 = vmatprep.subr.bf16.mxu1 %v5627_v16  ;;  %v5644_v16 = vld [vmem:[#allocation63_spill] sm:$0xff] }
 0x60a   :  { %2270 = vmatpush1.bf16.msra.mxu1 %v5628_v55  ;;  %v5645_v55 = vld [vmem:[#allocation64_spill] sm:$0xff] }
 0x60b   :  { %2271 = vmatprep.subr.bf16.mxu1 %v5629_v5  ;;  %v5647_v5 = vld [vmem:[#allocation66_spill] sm:$0xff] }
 0x60e   :  { %2272 = vmatpush1.bf16.msra.mxu1 %v5630_v24  ;;  %v5648_v24 = vld [vmem:[#allocation67_spill] sm:$0xff] }
 0x60f   :  { %2273 = vmatprep.subr.bf16.mxu1 %v5631_v49  ;;  %v5649_v49 = vld [vmem:[#allocation68_spill] sm:$0xff] }
 0x612   :  { %2274 = vmatpush1.bf16.msra.mxu1 %v5632_v50  ;;  %v5650_v50 = vld [vmem:[#allocation69_spill] sm:$0xff] }
 0x613   :  { %2275 = vmatprep.subr.bf16.mxu1 %v5633_v3  ;;  %v5651_v3 = vld [vmem:[#allocation70_spill] sm:$0xff] }
 0x616   :  { %2276 = vmatpush1.bf16.msra.mxu1 %v5634_v15  ;;  %v5652_v15 = vld [vmem:[#allocation71_spill] sm:$0xff] }
 0x617   :  { %2277 = vmatprep.subr.bf16.mxu1 %v5635_v12  ;;  %v5653_v12 = vld [vmem:[#allocation72_spill] sm:$0xff] }
 0x61a   :  { %2278 = vmatpush1.bf16.msra.mxu1 %v5636_v62  ;;  %v5654_v62 = vld [vmem:[#allocation73_spill] sm:$0xff] }
 0x61b   :  { %2279 = vmatprep.subr.bf16.mxu1 %v5637_v10  ;;  %v5655_v10 = vld [vmem:[#allocation74_spill] sm:$0xff] }
 0x61e   :  { %2280 = vmatpush1.bf16.msra.mxu1 %v5638_v37  ;;  %v5656_v37 = vld [vmem:[#allocation19_spill] sm:$0xff] }
 0x61f   :  { %2290 = vmatprep.subr.bf16.mxu1 %v5639_v41 }
 0x621   :  { %2282 = vmatmul.mubr.bf16.vlgmr.msra.gmra.mrb[12].mxu1 %v2569_v6 }
 0x622   :  { %2291 = vmatpush1.bf16.msra.mxu1 %v5640_v46  ;;  %2322 = vmatprep.mubr.bf16.mxu1 %v2572_v1  ;;  %v5657_v1 = vld [vmem:[#allocation13_spill] sm:$0xff] }
 0x623   :  { %2292 = vmatprep.subr.bf16.mxu1 %v5641_v30 }
 0x626   :  { %2293 = vmatpush1.bf16.msra.mxu1 %v5642_v13 }
 0x627   :  { %2294 = vmatprep.subr.bf16.mxu1 %v5643_v22 }
 0x62a   :  { %2295 = vmatpush1.bf16.msra.mxu1 %v5644_v16 }
 0x62b   :  { %2296 = vmatprep.subr.bf16.mxu1 %v5645_v55 }
 0x62e   :  { %2297 = vmatpush1.bf16.msra.mxu1 %v5646_v27 }
 0x62f   :  { %2298 = vmatprep.subr.bf16.mxu1 %v5647_v5 }
 0x632   :  { %2299 = vmatpush1.bf16.msra.mxu1 %v5648_v24 }
 0x633   :  { %2300 = vmatprep.subr.bf16.mxu1 %v5649_v49 }
 0x636   :  { %2301 = vmatpush1.bf16.msra.mxu1 %v5650_v50 }
 0x637   :  { %2302 = vmatprep.subr.bf16.mxu1 %v5651_v3 }
 0x63a   :  { %2303 = vmatpush1.bf16.msra.mxu1 %v5652_v15 }
 0x63b   :  { %2304 = vmatprep.subr.bf16.mxu1 %v5653_v12 }
 0x63e   :  { %2305 = vmatpush1.bf16.msra.mxu1 %v5654_v62 }
 0x63f   :  { %2306 = vmatprep.subr.bf16.mxu1 %v5655_v10 }
 0x642   :  { %2307 = vmatpush1.bf16.msra.mxu1 %v5617_v11 }
 0x643   :  { %2308 = vmatprep.subr.bf16.mxu1 %v5618_v54 }
 0x646   :  { %2309 = vmatpush1.bf16.msra.mxu1 %v5619_v45 }
 0x647   :  { %2310 = vmatprep.subr.bf16.mxu1 %v5620_v35 }
 0x64a   :  { %2311 = vmatpush1.bf16.msra.mxu1 %v5621_v47 }
 0x64b   :  { %2312 = vmatprep.subr.bf16.mxu1 %v5656_v37 }
 0x64e   :  { %2313 = vmatpush1.bf16.msra.mxu1 %v5545_v40  ;;  %v2571_v40 = vcombine.low %v2184_v51, %v2184_v51 }
 0x64f   :  { %2314 = vmatprep.subr.bf16.mxu1 %v5546_v43 }
 0x652   :  { %2315 = vmatpush1.bf16.msra.mxu1 %v5547_v7  ;;  %v5658_v7 = vld [vmem:[#allocation91_spill] sm:$0xff] }
 0x653   :  { %2316 = vmatprep.subr.bf16.mxu1 %v5548_v8  ;;  %v5659_v8 = vld [vmem:[#allocation92_spill] sm:$0xff] }
 0x656   :  { %2317 = vmatpush1.bf16.msra.mxu1 %v5549_v42 }
 0x657   :  { %2318 = vmatprep.subr.bf16.mxu1 %v4364_v32 }
 0x65a   :  { %2319 = vmatpush1.bf16.msra.mxu1 %v4367_v44  ;;  %v5661_v44 = vld [vmem:[#allocation94_spill] sm:$0xff] }
 0x65b   :  { %2320 = vmatprep.subr.bf16.mxu1 %v4370_v52  ;;  %v5660_v52 = vld [vmem:[#allocation93_spill] sm:$0xff] }
 0x65e   :  { %2321 = vmatpush1.bf16.msra.mxu1 %v4375_v26 }
 0x65f   :  { %2331 = vmatprep.subr.bf16.mxu1 %v4379_v4 }
 0x661   :  { %2323 = vmatmul.mubr.bf16.vlgmr.msra.gmra.mrb[12].mxu1 %v2571_v40 }
 0x662   :  { %2332 = vmatpush1.bf16.msra.mxu1 %v4383_v9 }
 0x663   :  { %2333 = vmatprep.subr.bf16.mxu1 %v5550_v48 }
 0x666   :  { %2334 = vmatpush1.bf16.msra.mxu1 %v5551_v17 }
 0x667   :  { %2335 = vmatprep.subr.bf16.mxu1 %v5552_v20 }
 0x66a   :  { %2336 = vmatpush1.bf16.msra.mxu1 %v5553_v21 }
 0x66b   :  { %2337 = vmatprep.subr.bf16.mxu1 %v5554_v0 }
 0x66e   :  { %2338 = vmatpush1.bf16.msra.mxu1 %v5555_v2 }
 0x66f   :  { %2339 = vmatprep.subr.bf16.mxu1 %v5556_v19 }
 0x672   :  { %2340 = vmatpush1.bf16.msra.mxu1 %v5557_v34 }
 0x673   :  { %2341 = vmatprep.subr.bf16.mxu1 %v5558_v53 }
 0x674   :  { %v1979_v6 = vpop.f32.mrb[8].mxu1 }
 0x675   :  { %v2583_v41 = vadd.f32 %v1979_v6, %v5657_v1  ;;  %v1981_v46 = vpop.f32.mrb[9].mxu1 }
 0x676   :  { %v2584_v30 = vadd.f32 %v1981_v46, %v3899_v18  ;;  %v1983_v13 = vpop.f32.mrb[10].mxu1  ;;  %2342 = vmatpush1.bf16.msra.mxu1 %v5559_v56 }
 0x677   :  { %2953 = vtanh.f32 %v2583_v41  ;;  %v1984_v22 = vpop.f32.mrb[11].mxu1  ;;  %2343 = vmatprep.subr.bf16.mxu1 %v5560_v39 }
 0x678   :  { %2955 = vtanh.f32 %v2584_v30 }
 0x67a   :  { %2344 = vmatpush1.bf16.msra.mxu1 %v5561_v57 }
 0x67b   :  { %2345 = vmatprep.subr.bf16.mxu1 %v5562_v58 }
 0x67e   :  { %2346 = vmatpush1.bf16.msra.mxu1 %v5563_v59 }
 0x67f   :  { %2347 = vmatprep.subr.bf16.mxu1 %v5564_v60 }
 0x681   :  { %v2954_v45 = vpop.eup %2953 }
 0x682   :  { %v2956_v11 = vpop.eup %2955  ;;  %v1992_v54 = vpack.c.bf16 %v2954_v45, %v2954_v45  ;;  %2348 = vmatpush1.bf16.msra.mxu1 %v5565_v61 }
 0x683   :  { %v1993_v35 = vpack.c.bf16 %v2956_v11, %v2956_v11  ;;  %2349 = vmatprep.subr.bf16.mxu1 %v5566_v63 }
 0x685   :  { %2170 = vmatprep.mubr.bf16.mxu0 %v1993_v35 }
 0x686   :  { %2171 = vmatmul.mubr.bf16.vlgmr.msra.gmra.mrb[12].mxu0 %v1992_v54  ;;  %2350 = vmatpush1.bf16.msra.mxu1 %v5567_v33 }
 0x687   :  { %2351 = vmatprep.subr.bf16.mxu1 %v5568_v14 }
 0x68a   :  { %2352 = vmatpush1.bf16.msra.mxu1 %v5569_v28 }
 0x68b   :  { %2353 = vmatprep.subr.bf16.mxu1 %v5570_v36 }
 0x68e   :  { %2354 = vmatpush1.bf16.msra.mxu1 %v5571_v25 }
 0x68f   :  { %2355 = vmatprep.subr.bf16.mxu1 %v5572_v23 }
 0x692   :  { %2356 = vmatpush1.bf16.msra.mxu1 %v5573_v38 }
 0x693   :  { %2357 = vmatprep.subr.bf16.mxu1 %v5575_v31 }
 0x696   :  { %2358 = vmatpush1.bf16.msra.mxu1 %v5577_v29 }
 0x697   :  { %2359 = vmatprep.subr.bf16.mxu1 %v5658_v7 }
 0x69a   :  { %2360 = vmatpush1.bf16.msra.mxu1 %v5659_v8 }
 0x69b   :  { %2361 = vmatprep.subr.bf16.mxu1 %v5660_v52 }
 0x69e   :  { %2362 = vmatpush1.bf16.msra.mxu1 %v5661_v44 }
 0x759   :  { %v2172_v26 = vpop.f32.mrb[12].mxu0 }
 0x75a   :  { %v2585_v32 = vadd.f32 %v2172_v26, %v5657_v1  ;;  %v2174_v4 = vpop.f32.mrb[13].mxu0 }
 0x75b   :  { %v2586_v9 = vadd.f32 %v2174_v4, %v3899_v18  ;;  %v2176_v43 = vpop.f32.mrb[14].mxu0 }
 0x75c   :  { %2957 = vtanh.f32 %v2585_v32  ;;  %v2177_v42 = vpop.f32.mrb[15].mxu0 }
 0x75d   :  { %2959 = vtanh.f32 %v2586_v9 }
 0x766   :  { %v2958_v48 = vpop.eup %2957 }
 0x767   :  { %v2960_v17 = vpop.eup %2959  ;;  %v2185_v21 = vpack.c.bf16 %v2958_v48, %v2958_v48 }
 0x768   :  { %v2186_v20 = vpack.c.bf16 %v2960_v17, %v2960_v17 }
 0x76a   :  { %2363 = vmatprep.mubr.bf16.mxu1 %v2186_v20 }
 0x76b   :  { %2364 = vmatmul.mubr.bf16.vlgmr.msra.gmra.mrb[12].mxu1 %v2185_v21 }
 0x83e   :  { %v2365_v0 = vpop.f32.mrb[12].mxu1 }
 0x83f   :  { %v2587_v2 = vadd.f32 %v2365_v0, %v5657_v1  ;;  %v2367_v19 = vpop.f32.mrb[13].mxu1 }
 0x840   :  { %v2588_v34 = vadd.f32 %v2367_v19, %v3899_v18  ;;  %v2369_v53 = vpop.f32.mrb[14].mxu1 }
 0x841   :  { %2961 = vtanh.f32 %v2587_v2  ;;  %v2370_v56 = vpop.f32.mrb[15].mxu1 }
 0x842   :  { %2963 = vtanh.f32 %v2588_v34 }
 0x84b   :  { %v2962_v39 = vpop.eup %2961 }
 0x84c   :  { %v2964_v57 = vpop.eup %2963  ;;  %2379 = vst [vmem:[#allocation8] sm:$0xff] %v2962_v39 }
 0x84d   :  { %2380 = vst [vmem:[#allocation8 + $0x8] sm:$0xff] %v2964_v57 }
 0x84e   :  { %3189 = shalt.err (!%p3186_p6)
}
 0x84f   :  { %s3190_s17 = scalar_lea.hbm %s4841_s3, 256 }
 0x850   :  { %p3191_p7 = scmp.ne.s32.totalorder %s4841_s3, %s3190_s17  ;;  %p3194_p8 = scmp.lt.u32.totalorder %s3190_s17, %s4841_s3 }
 0x852   :  { %p3196_p9 = pnand %p3194_p8, %p3191_p7 }
 0x854   :  { %3199 = shalt.err (!%p3196_p9)
}
 0x855   :  { %2390 = dma.vmem_to_hbm [thread:$0]  %s2388_s13, 256, %s4841_s3, [#allocation5]  }
 0x856   :  { %3204 = dma.done.wait [#allocation5], 256  }
 0x857   :  { %3205 = vsyncadd [#allocation5], 4294967040 }
 0x858   :  { %2394 = vsyncpa [#allocation4], 1 }
 0x859   :  { %2395 = vsyncpa [#allocation7], 1 }
 0x85a   :  { %2396 = vsyncpa [#allocation5], 1 }

</bundles_post_ra>
